<compile_context>
chip_gen: v5e
topology: v5e:2x2
jax: 0.10.0
libtpu: 0.0.40
codegen_flags: <defaults>
</compile_context>

<pallas_src>
import functools

import jax
import jax.numpy as jnp
from jax.experimental import pallas as pl
from jax.experimental.pallas import tpu as pltpu

# ---------------- tiny synthetic BERT config (lane-friendly) ----------------
VOCAB = 100
HIDDEN = 256                     # multiple of 128 -> lane-dense activations
N_LAYERS = 2
N_HEADS = 2
HEAD_DIM = HIDDEN // N_HEADS     # 128 -> head slices on exact lane boundaries
INTERMEDIATE = 512
MAX_POS = 16
TYPE_VOCAB = 2
LN_EPS = 1e-12
PACK_W = max(3 * HIDDEN, INTERMEDIATE)   # 768: width of packed small-tensor rows

WEIGHT_DTYPE = jnp.bfloat16      # MXU input dtype (accumulation stays f32)
ACT_DTYPE = jnp.bfloat16         # resident hidden state / h0 handoff dtype


# ---------------- in-kernel helpers (f32 epilogue math) ----------------
def _layernorm(x, gamma, beta, eps=LN_EPS):
    mean = jnp.mean(x, axis=-1, keepdims=True)
    var = jnp.mean(jnp.square(x - mean), axis=-1, keepdims=True)
    return (x - mean) * jax.lax.rsqrt(var + eps) * gamma + beta


# ---------------- fused encoder kernel ----------------
def _encoder_kernel(
    layers_per_step,   # static Python int (bound via functools.partial)
    # inputs
    h0_hbm_ref,        # [B*S, H]  bf16   pre-normalized embeddings (HBM, pl.ANY)
    bias_ref,          # [B, S]    f32    additive attention-mask bias
    qkv_w_ref,         # [lps, H, 3H] bf16  (Q columns pre-scaled by 1/sqrt(dh))
    ao_w_ref,          # [lps, H, H]  bf16
    i_w_ref,           # [lps, H, I]  bf16
    o_w_ref,           # [lps, I, H]  bf16
    small_ref,         # [lps, 8, PACK_W] f32  packed biases + LN params
    pool_w_ref,        # [H, H]    bf16
    pool_b_ref,        # [1, H]    f32
    # output
    pooled_ref,        # [B, H]    f32
    # scratch
    h_ref,             # [B*S, H]  bf16   resident hidden state (across grid)
    ctx_ref,           # [B*S, H]  bf16   per-head context slab
    dma_sem,           # scalar DMA semaphore for the h0 seed copy
):
    step = pl.program_id(0)
    n_steps = pl.num_programs(0)
    B, S = bias_ref.shape
    H = HIDDEN
    I = INTERMEDIATE

    # ---- step 0: seed the resident hidden state with one manual DMA ----
    @pl.when(step == 0)
    def _():
        cp = pltpu.make_async_copy(h0_hbm_ref, h_ref, dma_sem)
        cp.start()
        cp.wait()

    h = h_ref[...].astype(jnp.float32)           # [B*S, H] f32 working value
    bias3 = bias_ref[...][:, None, :]            # [B, 1, S] (hoisted once/step)

    for l in range(layers_per_step):             # static unroll over this step's layers
        small = small_ref[l]                     # [8, PACK_W] f32
        qkv_b = small[0:1, :3 * H]
        i_b = small[1:2, :I]
        ao_b = small[2:3, :H]
        o_b = small[3:4, :H]

        # ---- fused QKV projection (attention scale folded into Q weights) ----
        qkv = jnp.dot(h.astype(WEIGHT_DTYPE), qkv_w_ref[l],
                      preferred_element_type=jnp.float32) + qkv_b

        # ---- multi-head self-attention; heads = 128-lane slices ----
        for hd in range(N_HEADS):
            lo = hd * HEAD_DIM
            qh = qkv[:, lo:lo + HEAD_DIM].reshape(B, S, HEAD_DIM)
            kh = qkv[:, H + lo:H + lo + HEAD_DIM].reshape(B, S, HEAD_DIM)
            vh = qkv[:, 2 * H + lo:2 * H + lo + HEAD_DIM].reshape(B, S, HEAD_DIM)
            s = jnp.einsum('bqd,bkd->bqk',
                           qh.astype(WEIGHT_DTYPE), kh.astype(WEIGHT_DTYPE),
                           preferred_element_type=jnp.float32) + bias3
            m = jnp.max(s, axis=-1, keepdims=True)
            p = jnp.exp(s - m)
            lsum = jnp.sum(p, axis=-1, keepdims=True)
            ctx = jnp.einsum('bqk,bkd->bqd',
                             p.astype(WEIGHT_DTYPE), vh.astype(WEIGHT_DTYPE),
                             preferred_element_type=jnp.float32)
            # normalize the small context tensor post-PV (EUP reciprocal)
            ctx = ctx * pl.reciprocal(lsum, approx=True)
            # direct 128-lane-aligned store; no jnp.concatenate materialized
            ctx_ref[:, lo:lo + HEAD_DIM] = (
                ctx.reshape(B * S, HEAD_DIM).astype(ctx_ref.dtype))

        # ---- attention output projection + residual + LayerNorm (fused) ----
        attn_out = jnp.dot(ctx_ref[...], ao_w_ref[l],
                           preferred_element_type=jnp.float32) + ao_b
        h = _layernorm(attn_out + h, small[4:5, :H], small[5:6, :H])

        # ---- feed-forward + residual + LayerNorm (fused) ----
        inter = jnp.dot(h.astype(WEIGHT_DTYPE), i_w_ref[l],
                        preferred_element_type=jnp.float32) + i_b
        inter = jax.nn.gelu(inter, approximate=True)     # f32 epilogue
        ffn = jnp.dot(inter.astype(WEIGHT_DTYPE), o_w_ref[l],
                      preferred_element_type=jnp.float32) + o_b
        h = _layernorm(ffn + h, small[6:7, :H], small[7:8, :H])

    h_ref[...] = h.astype(h_ref.dtype)           # carry to the next grid step

    # ---- last grid step: pooler = tanh(dense(CLS)) == pooler_output ----
    @pl.when(step == n_steps - 1)
    def _():
        cls = h.reshape(B, S, H)[:, 0, :]        # [B, H]
        pooled = jnp.tanh(
            jnp.dot(cls.astype(WEIGHT_DTYPE), pool_w_ref[...],
                    preferred_element_type=jnp.float32) + pool_b_ref[...])
        pooled_ref[...] = pooled.astype(pooled_ref.dtype)


# ---------------- parameters ----------------
def init_params(key):
    ks = jax.random.split(key, 8)
    H, I, L = HIDDEN, INTERMEDIATE, N_LAYERS

    def nrm(k, shape, scale=0.02):
        return jax.random.normal(k, shape, dtype=jnp.float32) * scale

    # fused QKV weight with 1/sqrt(head_dim) folded into the Q columns
    attn_scale = 1.0 / (HEAD_DIM ** 0.5)
    qkv_w = nrm(ks[3], (L, H, 3 * H))
    qkv_w = qkv_w.at[:, :, :H].multiply(attn_scale)
    qkv_b = jnp.zeros((L, 3 * H), jnp.float32)
    qkv_b = qkv_b.at[:, :H].multiply(attn_scale)   # no-op for zeros; kept for generality

    # packed per-layer small tensors: [L, 8, PACK_W]
    def pad(x):
        return jnp.pad(x, ((0, 0), (0, PACK_W - x.shape[-1])))

    ao_b = jnp.zeros((L, H), jnp.float32)
    i_b = jnp.zeros((L, I), jnp.float32)
    o_b = jnp.zeros((L, H), jnp.float32)
    ln_attn_g = jnp.ones((L, H), jnp.float32)
    ln_attn_b = jnp.zeros((L, H), jnp.float32)
    ln_out_g = jnp.ones((L, H), jnp.float32)
    ln_out_b = jnp.zeros((L, H), jnp.float32)
    small = jnp.stack(
        [pad(qkv_b), pad(i_b), pad(ao_b), pad(o_b),
         pad(ln_attn_g), pad(ln_attn_b), pad(ln_out_g), pad(ln_out_b)],
        axis=1)                                   # [L, 8, PACK_W]

    return {
        "word_emb": nrm(ks[0], (VOCAB, H)),
        "pos_emb": nrm(ks[1], (MAX_POS, H)),
        "type_emb": nrm(ks[2], (TYPE_VOCAB, H)),
        "emb_ln_g": jnp.ones((H,), jnp.float32),
        "emb_ln_b": jnp.zeros((H,), jnp.float32),
        "qkv_w": qkv_w.astype(WEIGHT_DTYPE),
        "ao_w": nrm(ks[4], (L, H, H)).astype(WEIGHT_DTYPE),
        "i_w": nrm(ks[5], (L, H, I)).astype(WEIGHT_DTYPE),
        "o_w": nrm(ks[6], (L, I, H)).astype(WEIGHT_DTYPE),
        "small": small,
        "pool_w": nrm(ks[7], (H, H)).astype(WEIGHT_DTYPE),
        "pool_b": jnp.zeros((1, H), jnp.float32),
    }


# ---------------- forward (glue in JAX, all heavy compute in one kernel) ----
def similarity_model_forward(params, input_ids, attention_mask,
                             *, layers_per_step=N_LAYERS):
    """Equivalent of SimilarityModel.forward -> bert(...).pooler_output, [B, H].

    layers_per_step=N_LAYERS  -> grid=(1,), all weights in VMEM (toy / small).
    layers_per_step=1         -> per-layer weight streaming (scale path).
    """
    B, S = input_ids.shape
    H, I = HIDDEN, INTERMEDIATE
    assert N_LAYERS % layers_per_step == 0
    n_steps = N_LAYERS // layers_per_step
    lps = layers_per_step

    # embeddings + embedding LayerNorm done in the wrapper (gathers are glue)
    word = params["word_emb"][input_ids]                   # [B, S, H]
    pos = params["pos_emb"][jnp.arange(S)][None, :, :]     # [1, S, H]
    tok = params["type_emb"][0][None, None, :]             # [1, 1, H]
    emb = (word + pos + tok).reshape(B * S, H)
    mean = jnp.mean(emb, axis=-1, keepdims=True)
    var = jnp.mean(jnp.square(emb - mean), axis=-1, keepdims=True)
    h0 = ((emb - mean) * jax.lax.rsqrt(var + LN_EPS)
          * params["emb_ln_g"] + params["emb_ln_b"]).astype(ACT_DTYPE)

    # additive attention-mask bias, precomputed once per forward: [B, S]
    bias = (1.0 - attention_mask.astype(jnp.float32)) * -1e9

    grid_spec = pltpu.PrefetchScalarGridSpec(
        num_scalar_prefetch=0,
        grid=(n_steps,),
        in_specs=[
            pl.BlockSpec(memory_space=pl.ANY),                      # h0 (HBM)
            pl.BlockSpec((B, S), lambda s: (0, 0)),                 # mask bias
            pl.BlockSpec((lps, H, 3 * H), lambda s: (s, 0, 0)),     # qkv_w
            pl.BlockSpec((lps, H, H), lambda s: (s, 0, 0)),         # ao_w
            pl.BlockSpec((lps, H, I), lambda s: (s, 0, 0)),         # i_w
            pl.BlockSpec((lps, I, H), lambda s: (s, 0, 0)),         # o_w
            pl.BlockSpec((lps, 8, PACK_W), lambda s: (s, 0, 0)),    # packed small
            pl.BlockSpec((H, H), lambda s: (0, 0)),                 # pool_w
            pl.BlockSpec((1, H), lambda s: (0, 0)),                 # pool_b
        ],
        out_specs=pl.BlockSpec((B, H), lambda s: (0, 0)),
        scratch_shapes=[
            pltpu.VMEM((B * S, H), ACT_DTYPE),     # resident hidden state
            pltpu.VMEM((B * S, H), ACT_DTYPE),     # per-head context slab
            pltpu.SemaphoreType.DMA(()),           # h0 seed DMA
        ],
    )

    pooled = pl.pallas_call(
        functools.partial(_encoder_kernel, lps),
        out_shape=jax.ShapeDtypeStruct((B, H), jnp.float32),
        grid_spec=grid_spec,
        compiler_params=pltpu.CompilerParams(
            dimension_semantics=("arbitrary",),     # layer-step axis is sequential
            vmem_limit_bytes=32 * 1024 * 1024),
    )(h0, bias, params["qkv_w"], params["ao_w"], params["i_w"],
      params["o_w"], params["small"], params["pool_w"], params["pool_b"])
    return pooled                                              # [B, H]


if __name__ == "__main__":
    key = jax.random.PRNGKey(0)
    pkey, ikey = jax.random.split(key)
    params = init_params(pkey)

    B, S = 2, 8
    input_ids = jax.random.randint(ikey, (B, S), 0, VOCAB, dtype=jnp.int32)
    attention_mask = jnp.array(
        [[1, 1, 1, 1, 1, 1, 1, 1],
         [1, 1, 1, 1, 1, 1, 0, 0]], dtype=jnp.int32)

    fwd = jax.jit(similarity_model_forward)
    pooled = fwd(params, input_ids, attention_mask)
    pooled = jax.block_until_ready(pooled)
    assert pooled.shape == (B, HIDDEN)
    assert bool(jnp.all(jnp.isfinite(pooled)))
    print("KERNEL_OK")
</pallas_src>

<mosaic_0001>
module attributes {stable_mosaic.version = 11 : i64} {
  func.func @_encoder_kernel(%arg0: i32, %arg1: memref<16x256xbf16, #tpu.memory_space<any>>, %arg2: memref<2x8xf32, #tpu.memory_space<vmem>>, %arg3: memref<2x256x768xbf16, #tpu.memory_space<vmem>>, %arg4: memref<2x256x256xbf16, #tpu.memory_space<vmem>>, %arg5: memref<2x256x512xbf16, #tpu.memory_space<vmem>>, %arg6: memref<2x512x256xbf16, #tpu.memory_space<vmem>>, %arg7: memref<2x8x768xf32, #tpu.memory_space<vmem>>, %arg8: memref<256x256xbf16, #tpu.memory_space<vmem>>, %arg9: memref<1x256xf32, #tpu.memory_space<vmem>>, %arg10: memref<2x256xf32, #tpu.memory_space<vmem>>, %arg11: memref<16x256xbf16, #tpu.memory_space<vmem>>, %arg12: memref<16x256xbf16, #tpu.memory_space<vmem>>, %arg13: memref<!tpu.dma_semaphore, #tpu.memory_space<semaphore_mem>>) attributes {dimension_semantics = [#tpu.dimension_semantics<arbitrary>], iteration_bounds = array<i64: 1>, scalar_prefetch = 0 : i64, scratch_operands = 3 : i64, tpu.core_type = #tpu.core_type<tc>, window_params = [{}, {pipeline_mode = #tpu.pipeline_mode<synchronous>, transform_indices = @transform_1, window_bounds = array<i64: 2, 8>}, {transform_indices = @transform_2, window_bounds = array<i64: 2, 256, 768>}, {transform_indices = @transform_3, window_bounds = array<i64: 2, 256, 256>}, {transform_indices = @transform_4, window_bounds = array<i64: 2, 256, 512>}, {transform_indices = @transform_5, window_bounds = array<i64: 2, 512, 256>}, {transform_indices = @transform_6, window_bounds = array<i64: 2, 8, 768>}, {pipeline_mode = #tpu.pipeline_mode<synchronous>, transform_indices = @transform_7, window_bounds = array<i64: 256, 256>}, {pipeline_mode = #tpu.pipeline_mode<synchronous>, transform_indices = @transform_8, window_bounds = array<i64: 1, 256>}, {pipeline_mode = #tpu.pipeline_mode<synchronous>, transform_indices = @transform_9, window_bounds = array<i64: 2, 256>}]} {
    %c0_i32 = arith.constant 0 : i32
    %0 = arith.cmpi eq, %arg0, %c0_i32 : i32
    %1 = arith.extui %0 : i1 to i32
    %c0_i32_0 = arith.constant 0 : i32
    %2 = arith.cmpi ne, %1, %c0_i32_0 : i32
    scf.if %2 {
      tpu.enqueue_dma source(%arg1 : memref<16x256xbf16, #tpu.memory_space<any>>) target(%arg11 : memref<16x256xbf16, #tpu.memory_space<vmem>>) target_semaphore(%arg13 : memref<!tpu.dma_semaphore, #tpu.memory_space<semaphore_mem>>)
      tpu.wait_dma2 semaphore(%arg13 : memref<!tpu.dma_semaphore, #tpu.memory_space<semaphore_mem>>) src(%arg1 : memref<16x256xbf16, #tpu.memory_space<any>>) dst(%arg11 : memref<16x256xbf16, #tpu.memory_space<vmem>>)
    } else {
    }
    %c0 = arith.constant 0 : index
    %c0_1 = arith.constant 0 : index
    %3 = vector.load %arg11[%c0, %c0_1] : memref<16x256xbf16, #tpu.memory_space<vmem>>, vector<16x256xbf16>
    %4 = arith.extf %3 : vector<16x256xbf16> to vector<16x256xf32>
    %c0_2 = arith.constant 0 : index
    %c0_3 = arith.constant 0 : index
    %5 = vector.load %arg2[%c0_2, %c0_3] : memref<2x8xf32, #tpu.memory_space<vmem>>, vector<2x8xf32>
    %6 = vector.shape_cast %5 : vector<2x8xf32> to vector<2x1x8xf32>
    %c0_4 = arith.constant 0 : index
    %c0_5 = arith.constant 0 : index
    %c0_6 = arith.constant 0 : index
    %7 = vector.load %arg7[%c0_4, %c0_5, %c0_6] : memref<2x8x768xf32, #tpu.memory_space<vmem>>, vector<1x8x768xf32>
    %8 = vector.shape_cast %7 : vector<1x8x768xf32> to vector<8x768xf32>
    %9 = vector.extract_strided_slice %8 {offsets = [0, 0], sizes = [1, 768], strides = [1, 1]} : vector<8x768xf32> to vector<1x768xf32>
    %10 = vector.extract_strided_slice %8 {offsets = [1, 0], sizes = [1, 512], strides = [1, 1]} : vector<8x768xf32> to vector<1x512xf32>
    %11 = vector.extract_strided_slice %8 {offsets = [2, 0], sizes = [1, 256], strides = [1, 1]} : vector<8x768xf32> to vector<1x256xf32>
    %12 = vector.extract_strided_slice %8 {offsets = [3, 0], sizes = [1, 256], strides = [1, 1]} : vector<8x768xf32> to vector<1x256xf32>
    %13 = arith.truncf %4 : vector<16x256xf32> to vector<16x256xbf16>
    %c0_7 = arith.constant 0 : index
    %c0_8 = arith.constant 0 : index
    %c0_9 = arith.constant 0 : index
    %14 = vector.load %arg3[%c0_7, %c0_8, %c0_9] : memref<2x256x768xbf16, #tpu.memory_space<vmem>>, vector<1x256x768xbf16>
    %15 = vector.shape_cast %14 : vector<1x256x768xbf16> to vector<256x768xbf16>
    %cst = arith.constant dense<0.000000e+00> : vector<16x768xf32>
    %16 = tpu.matmul %13, %15, %cst {dimension_numbers = #tpu.dot_dimension_numbers<[1], [0], [0], [1], [0, 0, 1, 1], [], []>} : vector<16x256xbf16>, vector<256x768xbf16>, vector<16x768xf32> -> vector<16x768xf32>
    %17 = vector.broadcast %9 : vector<1x768xf32> to vector<16x768xf32>
    %18 = arith.addf %16, %17 : vector<16x768xf32>
    %19 = vector.extract_strided_slice %18 {offsets = [0, 0], sizes = [16, 128], strides = [1, 1]} : vector<16x768xf32> to vector<16x128xf32>
    %20 = vector.shape_cast %19 : vector<16x128xf32> to vector<2x8x128xf32>
    %21 = vector.extract_strided_slice %18 {offsets = [0, 256], sizes = [16, 128], strides = [1, 1]} : vector<16x768xf32> to vector<16x128xf32>
    %22 = vector.shape_cast %21 : vector<16x128xf32> to vector<2x8x128xf32>
    %23 = vector.extract_strided_slice %18 {offsets = [0, 512], sizes = [16, 128], strides = [1, 1]} : vector<16x768xf32> to vector<16x128xf32>
    %24 = vector.shape_cast %23 : vector<16x128xf32> to vector<2x8x128xf32>
    %25 = arith.truncf %20 : vector<2x8x128xf32> to vector<2x8x128xbf16>
    %26 = arith.truncf %22 : vector<2x8x128xf32> to vector<2x8x128xbf16>
    "tpu.trace_start"() <{level = 10 : i32, message = "bqd,bkd->bqk"}> : () -> ()
    %cst_10 = arith.constant dense<0.000000e+00> : vector<2x8x8xf32>
    %27 = tpu.matmul %25, %26, %cst_10 {dimension_numbers = #tpu.dot_dimension_numbers<[2], [2], [1], [1], [0, 0, 0, 1, 1, 1], [0], [0]>} : vector<2x8x128xbf16>, vector<2x8x128xbf16>, vector<2x8x8xf32> -> vector<2x8x8xf32>
    "tpu.trace_stop"() : () -> ()
    %28 = vector.broadcast %6 : vector<2x1x8xf32> to vector<2x8x8xf32>
    %29 = arith.addf %27, %28 : vector<2x8x8xf32>
    %cst_11 = arith.constant dense<0xFF800000> : vector<2x8xf32>
    %30 = vector.multi_reduction <maximumf>, %29, %cst_11 [2] : vector<2x8x8xf32> to vector<2x8xf32>
    %31 = vector.shape_cast %30 : vector<2x8xf32> to vector<2x8x1xf32>
    %32 = vector.broadcast %31 : vector<2x8x1xf32> to vector<2x8x8xf32>
    %33 = arith.subf %29, %32 : vector<2x8x8xf32>
    %34 = math.exp %33 : vector<2x8x8xf32>
    %cst_12 = arith.constant dense<0.000000e+00> : vector<2x8xf32>
    %35 = vector.multi_reduction <add>, %34, %cst_12 [2] : vector<2x8x8xf32> to vector<2x8xf32>
    %36 = vector.shape_cast %35 : vector<2x8xf32> to vector<2x8x1xf32>
    %37 = arith.truncf %34 : vector<2x8x8xf32> to vector<2x8x8xbf16>
    %38 = arith.truncf %24 : vector<2x8x128xf32> to vector<2x8x128xbf16>
    "tpu.trace_start"() <{level = 10 : i32, message = "bqk,bkd->bqd"}> : () -> ()
    %cst_13 = arith.constant dense<0.000000e+00> : vector<2x8x128xf32>
    %39 = tpu.matmul %37, %38, %cst_13 {dimension_numbers = #tpu.dot_dimension_numbers<[2], [1], [1], [2], [0, 0, 0, 1, 1, 2], [0], [0]>} : vector<2x8x8xbf16>, vector<2x8x128xbf16>, vector<2x8x128xf32> -> vector<2x8x128xf32>
    "tpu.trace_stop"() : () -> ()
    %40 = tpu.reciprocal %36 {approx = true} : vector<2x8x1xf32> -> vector<2x8x1xf32>
    %41 = vector.broadcast %40 : vector<2x8x1xf32> to vector<2x8x128xf32>
    %42 = arith.mulf %39, %41 : vector<2x8x128xf32>
    %43 = vector.shape_cast %42 : vector<2x8x128xf32> to vector<16x128xf32>
    %44 = arith.truncf %43 : vector<16x128xf32> to vector<16x128xbf16>
    %c0_14 = arith.constant 0 : index
    %c0_15 = arith.constant 0 : index
    %45 = vector.load %arg12[%c0_14, %c0_15] : memref<16x256xbf16, #tpu.memory_space<vmem>>, vector<16x128xbf16>
    tpu.vector_store %arg12[%c0_14, %c0_15], %44 {strides = array<i32>} : memref<16x256xbf16, #tpu.memory_space<vmem>>, vector<16x128xbf16>,
    %46 = vector.extract_strided_slice %18 {offsets = [0, 128], sizes = [16, 128], strides = [1, 1]} : vector<16x768xf32> to vector<16x128xf32>
    %47 = vector.shape_cast %46 : vector<16x128xf32> to vector<2x8x128xf32>
    %48 = vector.extract_strided_slice %18 {offsets = [0, 384], sizes = [16, 128], strides = [1, 1]} : vector<16x768xf32> to vector<16x128xf32>
    %49 = vector.shape_cast %48 : vector<16x128xf32> to vector<2x8x128xf32>
    %50 = vector.extract_strided_slice %18 {offsets = [0, 640], sizes = [16, 128], strides = [1, 1]} : vector<16x768xf32> to vector<16x128xf32>
    %51 = vector.shape_cast %50 : vector<16x128xf32> to vector<2x8x128xf32>
    %52 = arith.truncf %47 : vector<2x8x128xf32> to vector<2x8x128xbf16>
    %53 = arith.truncf %49 : vector<2x8x128xf32> to vector<2x8x128xbf16>
    "tpu.trace_start"() <{level = 10 : i32, message = "bqd,bkd->bqk"}> : () -> ()
    %cst_16 = arith.constant dense<0.000000e+00> : vector<2x8x8xf32>
    %54 = tpu.matmul %52, %53, %cst_16 {dimension_numbers = #tpu.dot_dimension_numbers<[2], [2], [1], [1], [0, 0, 0, 1, 1, 1], [0], [0]>} : vector<2x8x128xbf16>, vector<2x8x128xbf16>, vector<2x8x8xf32> -> vector<2x8x8xf32>
    "tpu.trace_stop"() : () -> ()
    %55 = vector.broadcast %6 : vector<2x1x8xf32> to vector<2x8x8xf32>
    %56 = arith.addf %54, %55 : vector<2x8x8xf32>
    %cst_17 = arith.constant dense<0xFF800000> : vector<2x8xf32>
    %57 = vector.multi_reduction <maximumf>, %56, %cst_17 [2] : vector<2x8x8xf32> to vector<2x8xf32>
    %58 = vector.shape_cast %57 : vector<2x8xf32> to vector<2x8x1xf32>
    %59 = vector.broadcast %58 : vector<2x8x1xf32> to vector<2x8x8xf32>
    %60 = arith.subf %56, %59 : vector<2x8x8xf32>
    %61 = math.exp %60 : vector<2x8x8xf32>
    %cst_18 = arith.constant dense<0.000000e+00> : vector<2x8xf32>
    %62 = vector.multi_reduction <add>, %61, %cst_18 [2] : vector<2x8x8xf32> to vector<2x8xf32>
    %63 = vector.shape_cast %62 : vector<2x8xf32> to vector<2x8x1xf32>
    %64 = arith.truncf %61 : vector<2x8x8xf32> to vector<2x8x8xbf16>
    %65 = arith.truncf %51 : vector<2x8x128xf32> to vector<2x8x128xbf16>
    "tpu.trace_start"() <{level = 10 : i32, message = "bqk,bkd->bqd"}> : () -> ()
    %cst_19 = arith.constant dense<0.000000e+00> : vector<2x8x128xf32>
    %66 = tpu.matmul %64, %65, %cst_19 {dimension_numbers = #tpu.dot_dimension_numbers<[2], [1], [1], [2], [0, 0, 0, 1, 1, 2], [0], [0]>} : vector<2x8x8xbf16>, vector<2x8x128xbf16>, vector<2x8x128xf32> -> vector<2x8x128xf32>
    "tpu.trace_stop"() : () -> ()
    %67 = tpu.reciprocal %63 {approx = true} : vector<2x8x1xf32> -> vector<2x8x1xf32>
    %68 = vector.broadcast %67 : vector<2x8x1xf32> to vector<2x8x128xf32>
    %69 = arith.mulf %66, %68 : vector<2x8x128xf32>
    %70 = vector.shape_cast %69 : vector<2x8x128xf32> to vector<16x128xf32>
    %71 = arith.truncf %70 : vector<16x128xf32> to vector<16x128xbf16>
    %c0_20 = arith.constant 0 : index
    %c128 = arith.constant 128 : index
    %72 = vector.load %arg12[%c0_20, %c128] : memref<16x256xbf16, #tpu.memory_space<vmem>>, vector<16x128xbf16>
    tpu.vector_store %arg12[%c0_20, %c128], %71 {strides = array<i32>} : memref<16x256xbf16, #tpu.memory_space<vmem>>, vector<16x128xbf16>,
    %c0_21 = arith.constant 0 : index
    %c0_22 = arith.constant 0 : index
    %73 = vector.load %arg12[%c0_21, %c0_22] : memref<16x256xbf16, #tpu.memory_space<vmem>>, vector<16x256xbf16>
    %c0_23 = arith.constant 0 : index
    %c0_24 = arith.constant 0 : index
    %c0_25 = arith.constant 0 : index
    %74 = vector.load %arg4[%c0_23, %c0_24, %c0_25] : memref<2x256x256xbf16, #tpu.memory_space<vmem>>, vector<1x256x256xbf16>
    %75 = vector.shape_cast %74 : vector<1x256x256xbf16> to vector<256x256xbf16>
    %cst_26 = arith.constant dense<0.000000e+00> : vector<16x256xf32>
    %76 = tpu.matmul %73, %75, %cst_26 {dimension_numbers = #tpu.dot_dimension_numbers<[1], [0], [0], [1], [0, 0, 1, 1], [], []>} : vector<16x256xbf16>, vector<256x256xbf16>, vector<16x256xf32> -> vector<16x256xf32>
    %77 = vector.broadcast %11 : vector<1x256xf32> to vector<16x256xf32>
    %78 = arith.addf %76, %77 : vector<16x256xf32>
    %79 = arith.addf %78, %4 : vector<16x256xf32>
    %80 = vector.extract_strided_slice %8 {offsets = [4, 0], sizes = [1, 256], strides = [1, 1]} : vector<8x768xf32> to vector<1x256xf32>
    %81 = vector.extract_strided_slice %8 {offsets = [5, 0], sizes = [1, 256], strides = [1, 1]} : vector<8x768xf32> to vector<1x256xf32>
    %cst_27 = arith.constant dense<0.000000e+00> : vector<16xf32>
    %82 = vector.multi_reduction <add>, %79, %cst_27 [1] : vector<16x256xf32> to vector<16xf32>
    %83 = vector.shape_cast %82 : vector<16xf32> to vector<16x1xf32>
    %cst_28 = arith.constant 2.560000e+02 : f32
    %84 = vector.broadcast %cst_28 : f32 to vector<16x1xf32>
    %85 = arith.divf %83, %84 : vector<16x1xf32>
    %86 = vector.broadcast %85 : vector<16x1xf32> to vector<16x256xf32>
    %87 = arith.subf %79, %86 : vector<16x256xf32>
    %88 = arith.mulf %87, %87 : vector<16x256xf32>
    %cst_29 = arith.constant dense<0.000000e+00> : vector<16xf32>
    %89 = vector.multi_reduction <add>, %88, %cst_29 [1] : vector<16x256xf32> to vector<16xf32>
    %90 = vector.shape_cast %89 : vector<16xf32> to vector<16x1xf32>
    %cst_30 = arith.constant 2.560000e+02 : f32
    %91 = vector.broadcast %cst_30 : f32 to vector<16x1xf32>
    %92 = arith.divf %90, %91 : vector<16x1xf32>
    %93 = vector.broadcast %85 : vector<16x1xf32> to vector<16x256xf32>
    %94 = arith.subf %79, %93 : vector<16x256xf32>
    %cst_31 = arith.constant 9.99999996E-13 : f32
    %95 = vector.broadcast %cst_31 : f32 to vector<16x1xf32>
    %96 = arith.addf %92, %95 : vector<16x1xf32>
    %97 = math.rsqrt %96 : vector<16x1xf32>
    %98 = vector.broadcast %97 : vector<16x1xf32> to vector<16x256xf32>
    %99 = arith.mulf %94, %98 : vector<16x256xf32>
    %100 = vector.broadcast %80 : vector<1x256xf32> to vector<16x256xf32>
    %101 = arith.mulf %99, %100 : vector<16x256xf32>
    %102 = vector.broadcast %81 : vector<1x256xf32> to vector<16x256xf32>
    %103 = arith.addf %101, %102 : vector<16x256xf32>
    %104 = arith.truncf %103 : vector<16x256xf32> to vector<16x256xbf16>
    %c0_32 = arith.constant 0 : index
    %c0_33 = arith.constant 0 : index
    %c0_34 = arith.constant 0 : index
    %105 = vector.load %arg5[%c0_32, %c0_33, %c0_34] : memref<2x256x512xbf16, #tpu.memory_space<vmem>>, vector<1x256x512xbf16>
    %106 = vector.shape_cast %105 : vector<1x256x512xbf16> to vector<256x512xbf16>
    %cst_35 = arith.constant dense<0.000000e+00> : vector<16x512xf32>
    %107 = tpu.matmul %104, %106, %cst_35 {dimension_numbers = #tpu.dot_dimension_numbers<[1], [0], [0], [1], [0, 0, 1, 1], [], []>} : vector<16x256xbf16>, vector<256x512xbf16>, vector<16x512xf32> -> vector<16x512xf32>
    %108 = vector.broadcast %10 : vector<1x512xf32> to vector<16x512xf32>
    %109 = arith.addf %107, %108 : vector<16x512xf32>
    %110 = arith.mulf %109, %109 : vector<16x512xf32>
    %111 = arith.mulf %109, %110 : vector<16x512xf32>
    %cst_36 = arith.constant 4.471500e-02 : f32
    %112 = vector.broadcast %cst_36 : f32 to vector<16x512xf32>
    %113 = arith.mulf %112, %111 : vector<16x512xf32>
    %114 = arith.addf %109, %113 : vector<16x512xf32>
    %cst_37 = arith.constant 0.797884583 : f32
    %115 = vector.broadcast %cst_37 : f32 to vector<16x512xf32>
    %116 = arith.mulf %115, %114 : vector<16x512xf32>
    %117 = math.tanh %116 : vector<16x512xf32>
    %cst_38 = arith.constant 1.000000e+00 : f32
    %118 = vector.broadcast %cst_38 : f32 to vector<16x512xf32>
    %119 = arith.addf %118, %117 : vector<16x512xf32>
    %cst_39 = arith.constant 5.000000e-01 : f32
    %120 = vector.broadcast %cst_39 : f32 to vector<16x512xf32>
    %121 = arith.mulf %120, %119 : vector<16x512xf32>
    %122 = arith.mulf %109, %121 : vector<16x512xf32>
    %123 = arith.truncf %122 : vector<16x512xf32> to vector<16x512xbf16>
    %c0_40 = arith.constant 0 : index
    %c0_41 = arith.constant 0 : index
    %c0_42 = arith.constant 0 : index
    %124 = vector.load %arg6[%c0_40, %c0_41, %c0_42] : memref<2x512x256xbf16, #tpu.memory_space<vmem>>, vector<1x512x256xbf16>
    %125 = vector.shape_cast %124 : vector<1x512x256xbf16> to vector<512x256xbf16>
    %cst_43 = arith.constant dense<0.000000e+00> : vector<16x256xf32>
    %126 = tpu.matmul %123, %125, %cst_43 {dimension_numbers = #tpu.dot_dimension_numbers<[1], [0], [0], [1], [0, 0, 1, 1], [], []>} : vector<16x512xbf16>, vector<512x256xbf16>, vector<16x256xf32> -> vector<16x256xf32>
    %127 = vector.broadcast %12 : vector<1x256xf32> to vector<16x256xf32>
    %128 = arith.addf %126, %127 : vector<16x256xf32>
    %129 = arith.addf %128, %103 : vector<16x256xf32>
    %130 = vector.extract_strided_slice %8 {offsets = [6, 0], sizes = [1, 256], strides = [1, 1]} : vector<8x768xf32> to vector<1x256xf32>
    %131 = vector.extract_strided_slice %8 {offsets = [7, 0], sizes = [1, 256], strides = [1, 1]} : vector<8x768xf32> to vector<1x256xf32>
    %cst_44 = arith.constant dense<0.000000e+00> : vector<16xf32>
    %132 = vector.multi_reduction <add>, %129, %cst_44 [1] : vector<16x256xf32> to vector<16xf32>
    %133 = vector.shape_cast %132 : vector<16xf32> to vector<16x1xf32>
    %cst_45 = arith.constant 2.560000e+02 : f32
    %134 = vector.broadcast %cst_45 : f32 to vector<16x1xf32>
    %135 = arith.divf %133, %134 : vector<16x1xf32>
    %136 = vector.broadcast %135 : vector<16x1xf32> to vector<16x256xf32>
    %137 = arith.subf %129, %136 : vector<16x256xf32>
    %138 = arith.mulf %137, %137 : vector<16x256xf32>
    %cst_46 = arith.constant dense<0.000000e+00> : vector<16xf32>
    %139 = vector.multi_reduction <add>, %138, %cst_46 [1] : vector<16x256xf32> to vector<16xf32>
    %140 = vector.shape_cast %139 : vector<16xf32> to vector<16x1xf32>
    %cst_47 = arith.constant 2.560000e+02 : f32
    %141 = vector.broadcast %cst_47 : f32 to vector<16x1xf32>
    %142 = arith.divf %140, %141 : vector<16x1xf32>
    %143 = vector.broadcast %135 : vector<16x1xf32> to vector<16x256xf32>
    %144 = arith.subf %129, %143 : vector<16x256xf32>
    %cst_48 = arith.constant 9.99999996E-13 : f32
    %145 = vector.broadcast %cst_48 : f32 to vector<16x1xf32>
    %146 = arith.addf %142, %145 : vector<16x1xf32>
    %147 = math.rsqrt %146 : vector<16x1xf32>
    %148 = vector.broadcast %147 : vector<16x1xf32> to vector<16x256xf32>
    %149 = arith.mulf %144, %148 : vector<16x256xf32>
    %150 = vector.broadcast %130 : vector<1x256xf32> to vector<16x256xf32>
    %151 = arith.mulf %149, %150 : vector<16x256xf32>
    %152 = vector.broadcast %131 : vector<1x256xf32> to vector<16x256xf32>
    %153 = arith.addf %151, %152 : vector<16x256xf32>
    %c1 = arith.constant 1 : index
    %c0_49 = arith.constant 0 : index
    %c0_50 = arith.constant 0 : index
    %154 = vector.load %arg7[%c1, %c0_49, %c0_50] : memref<2x8x768xf32, #tpu.memory_space<vmem>>, vector<1x8x768xf32>
    %155 = vector.shape_cast %154 : vector<1x8x768xf32> to vector<8x768xf32>
    %156 = vector.extract_strided_slice %155 {offsets = [0, 0], sizes = [1, 768], strides = [1, 1]} : vector<8x768xf32> to vector<1x768xf32>
    %157 = vector.extract_strided_slice %155 {offsets = [1, 0], sizes = [1, 512], strides = [1, 1]} : vector<8x768xf32> to vector<1x512xf32>
    %158 = vector.extract_strided_slice %155 {offsets = [2, 0], sizes = [1, 256], strides = [1, 1]} : vector<8x768xf32> to vector<1x256xf32>
    %159 = vector.extract_strided_slice %155 {offsets = [3, 0], sizes = [1, 256], strides = [1, 1]} : vector<8x768xf32> to vector<1x256xf32>
    %160 = arith.truncf %153 : vector<16x256xf32> to vector<16x256xbf16>
    %c1_51 = arith.constant 1 : index
    %c0_52 = arith.constant 0 : index
    %c0_53 = arith.constant 0 : index
    %161 = vector.load %arg3[%c1_51, %c0_52, %c0_53] : memref<2x256x768xbf16, #tpu.memory_space<vmem>>, vector<1x256x768xbf16>
    %162 = vector.shape_cast %161 : vector<1x256x768xbf16> to vector<256x768xbf16>
    %cst_54 = arith.constant dense<0.000000e+00> : vector<16x768xf32>
    %163 = tpu.matmul %160, %162, %cst_54 {dimension_numbers = #tpu.dot_dimension_numbers<[1], [0], [0], [1], [0, 0, 1, 1], [], []>} : vector<16x256xbf16>, vector<256x768xbf16>, vector<16x768xf32> -> vector<16x768xf32>
    %164 = vector.broadcast %156 : vector<1x768xf32> to vector<16x768xf32>
    %165 = arith.addf %163, %164 : vector<16x768xf32>
    %166 = vector.extract_strided_slice %165 {offsets = [0, 0], sizes = [16, 128], strides = [1, 1]} : vector<16x768xf32> to vector<16x128xf32>
    %167 = vector.shape_cast %166 : vector<16x128xf32> to vector<2x8x128xf32>
    %168 = vector.extract_strided_slice %165 {offsets = [0, 256], sizes = [16, 128], strides = [1, 1]} : vector<16x768xf32> to vector<16x128xf32>
    %169 = vector.shape_cast %168 : vector<16x128xf32> to vector<2x8x128xf32>
    %170 = vector.extract_strided_slice %165 {offsets = [0, 512], sizes = [16, 128], strides = [1, 1]} : vector<16x768xf32> to vector<16x128xf32>
    %171 = vector.shape_cast %170 : vector<16x128xf32> to vector<2x8x128xf32>
    %172 = arith.truncf %167 : vector<2x8x128xf32> to vector<2x8x128xbf16>
    %173 = arith.truncf %169 : vector<2x8x128xf32> to vector<2x8x128xbf16>
    "tpu.trace_start"() <{level = 10 : i32, message = "bqd,bkd->bqk"}> : () -> ()
    %cst_55 = arith.constant dense<0.000000e+00> : vector<2x8x8xf32>
    %174 = tpu.matmul %172, %173, %cst_55 {dimension_numbers = #tpu.dot_dimension_numbers<[2], [2], [1], [1], [0, 0, 0, 1, 1, 1], [0], [0]>} : vector<2x8x128xbf16>, vector<2x8x128xbf16>, vector<2x8x8xf32> -> vector<2x8x8xf32>
    "tpu.trace_stop"() : () -> ()
    %175 = vector.broadcast %6 : vector<2x1x8xf32> to vector<2x8x8xf32>
    %176 = arith.addf %174, %175 : vector<2x8x8xf32>
    %cst_56 = arith.constant dense<0xFF800000> : vector<2x8xf32>
    %177 = vector.multi_reduction <maximumf>, %176, %cst_56 [2] : vector<2x8x8xf32> to vector<2x8xf32>
    %178 = vector.shape_cast %177 : vector<2x8xf32> to vector<2x8x1xf32>
    %179 = vector.broadcast %178 : vector<2x8x1xf32> to vector<2x8x8xf32>
    %180 = arith.subf %176, %179 : vector<2x8x8xf32>
    %181 = math.exp %180 : vector<2x8x8xf32>
    %cst_57 = arith.constant dense<0.000000e+00> : vector<2x8xf32>
    %182 = vector.multi_reduction <add>, %181, %cst_57 [2] : vector<2x8x8xf32> to vector<2x8xf32>
    %183 = vector.shape_cast %182 : vector<2x8xf32> to vector<2x8x1xf32>
    %184 = arith.truncf %181 : vector<2x8x8xf32> to vector<2x8x8xbf16>
    %185 = arith.truncf %171 : vector<2x8x128xf32> to vector<2x8x128xbf16>
    "tpu.trace_start"() <{level = 10 : i32, message = "bqk,bkd->bqd"}> : () -> ()
    %cst_58 = arith.constant dense<0.000000e+00> : vector<2x8x128xf32>
    %186 = tpu.matmul %184, %185, %cst_58 {dimension_numbers = #tpu.dot_dimension_numbers<[2], [1], [1], [2], [0, 0, 0, 1, 1, 2], [0], [0]>} : vector<2x8x8xbf16>, vector<2x8x128xbf16>, vector<2x8x128xf32> -> vector<2x8x128xf32>
    "tpu.trace_stop"() : () -> ()
    %187 = tpu.reciprocal %183 {approx = true} : vector<2x8x1xf32> -> vector<2x8x1xf32>
    %188 = vector.broadcast %187 : vector<2x8x1xf32> to vector<2x8x128xf32>
    %189 = arith.mulf %186, %188 : vector<2x8x128xf32>
    %190 = vector.shape_cast %189 : vector<2x8x128xf32> to vector<16x128xf32>
    %191 = arith.truncf %190 : vector<16x128xf32> to vector<16x128xbf16>
    %c0_59 = arith.constant 0 : index
    %c0_60 = arith.constant 0 : index
    %192 = vector.load %arg12[%c0_59, %c0_60] : memref<16x256xbf16, #tpu.memory_space<vmem>>, vector<16x128xbf16>
    tpu.vector_store %arg12[%c0_59, %c0_60], %191 {strides = array<i32>} : memref<16x256xbf16, #tpu.memory_space<vmem>>, vector<16x128xbf16>,
    %193 = vector.extract_strided_slice %165 {offsets = [0, 128], sizes = [16, 128], strides = [1, 1]} : vector<16x768xf32> to vector<16x128xf32>
    %194 = vector.shape_cast %193 : vector<16x128xf32> to vector<2x8x128xf32>
    %195 = vector.extract_strided_slice %165 {offsets = [0, 384], sizes = [16, 128], strides = [1, 1]} : vector<16x768xf32> to vector<16x128xf32>
    %196 = vector.shape_cast %195 : vector<16x128xf32> to vector<2x8x128xf32>
    %197 = vector.extract_strided_slice %165 {offsets = [0, 640], sizes = [16, 128], strides = [1, 1]} : vector<16x768xf32> to vector<16x128xf32>
    %198 = vector.shape_cast %197 : vector<16x128xf32> to vector<2x8x128xf32>
    %199 = arith.truncf %194 : vector<2x8x128xf32> to vector<2x8x128xbf16>
    %200 = arith.truncf %196 : vector<2x8x128xf32> to vector<2x8x128xbf16>
    "tpu.trace_start"() <{level = 10 : i32, message = "bqd,bkd->bqk"}> : () -> ()
    %cst_61 = arith.constant dense<0.000000e+00> : vector<2x8x8xf32>
    %201 = tpu.matmul %199, %200, %cst_61 {dimension_numbers = #tpu.dot_dimension_numbers<[2], [2], [1], [1], [0, 0, 0, 1, 1, 1], [0], [0]>} : vector<2x8x128xbf16>, vector<2x8x128xbf16>, vector<2x8x8xf32> -> vector<2x8x8xf32>
    "tpu.trace_stop"() : () -> ()
    %202 = vector.broadcast %6 : vector<2x1x8xf32> to vector<2x8x8xf32>
    %203 = arith.addf %201, %202 : vector<2x8x8xf32>
    %cst_62 = arith.constant dense<0xFF800000> : vector<2x8xf32>
    %204 = vector.multi_reduction <maximumf>, %203, %cst_62 [2] : vector<2x8x8xf32> to vector<2x8xf32>
    %205 = vector.shape_cast %204 : vector<2x8xf32> to vector<2x8x1xf32>
    %206 = vector.broadcast %205 : vector<2x8x1xf32> to vector<2x8x8xf32>
    %207 = arith.subf %203, %206 : vector<2x8x8xf32>
    %208 = math.exp %207 : vector<2x8x8xf32>
    %cst_63 = arith.constant dense<0.000000e+00> : vector<2x8xf32>
    %209 = vector.multi_reduction <add>, %208, %cst_63 [2] : vector<2x8x8xf32> to vector<2x8xf32>
    %210 = vector.shape_cast %209 : vector<2x8xf32> to vector<2x8x1xf32>
    %211 = arith.truncf %208 : vector<2x8x8xf32> to vector<2x8x8xbf16>
    %212 = arith.truncf %198 : vector<2x8x128xf32> to vector<2x8x128xbf16>
    "tpu.trace_start"() <{level = 10 : i32, message = "bqk,bkd->bqd"}> : () -> ()
    %cst_64 = arith.constant dense<0.000000e+00> : vector<2x8x128xf32>
    %213 = tpu.matmul %211, %212, %cst_64 {dimension_numbers = #tpu.dot_dimension_numbers<[2], [1], [1], [2], [0, 0, 0, 1, 1, 2], [0], [0]>} : vector<2x8x8xbf16>, vector<2x8x128xbf16>, vector<2x8x128xf32> -> vector<2x8x128xf32>
    "tpu.trace_stop"() : () -> ()
    %214 = tpu.reciprocal %210 {approx = true} : vector<2x8x1xf32> -> vector<2x8x1xf32>
    %215 = vector.broadcast %214 : vector<2x8x1xf32> to vector<2x8x128xf32>
    %216 = arith.mulf %213, %215 : vector<2x8x128xf32>
    %217 = vector.shape_cast %216 : vector<2x8x128xf32> to vector<16x128xf32>
    %218 = arith.truncf %217 : vector<16x128xf32> to vector<16x128xbf16>
    %c0_65 = arith.constant 0 : index
    %c128_66 = arith.constant 128 : index
    %219 = vector.load %arg12[%c0_65, %c128_66] : memref<16x256xbf16, #tpu.memory_space<vmem>>, vector<16x128xbf16>
    tpu.vector_store %arg12[%c0_65, %c128_66], %218 {strides = array<i32>} : memref<16x256xbf16, #tpu.memory_space<vmem>>, vector<16x128xbf16>,
    %c0_67 = arith.constant 0 : index
    %c0_68 = arith.constant 0 : index
    %220 = vector.load %arg12[%c0_67, %c0_68] : memref<16x256xbf16, #tpu.memory_space<vmem>>, vector<16x256xbf16>
    %c1_69 = arith.constant 1 : index
    %c0_70 = arith.constant 0 : index
    %c0_71 = arith.constant 0 : index
    %221 = vector.load %arg4[%c1_69, %c0_70, %c0_71] : memref<2x256x256xbf16, #tpu.memory_space<vmem>>, vector<1x256x256xbf16>
    %222 = vector.shape_cast %221 : vector<1x256x256xbf16> to vector<256x256xbf16>
    %cst_72 = arith.constant dense<0.000000e+00> : vector<16x256xf32>
    %223 = tpu.matmul %220, %222, %cst_72 {dimension_numbers = #tpu.dot_dimension_numbers<[1], [0], [0], [1], [0, 0, 1, 1], [], []>} : vector<16x256xbf16>, vector<256x256xbf16>, vector<16x256xf32> -> vector<16x256xf32>
    %224 = vector.broadcast %158 : vector<1x256xf32> to vector<16x256xf32>
    %225 = arith.addf %223, %224 : vector<16x256xf32>
    %226 = arith.addf %225, %153 : vector<16x256xf32>
    %227 = vector.extract_strided_slice %155 {offsets = [4, 0], sizes = [1, 256], strides = [1, 1]} : vector<8x768xf32> to vector<1x256xf32>
    %228 = vector.extract_strided_slice %155 {offsets = [5, 0], sizes = [1, 256], strides = [1, 1]} : vector<8x768xf32> to vector<1x256xf32>
    %cst_73 = arith.constant dense<0.000000e+00> : vector<16xf32>
    %229 = vector.multi_reduction <add>, %226, %cst_73 [1] : vector<16x256xf32> to vector<16xf32>
    %230 = vector.shape_cast %229 : vector<16xf32> to vector<16x1xf32>
    %cst_74 = arith.constant 2.560000e+02 : f32
    %231 = vector.broadcast %cst_74 : f32 to vector<16x1xf32>
    %232 = arith.divf %230, %231 : vector<16x1xf32>
    %233 = vector.broadcast %232 : vector<16x1xf32> to vector<16x256xf32>
    %234 = arith.subf %226, %233 : vector<16x256xf32>
    %235 = arith.mulf %234, %234 : vector<16x256xf32>
    %cst_75 = arith.constant dense<0.000000e+00> : vector<16xf32>
    %236 = vector.multi_reduction <add>, %235, %cst_75 [1] : vector<16x256xf32> to vector<16xf32>
    %237 = vector.shape_cast %236 : vector<16xf32> to vector<16x1xf32>
    %cst_76 = arith.constant 2.560000e+02 : f32
    %238 = vector.broadcast %cst_76 : f32 to vector<16x1xf32>
    %239 = arith.divf %237, %238 : vector<16x1xf32>
    %240 = vector.broadcast %232 : vector<16x1xf32> to vector<16x256xf32>
    %241 = arith.subf %226, %240 : vector<16x256xf32>
    %cst_77 = arith.constant 9.99999996E-13 : f32
    %242 = vector.broadcast %cst_77 : f32 to vector<16x1xf32>
    %243 = arith.addf %239, %242 : vector<16x1xf32>
    %244 = math.rsqrt %243 : vector<16x1xf32>
    %245 = vector.broadcast %244 : vector<16x1xf32> to vector<16x256xf32>
    %246 = arith.mulf %241, %245 : vector<16x256xf32>
    %247 = vector.broadcast %227 : vector<1x256xf32> to vector<16x256xf32>
    %248 = arith.mulf %246, %247 : vector<16x256xf32>
    %249 = vector.broadcast %228 : vector<1x256xf32> to vector<16x256xf32>
    %250 = arith.addf %248, %249 : vector<16x256xf32>
    %251 = arith.truncf %250 : vector<16x256xf32> to vector<16x256xbf16>
    %c1_78 = arith.constant 1 : index
    %c0_79 = arith.constant 0 : index
    %c0_80 = arith.constant 0 : index
    %252 = vector.load %arg5[%c1_78, %c0_79, %c0_80] : memref<2x256x512xbf16, #tpu.memory_space<vmem>>, vector<1x256x512xbf16>
    %253 = vector.shape_cast %252 : vector<1x256x512xbf16> to vector<256x512xbf16>
    %cst_81 = arith.constant dense<0.000000e+00> : vector<16x512xf32>
    %254 = tpu.matmul %251, %253, %cst_81 {dimension_numbers = #tpu.dot_dimension_numbers<[1], [0], [0], [1], [0, 0, 1, 1], [], []>} : vector<16x256xbf16>, vector<256x512xbf16>, vector<16x512xf32> -> vector<16x512xf32>
    %255 = vector.broadcast %157 : vector<1x512xf32> to vector<16x512xf32>
    %256 = arith.addf %254, %255 : vector<16x512xf32>
    %257 = arith.mulf %256, %256 : vector<16x512xf32>
    %258 = arith.mulf %256, %257 : vector<16x512xf32>
    %cst_82 = arith.constant 4.471500e-02 : f32
    %259 = vector.broadcast %cst_82 : f32 to vector<16x512xf32>
    %260 = arith.mulf %259, %258 : vector<16x512xf32>
    %261 = arith.addf %256, %260 : vector<16x512xf32>
    %cst_83 = arith.constant 0.797884583 : f32
    %262 = vector.broadcast %cst_83 : f32 to vector<16x512xf32>
    %263 = arith.mulf %262, %261 : vector<16x512xf32>
    %264 = math.tanh %263 : vector<16x512xf32>
    %cst_84 = arith.constant 1.000000e+00 : f32
    %265 = vector.broadcast %cst_84 : f32 to vector<16x512xf32>
    %266 = arith.addf %265, %264 : vector<16x512xf32>
    %cst_85 = arith.constant 5.000000e-01 : f32
    %267 = vector.broadcast %cst_85 : f32 to vector<16x512xf32>
    %268 = arith.mulf %267, %266 : vector<16x512xf32>
    %269 = arith.mulf %256, %268 : vector<16x512xf32>
    %270 = arith.truncf %269 : vector<16x512xf32> to vector<16x512xbf16>
    %c1_86 = arith.constant 1 : index
    %c0_87 = arith.constant 0 : index
    %c0_88 = arith.constant 0 : index
    %271 = vector.load %arg6[%c1_86, %c0_87, %c0_88] : memref<2x512x256xbf16, #tpu.memory_space<vmem>>, vector<1x512x256xbf16>
    %272 = vector.shape_cast %271 : vector<1x512x256xbf16> to vector<512x256xbf16>
    %cst_89 = arith.constant dense<0.000000e+00> : vector<16x256xf32>
    %273 = tpu.matmul %270, %272, %cst_89 {dimension_numbers = #tpu.dot_dimension_numbers<[1], [0], [0], [1], [0, 0, 1, 1], [], []>} : vector<16x512xbf16>, vector<512x256xbf16>, vector<16x256xf32> -> vector<16x256xf32>
    %274 = vector.broadcast %159 : vector<1x256xf32> to vector<16x256xf32>
    %275 = arith.addf %273, %274 : vector<16x256xf32>
    %276 = arith.addf %275, %250 : vector<16x256xf32>
    %277 = vector.extract_strided_slice %155 {offsets = [6, 0], sizes = [1, 256], strides = [1, 1]} : vector<8x768xf32> to vector<1x256xf32>
    %278 = vector.extract_strided_slice %155 {offsets = [7, 0], sizes = [1, 256], strides = [1, 1]} : vector<8x768xf32> to vector<1x256xf32>
    %cst_90 = arith.constant dense<0.000000e+00> : vector<16xf32>
    %279 = vector.multi_reduction <add>, %276, %cst_90 [1] : vector<16x256xf32> to vector<16xf32>
    %280 = vector.shape_cast %279 : vector<16xf32> to vector<16x1xf32>
    %cst_91 = arith.constant 2.560000e+02 : f32
    %281 = vector.broadcast %cst_91 : f32 to vector<16x1xf32>
    %282 = arith.divf %280, %281 : vector<16x1xf32>
    %283 = vector.broadcast %282 : vector<16x1xf32> to vector<16x256xf32>
    %284 = arith.subf %276, %283 : vector<16x256xf32>
    %285 = arith.mulf %284, %284 : vector<16x256xf32>
    %cst_92 = arith.constant dense<0.000000e+00> : vector<16xf32>
    %286 = vector.multi_reduction <add>, %285, %cst_92 [1] : vector<16x256xf32> to vector<16xf32>
    %287 = vector.shape_cast %286 : vector<16xf32> to vector<16x1xf32>
    %cst_93 = arith.constant 2.560000e+02 : f32
    %288 = vector.broadcast %cst_93 : f32 to vector<16x1xf32>
    %289 = arith.divf %287, %288 : vector<16x1xf32>
    %290 = vector.broadcast %282 : vector<16x1xf32> to vector<16x256xf32>
    %291 = arith.subf %276, %290 : vector<16x256xf32>
    %cst_94 = arith.constant 9.99999996E-13 : f32
    %292 = vector.broadcast %cst_94 : f32 to vector<16x1xf32>
    %293 = arith.addf %289, %292 : vector<16x1xf32>
    %294 = math.rsqrt %293 : vector<16x1xf32>
    %295 = vector.broadcast %294 : vector<16x1xf32> to vector<16x256xf32>
    %296 = arith.mulf %291, %295 : vector<16x256xf32>
    %297 = vector.broadcast %277 : vector<1x256xf32> to vector<16x256xf32>
    %298 = arith.mulf %296, %297 : vector<16x256xf32>
    %299 = vector.broadcast %278 : vector<1x256xf32> to vector<16x256xf32>
    %300 = arith.addf %298, %299 : vector<16x256xf32>
    %301 = arith.truncf %300 : vector<16x256xf32> to vector<16x256xbf16>
    %c0_95 = arith.constant 0 : index
    %c0_96 = arith.constant 0 : index
    %302 = vector.load %arg11[%c0_95, %c0_96] : memref<16x256xbf16, #tpu.memory_space<vmem>>, vector<16x256xbf16>
    tpu.vector_store %arg11[%c0_95, %c0_96], %301 {strides = array<i32>} : memref<16x256xbf16, #tpu.memory_space<vmem>>, vector<16x256xbf16>,
    %c0_i32_97 = arith.constant 0 : i32
    %303 = arith.cmpi eq, %arg0, %c0_i32_97 : i32
    %304 = arith.extui %303 : i1 to i32
    %c0_i32_98 = arith.constant 0 : i32
    %305 = arith.cmpi ne, %304, %c0_i32_98 : i32
    scf.if %305 {
      %306 = vector.shape_cast %300 : vector<16x256xf32> to vector<2x8x256xf32>
      %307 = vector.extract_strided_slice %306 {offsets = [0, 0, 0], sizes = [2, 1, 256], strides = [1, 1, 1]} : vector<2x8x256xf32> to vector<2x1x256xf32>
      %308 = vector.shape_cast %307 : vector<2x1x256xf32> to vector<2x256xf32>
      %309 = arith.truncf %308 : vector<2x256xf32> to vector<2x256xbf16>
      %c0_99 = arith.constant 0 : index
      %c0_100 = arith.constant 0 : index
      %310 = vector.load %arg8[%c0_99, %c0_100] : memref<256x256xbf16, #tpu.memory_space<vmem>>, vector<256x256xbf16>
      %cst_101 = arith.constant dense<0.000000e+00> : vector<2x256xf32>
      %311 = tpu.matmul %309, %310, %cst_101 {dimension_numbers = #tpu.dot_dimension_numbers<[1], [0], [0], [1], [0, 0, 1, 1], [], []>} : vector<2x256xbf16>, vector<256x256xbf16>, vector<2x256xf32> -> vector<2x256xf32>
      %c0_102 = arith.constant 0 : index
      %c0_103 = arith.constant 0 : index
      %312 = vector.load %arg9[%c0_102, %c0_103] : memref<1x256xf32, #tpu.memory_space<vmem>>, vector<1x256xf32>
      %313 = vector.broadcast %312 : vector<1x256xf32> to vector<2x256xf32>
      %314 = arith.addf %311, %313 : vector<2x256xf32>
      %315 = math.tanh %314 : vector<2x256xf32>
      %c0_104 = arith.constant 0 : index
      %c0_105 = arith.constant 0 : index
      %316 = vector.load %arg10[%c0_104, %c0_105] : memref<2x256xf32, #tpu.memory_space<vmem>>, vector<2x256xf32>
      tpu.vector_store %arg10[%c0_104, %c0_105], %315 {strides = array<i32>} : memref<2x256xf32, #tpu.memory_space<vmem>>, vector<2x256xf32>,
    } else {
    }
    return
  }
  func.func @transform_1(%arg0: i32) -> (i32, i32) {
    %c0_i32 = arith.constant 0 : i32
    %c0_i32_0 = arith.constant 0 : i32
    %c0_i32_1 = arith.constant 0 : i32
    return %c0_i32, %c0_i32_0 : i32, i32
  }
  func.func @transform_2(%arg0: i32) -> (i32, i32, i32) {
    %c0_i32 = arith.constant 0 : i32
    %c0_i32_0 = arith.constant 0 : i32
    %c0_i32_1 = arith.constant 0 : i32
    return %arg0, %c0_i32, %c0_i32_0 : i32, i32, i32
  }
  func.func @transform_3(%arg0: i32) -> (i32, i32, i32) {
    %c0_i32 = arith.constant 0 : i32
    %c0_i32_0 = arith.constant 0 : i32
    %c0_i32_1 = arith.constant 0 : i32
    return %arg0, %c0_i32, %c0_i32_0 : i32, i32, i32
  }
  func.func @transform_4(%arg0: i32) -> (i32, i32, i32) {
    %c0_i32 = arith.constant 0 : i32
    %c0_i32_0 = arith.constant 0 : i32
    %c0_i32_1 = arith.constant 0 : i32
    return %arg0, %c0_i32, %c0_i32_0 : i32, i32, i32
  }
  func.func @transform_5(%arg0: i32) -> (i32, i32, i32) {
    %c0_i32 = arith.constant 0 : i32
    %c0_i32_0 = arith.constant 0 : i32
    %c0_i32_1 = arith.constant 0 : i32
    return %arg0, %c0_i32, %c0_i32_0 : i32, i32, i32
  }
  func.func @transform_6(%arg0: i32) -> (i32, i32, i32) {
    %c0_i32 = arith.constant 0 : i32
    %c0_i32_0 = arith.constant 0 : i32
    %c0_i32_1 = arith.constant 0 : i32
    return %arg0, %c0_i32, %c0_i32_0 : i32, i32, i32
  }
  func.func @transform_7(%arg0: i32) -> (i32, i32) {
    %c0_i32 = arith.constant 0 : i32
    %c0_i32_0 = arith.constant 0 : i32
    %c0_i32_1 = arith.constant 0 : i32
    return %c0_i32, %c0_i32_0 : i32, i32
  }
  func.func @transform_8(%arg0: i32) -> (i32, i32) {
    %c0_i32 = arith.constant 0 : i32
    %c0_i32_0 = arith.constant 0 : i32
    %c0_i32_1 = arith.constant 0 : i32
    return %c0_i32, %c0_i32_0 : i32, i32
  }
  func.func @transform_9(%arg0: i32) -> (i32, i32) {
    %c0_i32 = arith.constant 0 : i32
    %c0_i32_0 = arith.constant 0 : i32
    %c0_i32_1 = arith.constant 0 : i32
    return %c0_i32, %c0_i32_0 : i32, i32
  }
}

</mosaic_0001>

<bundles_post_ra>
// kernel: similarity_model_forward.1
= control target key start
LH: loop header
LB: loop body
LE: loop exit
PB: predicated region body
PF: predicated region fallthrough
CT: control target
= control target key end

     0   :  { %14 = vsyncpa [#allocation6], 0  ;;  %s9135_s0 = inlined_call_operand.vmem [shape: bf16[16,256], index: 0, kind: input, shape index: {}]   ;;  %s9136_s1 = inlined_call_operand.vmem [shape: f32[2,8], index: 1, kind: input, shape index: {}]   ;;  %s9137_s2 = inlined_call_operand.hbm [shape: bf16[2,256,768], index: 2, kind: input, shape index: {}]   ;;  %s9138_s3 = inlined_call_operand.hbm [shape: bf16[2,256,256], index: 3, kind: input, shape index: {}]   ;;  %s9139_s4 = inlined_call_operand.hbm [shape: bf16[2,256,512], index: 4, kind: input, shape index: {}]   ;;  %s9140_s5 = inlined_call_operand.hbm [shape: bf16[2,512,256], index: 5, kind: input, shape index: {}]   ;;  %s9141_s6 = inlined_call_operand.vmem [shape: f32[2,8,768], index: 6, kind: input, shape index: {}]   ;;  %s9142_s7 = inlined_call_operand.vmem [shape: bf16[256,256], index: 7, kind: input, shape index: {}]   ;;  %s9143_s8 = inlined_call_operand.vmem [shape: f32[1,256], index: 8, kind: input, shape index: {}]   ;;  %s9144_s9 = inlined_call_operand.hbm [shape: f32[2,256], index: 9, kind: output, shape index: {}]  }
   0x1   :  { %15 = vsyncpa [#allocation9], 0 }
   0x2   :  { %16 = vsyncpa [#allocation12], 0  ;;  %s37_s11 = sshll.u32 %s9138_s3, 4  ;;  %s38_s11 = int_to_ptr.hbm [resolvable:$true] %s37_s11 }
   0x3   :  { %17 = vsyncpa [#allocation7], 0  ;;  %s8327_s12 = smov [#allocation8]   ;;  %s24_s16 = sshll.u32 %s9137_s2, 4  ;;  %s25_s16 = int_to_ptr.hbm [resolvable:$true] %s24_s16 }
   0x4   :  { %s39_s13 = sshll.u32 %s8327_s12, 4  ;;  %s8328_s17 = smov 128   ;;  %s40_s13 = int_to_ptr.vmem [resolvable:$true] %s39_s13 }
   0x5   :  { %s8329_s18 = smov 8   ;;  %s8330_s19 = smov [#allocation5]  }
   0x6   :  { %45 = dma.hbm_to_vmem [thread:$0]  %s38_s11, 8192, %s40_s13, [#allocation9], %s8328_s17, %s8328_s17, %s8329_s18  }
   0x7   :  { %s26_s20 = sshll.u32 %s8330_s19, 4  ;;  %s8331_s21 = smov 384   ;;  %s27_s20 = int_to_ptr.vmem [resolvable:$true] %s26_s20 }
   0x8   :  { %s8332_s22 = smov 24   ;;  %s50_s24 = sshll.u32 %s9139_s4, 4  ;;  %s51_s24 = int_to_ptr.hbm [resolvable:$true] %s50_s24 }
   0x9   :  { %32 = dma.hbm_to_vmem [thread:$0]  %s25_s16, 24576, %s27_s20, [#allocation6], %s8331_s21, %s8331_s21, %s8332_s22  }
   0xa   :  { %s8333_s25 = smov [#allocation10]   ;;  %s63_s28 = sshll.u32 %s9140_s5, 4  ;;  %s64_s28 = int_to_ptr.hbm [resolvable:$true] %s63_s28 }
   0xb   :  { %s52_s26 = sshll.u32 %s8333_s25, 4  ;;  %s8334_s29 = smov 256   ;;  %s53_s26 = int_to_ptr.vmem [resolvable:$true] %s52_s26 }
   0xc   :  { %s8335_s30 = smov 16   ;;  %s8336_s10 = smov [#allocation11]  }
   0xd   :  { %58 = dma.hbm_to_vmem [thread:$0]  %s51_s24, 16384, %s53_s26, [#allocation9], %s8334_s29, %s8334_s29, %s8335_s30  }
   0xe   :  { %s65_s11 = sshll.u32 %s8336_s10, 4  ;;  %s66_s11 = int_to_ptr.vmem [resolvable:$true] %s65_s11 }
   0xf   :  { %71 = dma.hbm_to_vmem [thread:$0]  %s64_s28, 16384, %s66_s11, [#allocation12], %s8328_s17, %s8328_s17, %s8329_s18  }
  0x10   :  { %8317 = dma.done.wait [#allocation6], 24576  }
  0x11   :  { %8318 = vsyncadd [#allocation6], 4294942720 }
  0x12   :  { %8319 = dma.done.wait [#allocation9], 24576  }
  0x13   :  { %8320 = vsyncadd [#allocation9], 4294942720 }
  0x14   :  { %8321 = dma.done.wait [#allocation12], 16384  }
  0x15   :  { %8322 = vsyncadd [#allocation12], 4294950912  ;;  %v109_v0 = vld [vmem:[%s9135_s0] sm:$0xff]  ;;  %v111_v1 = vld [vmem:[%s9135_s0 + $0x8] sm:$0xff] }
  0x16   :  { %110 = vst [vmem:[#allocation2] sm:$0xff] %v109_v0 }
  0x17   :  { %112 = vst [vmem:[#allocation2 + $0x8] sm:$0xff] %v111_v1 }
  0x18   :  { %118 = vsyncadd [#allocation4], 256 }
  0x19   :  { %8323 = dma.done.wait [#allocation4], 256 }
  0x1a   :  { %8324 = vsyncadd [#allocation4], 4294967040  ;;  %v5500_v2 = vld [vmem:[#allocation5 + $0x150] sm:$0xf]  ;;  %v7584_v3 = vld [vmem:[#allocation5 + $0x164] sm:$0xf0] }
  0x1b   :  { %v5692_v4 = vld [vmem:[#allocation5 + $0x2d0] sm:$0xf]  ;;  %v5501_v5 = vor.u32 %v7584_v3, %v5500_v2  ;;  %v7632_v6 = vld [vmem:[#allocation5 + $0x2e4] sm:$0xf0]  ;;  %v7581_v7 = vld [vmem:[#allocation5 + $0x154] sm:$0xf] }
  0x1c   :  { %v5502_v8 = vld [vmem:[#allocation5 + $0x168] sm:$0xf0]  ;;  %v5693_v9 = vor.u32 %v7632_v6, %v5692_v4  ;;  %v5476_v11 = vld [vmem:[#allocation5 + $0x120] sm:$0xf]  ;;  %v7578_v12 = vld [vmem:[#allocation5 + $0x134] sm:$0xf0] }
  0x1d   :  { %v5505_v10 = vor.u32 %v7581_v7, %v5502_v8  ;;  %v5668_v13 = vld [vmem:[#allocation5 + $0x2a0] sm:$0xf]  ;;  %730 = vmatpush.bf16.msra.mxu0 %v5501_v5  ;;  %v5477_v14 = vor.u32 %v7578_v12, %v5476_v11  ;;  %v7626_v15 = vld [vmem:[#allocation5 + $0x2b4] sm:$0xf0]  ;;  %v7629_v16 = vld [vmem:[#allocation5 + $0x2d4] sm:$0xf] }
  0x1e   :  { %v5694_v17 = vld [vmem:[#allocation5 + $0x2e8] sm:$0xf0]  ;;  %744 = vmatpush.bf16.msra.mxu1 %v5693_v9  ;;  %v5669_v18 = vor.u32 %v7626_v15, %v5668_v13  ;;  %v7575_v20 = vld [vmem:[#allocation5 + $0x124] sm:$0xf]  ;;  %v5478_v21 = vld [vmem:[#allocation5 + $0x138] sm:$0xf0] }
  0x1f   :  { %758 = vmatpush.bf16.msra.mxu2 %v5505_v10  ;;  %v5697_v19 = vor.u32 %v7629_v16, %v5694_v17  ;;  %v5452_v22 = vld [vmem:[#allocation5 + $0xf0] sm:$0xf]  ;;  %v5481_v23 = vor.u32 %v7575_v20, %v5478_v21  ;;  %v7572_v24 = vld [vmem:[#allocation5 + $0x104] sm:$0xf0]  ;;  %v7623_v27 = vld [vmem:[#allocation5 + $0x2a4] sm:$0xf] }
  0x20   :  { %v5644_v25 = vld [vmem:[#allocation5 + $0x270] sm:$0xf]  ;;  %v7620_v26 = vld [vmem:[#allocation5 + $0x284] sm:$0xf0]  ;;  %v5670_v28 = vld [vmem:[#allocation5 + $0x2b8] sm:$0xf0]  ;;  %v5453_v30 = vor.u32 %v7572_v24, %v5452_v22 }
  0x21   :  { %772 = vmatpush.bf16.msra.mxu3 %v5697_v19  ;;  %v7569_v29 = vld [vmem:[#allocation5 + $0xf4] sm:$0xf]  ;;  %731 = vmatpush.bf16.msra.mxu0 %v5477_v14  ;;  %v5673_v31 = vor.u32 %v7623_v27, %v5670_v28  ;;  %v5454_v32 = vld [vmem:[#allocation5 + $0x108] sm:$0xf0]  ;;  %v5428_v33 = vld [vmem:[#allocation5 + $0xc0] sm:$0xf]  ;;  %v5645_v35 = vor.u32 %v7620_v26, %v5644_v25 }
  0x22   :  { %v7566_v34 = vld [vmem:[#allocation5 + $0xd4] sm:$0xf0]  ;;  %745 = vmatpush.bf16.msra.mxu1 %v5669_v18  ;;  %v5457_v36 = vor.u32 %v7569_v29, %v5454_v32  ;;  %v5620_v37 = vld [vmem:[#allocation5 + $0x240] sm:$0xf]  ;;  %v7617_v39 = vld [vmem:[#allocation5 + $0x274] sm:$0xf] }
  0x23   :  { %759 = vmatpush.bf16.msra.mxu2 %v5481_v23  ;;  %v7614_v38 = vld [vmem:[#allocation5 + $0x254] sm:$0xf0]  ;;  %v5646_v40 = vld [vmem:[#allocation5 + $0x288] sm:$0xf0]  ;;  %v7563_v41 = vld [vmem:[#allocation5 + $0xc4] sm:$0xf]  ;;  %v5429_v44 = vor.u32 %v7566_v34, %v5428_v33 }
  0x24   :  { %v5430_v42 = vld [vmem:[#allocation5 + $0xd8] sm:$0xf0]  ;;  %v5649_v43 = vor.u32 %v7617_v39, %v5646_v40  ;;  %v7611_v45 = vld [vmem:[#allocation5 + $0x244] sm:$0xf]  ;;  %v5621_v47 = vor.u32 %v7614_v38, %v5620_v37  ;;  %v5404_v49 = vld [vmem:[#allocation5 + $0x90] sm:$0xf] }
  0x25   :  { %773 = vmatpush.bf16.msra.mxu3 %v5673_v31  ;;  %732 = vmatpush.bf16.msra.mxu0 %v5453_v30  ;;  %v5622_v46 = vld [vmem:[#allocation5 + $0x258] sm:$0xf0]  ;;  %v5433_v48 = vor.u32 %v7563_v41, %v5430_v42  ;;  %v7560_v50 = vld [vmem:[#allocation5 + $0xa4] sm:$0xf0]  ;;  %v5596_v51 = vld [vmem:[#allocation5 + $0x210] sm:$0xf] }
  0x26   :  { %746 = vmatpush.bf16.msra.mxu1 %v5645_v35  ;;  %v7608_v52 = vld [vmem:[#allocation5 + $0x224] sm:$0xf0]  ;;  %v7557_v53 = vld [vmem:[#allocation5 + $0x94] sm:$0xf]  ;;  %v5406_v54 = vld [vmem:[#allocation5 + $0xa8] sm:$0xf0]  ;;  %v5625_v55 = vor.u32 %v7611_v45, %v5622_v46  ;;  %v5405_v56 = vor.u32 %v7560_v50, %v5404_v49 }
  0x27   :  { %760 = vmatpush.bf16.msra.mxu2 %v5457_v36  ;;  %v7605_v57 = vld [vmem:[#allocation5 + $0x214] sm:$0xf]  ;;  %v5598_v58 = vld [vmem:[#allocation5 + $0x228] sm:$0xf0]  ;;  %v5597_v59 = vor.u32 %v7608_v52, %v5596_v51  ;;  %v5409_v60 = vor.u32 %v7557_v53, %v5406_v54  ;;  %v5380_v61 = vld [vmem:[#allocation5 + $0x60] sm:$0xf] }
  0x28   :  { %v7554_v62 = vld [vmem:[#allocation5 + $0x74] sm:$0xf0]  ;;  %v5572_v63 = vld [vmem:[#allocation5 + $0x1e0] sm:$0xf]  ;;  %v7551_v1 = vld [vmem:[#allocation5 + $0x64] sm:$0xf]  ;;  %v5601_v3 = vor.u32 %v7605_v57, %v5598_v58 }
  0x29   :  { %774 = vmatpush.bf16.msra.mxu3 %v5649_v43  ;;  %733 = vmatpush.bf16.msra.mxu0 %v5429_v44  ;;  %v7602_v0 = vld [vmem:[#allocation5 + $0x1f4] sm:$0xf0]  ;;  %v5382_v2 = vld [vmem:[#allocation5 + $0x78] sm:$0xf0]  ;;  %v5381_v4 = vor.u32 %v7554_v62, %v5380_v61  ;;  %v7599_v5 = vld [vmem:[#allocation5 + $0x1e4] sm:$0xf] }
  0x2a   :  { %747 = vmatpush.bf16.msra.mxu1 %v5621_v47  ;;  %v5574_v6 = vld [vmem:[#allocation5 + $0x1f8] sm:$0xf0]  ;;  %v5573_v7 = vor.u32 %v7602_v0, %v5572_v63  ;;  %v5385_v8 = vor.u32 %v7551_v1, %v5382_v2  ;;  %v5356_v9 = vld [vmem:[#allocation5 + $0x30] sm:$0xf]  ;;  %v7548_v10 = vld [vmem:[#allocation5 + $0x44] sm:$0xf0] }
  0x2b   :  { %761 = vmatpush.bf16.msra.mxu2 %v5433_v48  ;;  %v5548_v11 = vld [vmem:[#allocation5 + $0x1b0] sm:$0xf]  ;;  %v7596_v12 = vld [vmem:[#allocation5 + $0x1c4] sm:$0xf0]  ;;  %v7545_v13 = vld [vmem:[#allocation5 + $0x34] sm:$0xf]  ;;  %v5577_v15 = vor.u32 %v7599_v5, %v5574_v6  ;;  %v5357_v18 = vor.u32 %v7548_v10, %v5356_v9 }
  0x2c   :  { %v5358_v14 = vld [vmem:[#allocation5 + $0x48] sm:$0xf0]  ;;  %v5332_v16 = vld [vmem:[#allocation5] sm:$0xf]  ;;  %v7542_v17 = vld [vmem:[#allocation5 + $0x14] sm:$0xf0]  ;;  %v5549_v23 = vor.u32 %v7596_v12, %v5548_v11 }
  0x2d   :  { %775 = vmatpush.bf16.msra.mxu3 %v5625_v55  ;;  %734 = vmatpush.bf16.msra.mxu0 %v5405_v56  ;;  %v5524_v19 = vld [vmem:[#allocation5 + $0x180] sm:$0xf]  ;;  %v7590_v20 = vld [vmem:[#allocation5 + $0x194] sm:$0xf0]  ;;  %v7593_v21 = vld [vmem:[#allocation5 + $0x1b4] sm:$0xf]  ;;  %v5361_v24 = vor.u32 %v7545_v13, %v5358_v14  ;;  %v5333_v35 = vor.u32 %v7542_v17, %v5332_v16 }
  0x2e   :  { %748 = vmatpush.bf16.msra.mxu1 %v5597_v59  ;;  %v5550_v22 = vld [vmem:[#allocation5 + $0x1c8] sm:$0xf0]  ;;  %v5508_v25 = vld [vmem:[#allocation5 + $0x158] sm:$0xf]  ;;  %v7585_v26 = vld [vmem:[#allocation5 + $0x16c] sm:$0xf0]  ;;  %v5525_v39 = vor.u32 %v7590_v20, %v5524_v19 }
  0x2f   :  { %762 = vmatpush.bf16.msra.mxu2 %v5409_v60  ;;  %v5700_v27 = vld [vmem:[#allocation5 + $0x2d8] sm:$0xf]  ;;  %v7633_v28 = vld [vmem:[#allocation5 + $0x2ec] sm:$0xf0]  ;;  %v7539_v29 = vld [vmem:[#allocation5 + $0x4] sm:$0xf]  ;;  %v5553_v31 = vor.u32 %v7593_v21, %v5550_v22  ;;  %v5509_v40 = vor.u32 %v7585_v26, %v5508_v25 }
  0x30   :  { %v5334_v30 = vld [vmem:[#allocation5 + $0x18] sm:$0xf0]  ;;  %v5510_v33 = vld [vmem:[#allocation5 + $0x170] sm:$0xf0]  ;;  %v7587_v34 = vld [vmem:[#allocation5 + $0x184] sm:$0xf]  ;;  %v5701_v44 = vor.u32 %v7633_v28, %v5700_v27 }
  0x31   :  { %776 = vmatpush.bf16.msra.mxu3 %v5601_v3  ;;  %735 = vmatpush.bf16.msra.mxu0 %v5381_v4  ;;  %v7582_v32 = vld [vmem:[#allocation5 + $0x15c] sm:$0xf]  ;;  %v5484_v37 = vld [vmem:[#allocation5 + $0x128] sm:$0xf]  ;;  %v5702_v41 = vld [vmem:[#allocation5 + $0x2f0] sm:$0xf0]  ;;  %v5337_v45 = vor.u32 %v7539_v29, %v5334_v30 }
  0x32   :  { %749 = vmatpush.bf16.msra.mxu1 %v5573_v7  ;;  %v5526_v36 = vld [vmem:[#allocation5 + $0x198] sm:$0xf0]  ;;  %v5324_v42 = vld [vmem:[#allocation2] sm:$0xf]  ;;  %v7538_v43 = vld [vmem:[#allocation2 + $0x4] sm:$0xf0]  ;;  %v5513_v49 = vor.u32 %v7582_v32, %v5510_v33 }
  0x33   :  { %763 = vmatpush.bf16.msra.mxu2 %v5385_v8  ;;  %v7630_v38 = vld [vmem:[#allocation5 + $0x2dc] sm:$0xf]  ;;  %v7579_v46 = vld [vmem:[#allocation5 + $0x13c] sm:$0xf0]  ;;  %v7537_v47 = vld [vmem:[#allocation2 + $0x4] sm:$0xf]  ;;  %v5529_v50 = vor.u32 %v7587_v34, %v5526_v36  ;;  %v8407_v56 = vor.u32 %v7538_v43, %v5324_v42 }
  0x34   :  { %v5326_v48 = vld [vmem:[#allocation2 + $0x8] sm:$0xf0]  ;;  %v5676_v51 = vld [vmem:[#allocation5 + $0x2a8] sm:$0xf]  ;;  %v7627_v52 = vld [vmem:[#allocation5 + $0x2bc] sm:$0xf0]  ;;  %v5705_v53 = vor.u32 %v7630_v38, %v5702_v41  ;;  %v5485_v57 = vor.u32 %v7579_v46, %v5484_v37 }
  0x35   :  { %777 = vmatpush.bf16.msra.mxu3 %v5577_v15  ;;  %736 = vmatpush.bf16.msra.mxu0 %v5357_v18  ;;  %v7576_v54 = vld [vmem:[#allocation5 + $0x12c] sm:$0xf]  ;;  %v5486_v55 = vld [vmem:[#allocation5 + $0x140] sm:$0xf0]  ;;  %v8409_v60 = vor.u32 %v7537_v47, %v5326_v48  ;;  %v5677_v61 = vor.u32 %v7627_v52, %v5676_v51  ;;  %v5460_v62 = vld [vmem:[#allocation5 + $0xf8] sm:$0xf] }
  0x36   :  { %750 = vmatpush.bf16.msra.mxu1 %v5549_v23  ;;  %v7624_v58 = vld [vmem:[#allocation5 + $0x2ac] sm:$0xf]  ;;  %v5678_v59 = vld [vmem:[#allocation5 + $0x2c0] sm:$0xf0]  ;;  %v7573_v63 = vld [vmem:[#allocation5 + $0x10c] sm:$0xf0]  ;;  %v5489_v0 = vor.u32 %v7576_v54, %v5486_v55 }
  0x37   :  { %764 = vmatpush.bf16.msra.mxu2 %v5361_v24  ;;  %v5652_v1 = vld [vmem:[#allocation5 + $0x278] sm:$0xf]  ;;  %v7621_v2 = vld [vmem:[#allocation5 + $0x28c] sm:$0xf0]  ;;  %v5681_v3 = vor.u32 %v7624_v58, %v5678_v59  ;;  %v7570_v4 = vld [vmem:[#allocation5 + $0xfc] sm:$0xf]  ;;  %v5461_v6 = vor.u32 %v7573_v63, %v5460_v62 }
  0x38   :  { %v5462_v5 = vld [vmem:[#allocation5 + $0x110] sm:$0xf0]  ;;  %v7618_v7 = vld [vmem:[#allocation5 + $0x27c] sm:$0xf]  ;;  %v5653_v9 = vor.u32 %v7621_v2, %v5652_v1  ;;  %v5436_v10 = vld [vmem:[#allocation5 + $0xc8] sm:$0xf] }
  0x39   :  { %778 = vmatpush.bf16.msra.mxu3 %v5553_v31  ;;  %737 = vmatpush.bf16.msra.mxu0 %v5333_v35  ;;  %v5654_v8 = vld [vmem:[#allocation5 + $0x290] sm:$0xf0]  ;;  %v7567_v11 = vld [vmem:[#allocation5 + $0xdc] sm:$0xf0]  ;;  %v5465_v12 = vor.u32 %v7570_v4, %v5462_v5  ;;  %v5628_v13 = vld [vmem:[#allocation5 + $0x248] sm:$0xf] }
  0x3a   :  { %751 = vmatpush.bf16.msra.mxu1 %v5525_v39  ;;  %v7615_v14 = vld [vmem:[#allocation5 + $0x25c] sm:$0xf0]  ;;  %v5657_v15 = vor.u32 %v7618_v7, %v5654_v8  ;;  %v7564_v16 = vld [vmem:[#allocation5 + $0xcc] sm:$0xf]  ;;  %v5438_v17 = vld [vmem:[#allocation5 + $0xe0] sm:$0xf0]  ;;  %v5437_v18 = vor.u32 %v7567_v11, %v5436_v10 }
  0x3b   :  { %765 = vmatpush.bf16.msra.mxu2 %v5337_v45  ;;  %v7612_v19 = vld [vmem:[#allocation5 + $0x24c] sm:$0xf]  ;;  %v5630_v20 = vld [vmem:[#allocation5 + $0x260] sm:$0xf0]  ;;  %v5629_v21 = vor.u32 %v7615_v14, %v5628_v13  ;;  %v5412_v22 = vld [vmem:[#allocation5 + $0x98] sm:$0xf]  ;;  %v5441_v24 = vor.u32 %v7564_v16, %v5438_v17 }
  0x3c   :  { %738 = vmatmul.bf16.vlgmr.msra.gmra.mxu0 %v8407_v56  ;;  %v7561_v23 = vld [vmem:[#allocation5 + $0xac] sm:$0xf0]  ;;  %v5604_v25 = vld [vmem:[#allocation5 + $0x218] sm:$0xf]  ;;  %v5633_v27 = vor.u32 %v7612_v19, %v5630_v20  ;;  %v7558_v28 = vld [vmem:[#allocation5 + $0x9c] sm:$0xf] }
  0x3d   :  { %786 = vmatpush.bf16.msrb.mxu0 %v5509_v40  ;;  %779 = vmatpush.bf16.msra.mxu3 %v5529_v50  ;;  %v7609_v26 = vld [vmem:[#allocation5 + $0x22c] sm:$0xf0]  ;;  %v5414_v29 = vld [vmem:[#allocation5 + $0xb0] sm:$0xf0]  ;;  %v5413_v30 = vor.u32 %v7561_v23, %v5412_v22  ;;  %v7606_v31 = vld [vmem:[#allocation5 + $0x21c] sm:$0xf] }
  0x3e   :  { %800 = vmatpush.bf16.msrb.mxu1 %v5701_v44  ;;  %766 = vmatmul.bf16.vlgmr.msra.gmra.mxu2 %v8407_v56  ;;  %v5606_v32 = vld [vmem:[#allocation5 + $0x230] sm:$0xf0]  ;;  %v5605_v33 = vor.u32 %v7609_v26, %v5604_v25  ;;  %v5388_v34 = vld [vmem:[#allocation5 + $0x68] sm:$0xf]  ;;  %v7555_v35 = vld [vmem:[#allocation5 + $0x7c] sm:$0xf0]  ;;  %v5417_v36 = vor.u32 %v7558_v28, %v5414_v29 }
  0x3f   :  { %814 = vmatpush.bf16.msrb.mxu2 %v5513_v49  ;;  %752 = vmatmul.bf16.vlgmr.msra.gmra.mxu1 %v8409_v60  ;;  %v5580_v37 = vld [vmem:[#allocation5 + $0x1e8] sm:$0xf]  ;;  %v7603_v38 = vld [vmem:[#allocation5 + $0x1fc] sm:$0xf0]  ;;  %v5609_v39 = vor.u32 %v7606_v31, %v5606_v32  ;;  %v7552_v40 = vld [vmem:[#allocation5 + $0x6c] sm:$0xf]  ;;  %v5389_v42 = vor.u32 %v7555_v35, %v5388_v34 }
  0x40   :  { %780 = vmatmul.bf16.vlgmr.msra.gmra.mxu3 %v8409_v60  ;;  %v5390_v41 = vld [vmem:[#allocation5 + $0x80] sm:$0xf0]  ;;  %v7600_v43 = vld [vmem:[#allocation5 + $0x1ec] sm:$0xf]  ;;  %v5581_v45 = vor.u32 %v7603_v38, %v5580_v37  ;;  %v5364_v46 = vld [vmem:[#allocation5 + $0x38] sm:$0xf] }
  0x41   :  { %828 = vmatpush.bf16.msrb.mxu3 %v5705_v53  ;;  %787 = vmatpush.bf16.msrb.mxu0 %v5485_v57  ;;  %v5582_v44 = vld [vmem:[#allocation5 + $0x200] sm:$0xf0]  ;;  %v7549_v47 = vld [vmem:[#allocation5 + $0x4c] sm:$0xf0]  ;;  %v5393_v48 = vor.u32 %v7552_v40, %v5390_v41  ;;  %v5556_v49 = vld [vmem:[#allocation5 + $0x1b8] sm:$0xf] }
  0x42   :  { %801 = vmatpush.bf16.msrb.mxu1 %v5677_v61  ;;  %v7597_v50 = vld [vmem:[#allocation5 + $0x1cc] sm:$0xf0]  ;;  %v5585_v51 = vor.u32 %v7600_v43, %v5582_v44  ;;  %v7546_v52 = vld [vmem:[#allocation5 + $0x3c] sm:$0xf]  ;;  %v5366_v53 = vld [vmem:[#allocation5 + $0x50] sm:$0xf0]  ;;  %v5365_v54 = vor.u32 %v7549_v47, %v5364_v46 }
  0x43   :  { %815 = vmatpush.bf16.msrb.mxu2 %v5489_v0  ;;  %v5340_v55 = vld [vmem:[#allocation5 + $0x8] sm:$0xf]  ;;  %v7594_v57 = vld [vmem:[#allocation5 + $0x1bc] sm:$0xf]  ;;  %v5558_v58 = vld [vmem:[#allocation5 + $0x1d0] sm:$0xf0]  ;;  %v5557_v59 = vor.u32 %v7597_v50, %v5556_v49  ;;  %v5369_v0 = vor.u32 %v7546_v52, %v5366_v53 }
  0x44   :  { %v7543_v61 = vld [vmem:[#allocation5 + $0x1c] sm:$0xf0]  ;;  %v5532_v62 = vld [vmem:[#allocation5 + $0x188] sm:$0xf]  ;;  %v7540_v1 = vld [vmem:[#allocation5 + $0xc] sm:$0xf]  ;;  %v5561_v4 = vor.u32 %v7594_v57, %v5558_v58 }
  0x45   :  { %829 = vmatpush.bf16.msrb.mxu3 %v5681_v3  ;;  %788 = vmatpush.bf16.msrb.mxu0 %v5461_v6  ;;  %v7591_v63 = vld [vmem:[#allocation5 + $0x19c] sm:$0xf0]  ;;  %v7586_v3 = vld [vmem:[#allocation5 + $0x174] sm:$0xf0]  ;;  %v5342_v5 = vld [vmem:[#allocation5 + $0x20] sm:$0xf0]  ;;  %v5341_v8 = vor.u32 %v7543_v61, %v5340_v55 }
  0x46   :  { %802 = vmatpush.bf16.msrb.mxu1 %v5653_v9  ;;  %v5516_v2 = vld [vmem:[#allocation5 + $0x160] sm:$0xf]  ;;  %v7634_v7 = vld [vmem:[#allocation5 + $0x2f4] sm:$0xf0]  ;;  %v7588_v9 = vld [vmem:[#allocation5 + $0x18c] sm:$0xf]  ;;  %v5533_v11 = vor.u32 %v7591_v63, %v5532_v62  ;;  %v5345_v13 = vor.u32 %v7540_v1, %v5342_v5 }
  0x47   :  { %816 = vmatpush.bf16.msrb.mxu2 %v5465_v12  ;;  %v5708_v6 = vld [vmem:[#allocation5 + $0x2e0] sm:$0xf]  ;;  %v5534_v10 = vld [vmem:[#allocation5 + $0x1a0] sm:$0xf0]  ;;  %v5517_v12 = vor.u32 %v7586_v3, %v5516_v2  ;;  %v7580_v16 = vld [vmem:[#allocation5 + $0x144] sm:$0xf0] }
  0x48   :  { %v5709_v14 = vor.u32 %v7634_v7, %v5708_v6  ;;  %v5537_v17 = vor.u32 %v7588_v9, %v5534_v10  ;;  %v7628_v19 = vld [vmem:[#allocation5 + $0x2c4] sm:$0xf0]  ;;  %v5468_v22 = vld [vmem:[#allocation5 + $0x100] sm:$0xf]  ;;  %v7574_v23 = vld [vmem:[#allocation5 + $0x114] sm:$0xf0] }
  0x49   :  { %830 = vmatpush.bf16.msrb.mxu3 %v5657_v15  ;;  %789 = vmatpush.bf16.msrb.mxu0 %v5437_v18  ;;  %v5492_v15 = vld [vmem:[#allocation5 + $0x130] sm:$0xf]  ;;  %v7622_v25 = vld [vmem:[#allocation5 + $0x294] sm:$0xf0]  ;;  %v5469_v26 = vor.u32 %v7574_v23, %v5468_v22  ;;  %v7568_v29 = vld [vmem:[#allocation5 + $0xe4] sm:$0xf0] }
  0x4a   :  { %803 = vmatpush.bf16.msrb.mxu1 %v5629_v21  ;;  %v5684_v18 = vld [vmem:[#allocation5 + $0x2b0] sm:$0xf]  ;;  %v5493_v20 = vor.u32 %v7580_v16, %v5492_v15  ;;  %v7616_v31 = vld [vmem:[#allocation5 + $0x264] sm:$0xf0]  ;;  %v5420_v34 = vld [vmem:[#allocation5 + $0xa0] sm:$0xf] }
  0x4b   :  { %817 = vmatpush.bf16.msrb.mxu2 %v5441_v24  ;;  %v5685_v21 = vor.u32 %v7628_v19, %v5684_v18  ;;  %v5660_v24 = vld [vmem:[#allocation5 + $0x280] sm:$0xf]  ;;  %v5444_v28 = vld [vmem:[#allocation5 + $0xd0] sm:$0xf]  ;;  %v7562_v35 = vld [vmem:[#allocation5 + $0xb4] sm:$0xf0] }
  0x4c   :  { %v5445_v32 = vor.u32 %v7568_v29, %v5444_v28  ;;  %v5612_v37 = vld [vmem:[#allocation5 + $0x220] sm:$0xf]  ;;  %v7610_v38 = vld [vmem:[#allocation5 + $0x234] sm:$0xf0]  ;;  %v5396_v40 = vld [vmem:[#allocation5 + $0x70] sm:$0xf] }
  0x4d   :  { %831 = vmatpush.bf16.msrb.mxu3 %v5633_v27  ;;  %790 = vmatpush.bf16.msrb.mxu0 %v5413_v30  ;;  %v5661_v27 = vor.u32 %v7622_v25, %v5660_v24  ;;  %v5636_v30 = vld [vmem:[#allocation5 + $0x250] sm:$0xf]  ;;  %v7556_v41 = vld [vmem:[#allocation5 + $0x84] sm:$0xf0]  ;;  %v7550_v46 = vld [vmem:[#allocation5 + $0x54] sm:$0xf0] }
  0x4e   :  { %804 = vmatpush.bf16.msrb.mxu1 %v5605_v33  ;;  %v5637_v33 = vor.u32 %v7616_v31, %v5636_v30  ;;  %v5397_v43 = vor.u32 %v7556_v41, %v5396_v40  ;;  %v7604_v44 = vld [vmem:[#allocation5 + $0x204] sm:$0xf0]  ;;  %v5564_v49 = vld [vmem:[#allocation5 + $0x1c0] sm:$0xf]  ;;  %v7598_v50 = vld [vmem:[#allocation5 + $0x1d4] sm:$0xf0] }
  0x4f   :  { %818 = vmatpush.bf16.msrb.mxu2 %v5417_v36  ;;  %v5421_v36 = vor.u32 %v7562_v35, %v5420_v34  ;;  %v5348_v52 = vld [vmem:[#allocation5 + $0x10] sm:$0xf]  ;;  %v7544_v53 = vld [vmem:[#allocation5 + $0x24] sm:$0xf0]  ;;  %v8431_v3 = vld [vmem:[%s9141_s6] sm:$0xff]  ;;  %vm958_vm0 = vcmask 1043456  }
  0x50   :  { %v5349_v55 = vor.u32 %v7544_v53, %v5348_v52  ;;  %v7592_v57 = vld [vmem:[#allocation5 + $0x1a4] sm:$0xf0]  ;;  %v134_v2 = vld [vmem:[%s9141_s6 + $0x10] sm:$0xff]  ;;  %v234_v7 = vperm.slane %v8431_v3, 0  ;;  %v7583_v16 = vld [vmem:[#allocation5 + $0x164] sm:$0xf] }
  0x51   :  { %832 = vmatpush.bf16.msrb.mxu3 %v5609_v39  ;;  %791 = vmatpush.bf16.msrb.mxu0 %v5389_v42  ;;  %v5613_v39 = vor.u32 %v7610_v38, %v5612_v37  ;;  %v5588_v42 = vld [vmem:[#allocation5 + $0x1f0] sm:$0xf]  ;;  %v7631_v18 = vld [vmem:[#allocation5 + $0x2e4] sm:$0xf]  ;;  %v5494_v22 = vld [vmem:[#allocation5 + $0x148] sm:$0xf0] }
  0x52   :  { %805 = vmatpush.bf16.msrb.mxu1 %v5581_v45  ;;  %v5372_v45 = vld [vmem:[#allocation5 + $0x40] sm:$0xf]  ;;  %v5589_v47 = vor.u32 %v7604_v44, %v5588_v42  ;;  %v5686_v28 = vld [vmem:[#allocation5 + $0x2c8] sm:$0xf0]  ;;  %v7571_v35 = vld [vmem:[#allocation5 + $0x104] sm:$0xf] }
  0x53   :  { %819 = vmatpush.bf16.msrb.mxu2 %v5393_v48  ;;  %v5373_v48 = vor.u32 %v7550_v46, %v5372_v45  ;;  %v5662_v40 = vld [vmem:[#allocation5 + $0x298] sm:$0xf0]  ;;  %vm932_vm1 = vcmask 64512   ;;  %s8338_s27 = smov [#allocation13]   ;;  %s5300_s29 = sshll.u32 %s9144_s9, 4  ;;  %s5301_s29 = int_to_ptr.hbm [resolvable:$true] %s5300_s29 }
  0x54   :  { %s5298_s2 = sshll.u32 %s8338_s27, 4  ;;  %s5299_s2 = int_to_ptr.vmem [resolvable:$true] %s5298_s2 }
  0x55   :  { %833 = vmatpush.bf16.msrb.mxu3 %v5585_v51  ;;  %792 = vmatpush.bf16.msrb.mxu0 %v5365_v54  ;;  %v5565_v51 = vor.u32 %v7598_v50, %v5564_v49  ;;  %v5540_v54 = vld [vmem:[#allocation5 + $0x190] sm:$0xf]  ;;  %v5446_v49 = vld [vmem:[#allocation5 + $0xe8] sm:$0xf0]  ;;  %v7613_v50 = vld [vmem:[#allocation5 + $0x254] sm:$0xf] }
  0x56   :  { %806 = vmatpush.bf16.msrb.mxu1 %v5557_v59  ;;  %v5541_v58 = vor.u32 %v7592_v57, %v5540_v54 }
  0x57   :  { %820 = vmatpush.bf16.msrb.mxu2 %v5369_v0 }
  0x59   :  { %834 = vmatpush.bf16.msrb.mxu3 %v5561_v4  ;;  %793 = vmatpush.bf16.msrb.mxu0 %v5341_v8  ;;  %v236_v4 = vperm.slane %v134_v2, 0 }
  0x5a   :  { %807 = vmatpush.bf16.msrb.mxu1 %v5533_v11  ;;  %v135_v11 = vld [vmem:[%s9141_s6 + $0x18] sm:$0xff] }
  0x5b   :  { %821 = vmatpush.bf16.msrb.mxu2 %v5345_v13  ;;  %v237_v15 = vperm.slane %v135_v11, 0  ;;  %v7559_v11 = vld [vmem:[#allocation5 + $0xa4] sm:$0xf] }
  0x5c   :  { %794 = vmatmul.bf16.vlgmr.msrb.gmra.mxu0 %v8407_v56 }
  0x5d   :  { %842 = vmatpush.bf16.msra.mxu0 %v5517_v12  ;;  %835 = vmatpush.bf16.msrb.mxu3 %v5537_v17  ;;  %v5518_v17 = vld [vmem:[#allocation5 + $0x178] sm:$0xf0] }
  0x5e   :  { %856 = vmatpush.bf16.msra.mxu1 %v5709_v14  ;;  %822 = vmatmul.bf16.vlgmr.msrb.gmra.mxu2 %v8407_v56  ;;  %v5521_v19 = vor.u32 %v7583_v16, %v5518_v17  ;;  %v5398_v16 = vld [vmem:[#allocation5 + $0x88] sm:$0xf0] }
  0x5f   :  { %808 = vmatmul.bf16.vlgmr.msrb.gmra.mxu1 %v8409_v60 }
  0x60   :  { %836 = vmatmul.bf16.vlgmr.msrb.gmra.mxu3 %v8409_v60  ;;  %870 = vmatpush.bf16.msra.mxu2 %v5521_v19  ;;  %v5590_v19 = vld [vmem:[#allocation5 + $0x208] sm:$0xf0] }
  0x61   :  { %843 = vmatpush.bf16.msra.mxu0 %v5493_v20  ;;  %v5710_v20 = vld [vmem:[#allocation5 + $0x2f8] sm:$0xf0] }
  0x62   :  { %857 = vmatpush.bf16.msra.mxu1 %v5685_v21  ;;  %v7577_v21 = vld [vmem:[#allocation5 + $0x134] sm:$0xf] }
  0x65   :  { %844 = vmatpush.bf16.msra.mxu0 %v5469_v26  ;;  %v5713_v26 = vor.u32 %v7631_v18, %v5710_v20  ;;  %v7601_v18 = vld [vmem:[#allocation5 + $0x1f4] sm:$0xf] }
  0x66   :  { %858 = vmatpush.bf16.msra.mxu1 %v5661_v27  ;;  %v7625_v27 = vld [vmem:[#allocation5 + $0x2b4] sm:$0xf]  ;;  %v5593_v20 = vor.u32 %v7601_v18, %v5590_v19 }
  0x67   :  { %884 = vmatpush.bf16.msra.mxu3 %v5713_v26  ;;  %v5689_v34 = vor.u32 %v7625_v27, %v5686_v28  ;;  %v5350_v26 = vld [vmem:[#allocation5 + $0x28] sm:$0xf0]  ;;  %v7589_v27 = vld [vmem:[#allocation5 + $0x194] sm:$0xf] }
  0x68   :  { %v5542_v28 = vld [vmem:[#allocation5 + $0x1a8] sm:$0xf0] }
  0x69   :  { %845 = vmatpush.bf16.msra.mxu0 %v5445_v32  ;;  %v5497_v32 = vor.u32 %v7577_v21, %v5494_v22  ;;  %v5374_v21 = vld [vmem:[#allocation5 + $0x58] sm:$0xf0]  ;;  %v7595_v22 = vld [vmem:[#allocation5 + $0x1c4] sm:$0xf] }
  0x6a   :  { %859 = vmatpush.bf16.msra.mxu1 %v5637_v33 }
  0x6b   :  { %871 = vmatpush.bf16.msra.mxu2 %v5497_v32  ;;  %885 = vmatpush.bf16.msra.mxu3 %v5689_v34 }
  0x6d   :  { %846 = vmatpush.bf16.msra.mxu0 %v5421_v36  ;;  %v5470_v36 = vld [vmem:[#allocation5 + $0x118] sm:$0xf0] }
  0x6e   :  { %860 = vmatpush.bf16.msra.mxu1 %v5613_v39  ;;  %v7619_v39 = vld [vmem:[#allocation5 + $0x284] sm:$0xf]  ;;  %v5473_v46 = vor.u32 %v7571_v35, %v5470_v36 }
  0x70   :  { %872 = vmatpush.bf16.msra.mxu2 %v5473_v46 }
  0x71   :  { %847 = vmatpush.bf16.msra.mxu0 %v5397_v43  ;;  %v8444_v43 = vld [vmem:[%s9141_s6 + $0x8] sm:$0xff] }
  0x72   :  { %861 = vmatpush.bf16.msra.mxu1 %v5589_v47  ;;  %v5665_v47 = vor.u32 %v7619_v39, %v5662_v40  ;;  %v235_v53 = vperm.slane %v8444_v43, 0 }
  0x74   :  { %886 = vmatpush.bf16.msra.mxu3 %v5665_v47 }
  0x75   :  { %848 = vmatpush.bf16.msra.mxu0 %v5373_v48  ;;  %v7565_v48 = vld [vmem:[#allocation5 + $0xd4] sm:$0xf] }
  0x76   :  { %862 = vmatpush.bf16.msra.mxu1 %v5565_v51  ;;  %v5638_v51 = vld [vmem:[#allocation5 + $0x268] sm:$0xf0] }
  0x79   :  { %849 = vmatpush.bf16.msra.mxu0 %v5349_v55 }
  0x7a   :  { %863 = vmatpush.bf16.msra.mxu1 %v5541_v58  ;;  %v5449_v58 = vor.u32 %v7565_v48, %v5446_v49 }
  0x7c   :  { %850 = vmatmul.bf16.vlgmr.msra.gmra.mxu0 %v8407_v56  ;;  %873 = vmatpush.bf16.msra.mxu2 %v5449_v58 }
  0x7d   :  { %864 = vmatmul.bf16.vlgmr.msra.gmra.mxu1 %v8409_v60 }
  0xb9   :  { %v739_v59 = vpop.f32.mrf.mxu0 }
  0xba   :  { %v740_v13 = vadd.f32 %v739_v59, %v234_v7  ;;  %v5641_v59 = vor.u32 %v7613_v50, %v5638_v51 }
  0xbc   :  { %v753_v61 = vpop.f32.mrf.mxu1  ;;  %887 = vmatpush.bf16.msra.mxu3 %v5641_v59 }
  0xbd   :  { %v754_v23 = vadd.f32 %v753_v61, %v740_v13  ;;  %v7607_v13 = vld [vmem:[#allocation5 + $0x224] sm:$0xf] }
  0xbf   :  { %v898_v41 = vpack.c.bf16 %v754_v23, %v754_v23  ;;  %v5566_v23 = vld [vmem:[#allocation5 + $0x1d8] sm:$0xf0] }
  0xc1   :  { %v8421_v62 = vpop.f32.mrf.mxu2  ;;  %v741_v0 = vpop.f32.mrf.mxu0 }
  0xc2   :  { %v742_v42 = vadd.f32 %v741_v0, %v234_v7  ;;  %v768_v2 = vadd.f32 %v8421_v62, %v235_v53  ;;  %v5614_v62 = vld [vmem:[#allocation5 + $0x238] sm:$0xf0] }
  0xc3   :  { %v8423_v63 = vpop.f32.mrf.mxu3  ;;  %v5617_v17 = vor.u32 %v7607_v13, %v5614_v62 }
  0xc4   :  { %v755_v1 = vpop.f32.mrf.mxu1 }
  0xc5   :  { %v756_v52 = vadd.f32 %v755_v1, %v742_v42  ;;  %v782_v1 = vadd.f32 %v8423_v63, %v768_v2  ;;  %888 = vmatpush.bf16.msra.mxu3 %v5617_v17 }
  0xc7   :  { %v899_v0 = vpack.c.bf16 %v756_v52, %v756_v52  ;;  %v1002_v7 = vpack.c.bf16 %v782_v1, %v782_v1 }
  0xc9   :  { %v8433_v5 = vpop.f32.mrf.mxu2  ;;  %889 = vmatpush.bf16.msra.mxu3 %v5593_v20 }
  0xcb   :  { %v8435_v6 = vpop.f32.mrf.mxu3 }
  0xd9   :  { %v795_v8 = vpop.f32.mrf.mxu0 }
  0xda   :  { %v796_v9 = vadd.f32 %v795_v8, %v236_v4  ;;  %v770_v8 = vadd.f32 %v8433_v5, %v235_v53  ;;  %v7547_v5 = vld [vmem:[#allocation5 + $0x44] sm:$0xf] }
  0xdc   :  { %v809_v10 = vpop.f32.mrf.mxu1 }
  0xdd   :  { %v810_v12 = vadd.f32 %v809_v10, %v796_v9  ;;  %v784_v9 = vadd.f32 %v8435_v6, %v770_v8  ;;  %v5377_v6 = vor.u32 %v7547_v5, %v5374_v21 }
  0xdf   :  { %v900_v14 = vpack.c.bf16 %v810_v12, %v810_v12  ;;  %v1003_v10 = vpack.c.bf16 %v784_v9, %v784_v9  ;;  %v5422_v12 = vld [vmem:[#allocation5 + $0xb8] sm:$0xf0] }
  0xe1   :  { %913 = vmatpush.bf16.xpose.msrb.mxu0 %v900_v14  ;;  %v797_v24 = vpop.f32.mrf.mxu0  ;;  %v823_v25 = vpop.f32.mrf.mxu2  ;;  %v5425_v14 = vor.u32 %v7559_v11, %v5422_v12 }
  0xe2   :  { %v798_v29 = vadd.f32 %v797_v24, %v236_v4  ;;  %v824_v30 = vadd.f32 %v823_v25, %v237_v15  ;;  %v5569_v24 = vor.u32 %v7595_v22, %v5566_v23  ;;  %v7541_v25 = vld [vmem:[#allocation5 + $0x14] sm:$0xf] }
  0xe3   :  { %v837_v31 = vpop.f32.mrf.mxu3  ;;  %874 = vmatpush.bf16.msra.mxu2 %v5425_v14 }
  0xe4   :  { %v811_v33 = vpop.f32.mrf.mxu1  ;;  %v838_v38 = vadd.f32 %v837_v31, %v824_v30  ;;  %890 = vmatpush.bf16.msra.mxu3 %v5569_v24  ;;  %v5545_v30 = vor.u32 %v7589_v27, %v5542_v28  ;;  %v136_v31 = vld [vmem:[%s9141_s6 + $0x20] sm:$0xff] }
  0xe5   :  { %v812_v37 = vadd.f32 %v811_v33, %v798_v29  ;;  %v5353_v29 = vor.u32 %v7541_v25, %v5350_v26  ;;  %v238_v32 = vperm.slane %v136_v31, 0 }
  0xe6   :  { %v1004_v45 = vpack.c.bf16 %v838_v38, %v838_v38 }
  0xe7   :  { %v901_v44 = vpack.c.bf16 %v812_v37, %v812_v37 }
  0xe8   :  { %914 = vmatmul.bf16.vlgmr.msrb.gmra.mxu0 %v898_v41  ;;  %891 = vmatpush.bf16.msra.mxu3 %v5545_v30 }
  0xe9   :  { %926 = vmatpush.bf16.xpose.msrb.mxu1 %v901_v44  ;;  %1013 = vmatpush.bf16.xpose.msra.mxu0 %v1004_v45  ;;  %v825_v54 = vpop.f32.mrf.mxu2 }
  0xea   :  { %v826_v55 = vadd.f32 %v825_v54, %v237_v15  ;;  %v7553_v15 = vld [vmem:[#allocation5 + $0x74] sm:$0xf] }
  0xeb   :  { %v839_v57 = vpop.f32.mrf.mxu3  ;;  %v5401_v63 = vor.u32 %v7553_v15, %v5398_v16  ;;  %892 = vmatmul.bf16.vlgmr.msra.gmra.mxu3 %v8409_v60  ;;  %v129_v60 = vld [vmem:[%s9136_s1] sm:$0x3] }
  0xec   :  { %v840_v61 = vadd.f32 %v839_v57, %v826_v55  ;;  %v8461_v45 = vperm.slane %v129_v60, 0  ;;  %v131_v48 = vrot.slane %v129_v60, 1  ;;  %v5786_v60 = vld [vmem:[#allocation8 + $0x78] sm:$0xf0] }
  0xed   :  { %875 = vmatpush.bf16.msra.mxu2 %v5401_v63 }
  0xee   :  { %v1005_v4 = vpack.c.bf16 %v840_v61, %v840_v61  ;;  %v8465_v50 = vperm.slane %v131_v48, 0  ;;  %v7650_v48 = vld [vmem:[#allocation8 + $0x64] sm:$0xf0] }
  0xf0   :  { %927 = vmatmul.bf16.vlgmr.msrb.gmra.mxu1 %v899_v0 }
  0xf1   :  { %1026 = vmatpush.bf16.xpose.msra.mxu1 %v1005_v4  ;;  %876 = vmatpush.bf16.msra.mxu2 %v5377_v6 }
  0xf5   :  { %877 = vmatpush.bf16.msra.mxu2 %v5353_v29 }
  0xf8   :  { %1014 = vmatmul.bf16.vlgmr.msra.gmra.mxu0 %v1002_v7  ;;  %878 = vmatmul.bf16.vlgmr.msra.gmra.mxu2 %v8407_v56  ;;  %v137_v7 = vld [vmem:[%s9141_s6 + $0x28] sm:$0xff] }
  0xf9   :  { %v851_v33 = vpop.f32.mrf.mxu0  ;;  %v239_v9 = vperm.slane %v137_v7, 0  ;;  %v5762_v7 = vld [vmem:[#allocation8 + $0x48] sm:$0xf0] }
  0xfa   :  { %v852_v34 = vadd.f32 %v851_v33, %v238_v32  ;;  %v865_v35 = vpop.f32.mrf.mxu1 }
  0xfc   :  { %v866_v36 = vadd.f32 %v865_v35, %v852_v34 }
  0xfe   :  { %v953_v37 = vpack.c.bf16 %v866_v36, %v866_v36 }
 0x100   :  { %1027 = vmatmul.bf16.vlgmr.msra.gmra.mxu1 %v1003_v10  ;;  %v960_v38 = vsel %vm958_vm0, %v953_v37, 0 }
 0x101   :  { %v853_v39 = vpop.f32.mrf.mxu0  ;;  %969 = vmatpush.bf16.msrb.mxu2 %v960_v38 }
 0x102   :  { %v854_v40 = vadd.f32 %v853_v39, %v238_v32  ;;  %v867_v41 = vpop.f32.mrf.mxu1 }
 0x104   :  { %v868_v56 = vadd.f32 %v867_v41, %v854_v40  ;;  %v5784_v41 = vld [vmem:[#allocation8 + $0x70] sm:$0xf] }
 0x106   :  { %v954_v42 = vpack.c.bf16 %v868_v56, %v868_v56  ;;  %v7652_v56 = vld [vmem:[#allocation8 + $0x74] sm:$0xf0] }
 0x108   :  { %v979_v44 = vsel %vm958_vm0, %v954_v42, 0  ;;  %v7651_v42 = vld [vmem:[#allocation8 + $0x74] sm:$0xf] }
 0x109   :  { %988 = vmatpush.bf16.msrb.mxu3 %v979_v44  ;;  %v5785_v44 = vor.u32 %v7652_v56, %v5784_v41  ;;  %v5728_v41 = vld [vmem:[#allocation8] sm:$0xf]  ;;  %v7638_v56 = vld [vmem:[#allocation8 + $0x4] sm:$0xf0] }
 0x10b   :  { %1306 = vmatpush.bf16.msrb.mxu0 %v5785_v44  ;;  %v5729_v44 = vor.u32 %v7638_v56, %v5728_v41 }
 0x165   :  { %v915_v46 = vpop.f32.mrf.mxu0 }
 0x166   :  { %v916_v47 = vadd.f32 %v915_v46, %v8461_v45  ;;  %v5789_v46 = vor.u32 %v7651_v42, %v5786_v60  ;;  %v5824_v42 = vld [vmem:[#allocation8 + $0xc0] sm:$0xf]  ;;  %v7662_v60 = vld [vmem:[#allocation8 + $0xc4] sm:$0xf0] }
 0x168   :  { %v933_v49 = vsel %vm932_vm1, %v916_v47, -inf }
 0x169   :  { %934 = vmax.xlane.f32.xlu0 %v933_v49  ;;  %v7649_v49 = vld [vmem:[#allocation8 + $0x64] sm:$0xf] }
 0x16d   :  { %v917_v51 = vpop.f32.mrf.mxu0  ;;  %v928_v52 = vpop.f32.mrf.mxu1 }
 0x16e   :  { %v929_v53 = vadd.f32 %v928_v52, %v8465_v50  ;;  %v893_v10 = vpop.f32.mrf.mxu3  ;;  %v5778_v52 = vld [vmem:[#allocation8 + $0x68] sm:$0xf0] }
 0x170   :  { %v936_v54 = vsel %vm932_vm1, %v929_v53, -inf }
 0x171   :  { %937 = vmax.xlane.f32.xlu0 %v936_v54  ;;  %v5768_v54 = vld [vmem:[#allocation8 + $0x50] sm:$0xf] }
 0x175   :  { %v930_v55 = vpop.f32.mrf.mxu1  ;;  %v1015_v57 = vpop.f32.mrf.mxu0 }
 0x176   :  { %v1016_v58 = vadd.f32 %v1015_v57, %v8461_v45  ;;  %v895_v15 = vpop.f32.mrf.mxu3  ;;  %v7648_v55 = vld [vmem:[#allocation8 + $0x54] sm:$0xf0]  ;;  %v7647_v57 = vld [vmem:[#allocation8 + $0x54] sm:$0xf] }
 0x178   :  { %v1032_v59 = vsel %vm932_vm1, %v1016_v58, -inf }
 0x179   :  { %1033 = vmax.xlane.f32.xlu1 %v1032_v59  ;;  %v5770_v59 = vld [vmem:[#allocation8 + $0x58] sm:$0xf0] }
 0x17b   :  { %v879_v8 = vpop.f32.mrf.mxu2 }
 0x17c   :  { %v880_v11 = vadd.f32 %v879_v8, %v239_v9 }
 0x17d   :  { %v1017_v61 = vpop.f32.mrf.mxu0  ;;  %v1028_v0 = vpop.f32.mrf.mxu1 }
 0x17e   :  { %v1029_v2 = vadd.f32 %v1028_v0, %v8465_v50  ;;  %v894_v12 = vadd.f32 %v893_v10, %v880_v11  ;;  %v5773_v61 = vor.u32 %v7647_v57, %v5770_v59  ;;  %v5760_v0 = vld [vmem:[#allocation8 + $0x40] sm:$0xf]  ;;  %v7644_v10 = vld [vmem:[#allocation8 + $0x34] sm:$0xf0]  ;;  %v5848_v11 = vld [vmem:[#allocation8 + $0xf0] sm:$0xf] }
 0x17f   :  { %v7660_v57 = vld [vmem:[#allocation8 + $0xb4] sm:$0xf0] }
 0x180   :  { %v1035_v4 = vsel %vm932_vm1, %v1029_v2, -inf  ;;  %v1052_v62 = vpack.c.bf16 %v894_v12, %v894_v12 }
 0x181   :  { %1036 = vmax.xlane.f32.xlu1 %v1035_v4  ;;  %v7645_v4 = vld [vmem:[#allocation8 + $0x44] sm:$0xf] }
 0x182   :  { %v1058_v17 = vsel %vm958_vm0, %v1052_v62, 0  ;;  %v5765_v8 = vor.u32 %v7645_v4, %v5762_v7  ;;  %v5754_v62 = vld [vmem:[#allocation8 + $0x38] sm:$0xf0]  ;;  %v7658_v4 = vld [vmem:[#allocation8 + $0xa4] sm:$0xf0] }
 0x183   :  { %v881_v13 = vpop.f32.mrf.mxu2  ;;  %1067 = vmatpush.bf16.msra.mxu2 %v1058_v17  ;;  %v7667_v17 = vld [vmem:[#allocation8 + $0xf4] sm:$0xf] }
 0x184   :  { %v882_v14 = vadd.f32 %v881_v13, %v239_v9  ;;  %v5752_v9 = vld [vmem:[#allocation8 + $0x30] sm:$0xf]  ;;  %v7668_v13 = vld [vmem:[#allocation8 + $0xf4] sm:$0xf0] }
 0x185   :  { %v1030_v1 = vpop.f32.mrf.mxu1  ;;  %v5753_v12 = vor.u32 %v7644_v10, %v5752_v9  ;;  %v5800_v10 = vld [vmem:[#allocation8 + $0x90] sm:$0xf] }
 0x186   :  { %v896_v16 = vadd.f32 %v895_v15, %v882_v14  ;;  %v7643_v14 = vld [vmem:[#allocation8 + $0x34] sm:$0xf]  ;;  %v5849_v15 = vor.u32 %v7668_v13, %v5848_v11  ;;  %v7656_v11 = vld [vmem:[#allocation8 + $0x94] sm:$0xf0] }
 0x188   :  { %v1053_v18 = vpack.c.bf16 %v896_v16, %v896_v16  ;;  %v5757_v16 = vor.u32 %v7643_v14, %v5754_v62  ;;  %1320 = vmatpush.bf16.msrb.mxu1 %v5849_v15  ;;  %v5801_v14 = vor.u32 %v7656_v11, %v5800_v10  ;;  %v5802_v62 = vld [vmem:[#allocation8 + $0x98] sm:$0xf0] }
 0x18a   :  { %v1077_v19 = vsel %vm958_vm0, %v1053_v18, 0  ;;  %v5850_v18 = vld [vmem:[#allocation8 + $0xf8] sm:$0xf0] }
 0x18b   :  { %1086 = vmatpush.bf16.msra.mxu3 %v1077_v19  ;;  %v5853_v19 = vor.u32 %v7667_v17, %v5850_v18  ;;  %v5792_v18 = vld [vmem:[#allocation8 + $0x80] sm:$0xf] }
 0x1dc   :  { %v935_v63 = vpop.xlane.xlu0 %934 }
 0x1dd   :  { %v939_v20 = vsub.f32 %v916_v47, %v935_v63  ;;  %v5776_v47 = vld [vmem:[#allocation8 + $0x60] sm:$0xf] }
 0x1de   :  { %v5777_v51 = vor.u32 %v7650_v48, %v5776_v47  ;;  %v5744_v63 = vld [vmem:[#allocation8 + $0x20] sm:$0xf]  ;;  %v5730_v47 = vld [vmem:[#allocation8 + $0x8] sm:$0xf0]  ;;  %v5825_v48 = vor.u32 %v7662_v60, %v5824_v42 }
 0x1df   :  { %v941_v5 = vmul.f32 1.442695, %v939_v20  ;;  %v7642_v20 = vld [vmem:[#allocation8 + $0x24] sm:$0xf0] }
 0x1e0   :  { %1307 = vmatpush.bf16.msrb.mxu0 %v5777_v51  ;;  %v7661_v51 = vld [vmem:[#allocation8 + $0xc4] sm:$0xf] }
 0x1e1   :  { %8099 = vpow2.f32 %v941_v5  ;;  %v5840_v5 = vld [vmem:[#allocation8 + $0xe0] sm:$0xf] }
 0x1e4   :  { %v938_v21 = vpop.xlane.xlu0 %937 }
 0x1e5   :  { %v940_v22 = vsub.f32 %v929_v53, %v938_v21  ;;  %v5781_v53 = vor.u32 %v7649_v49, %v5778_v52  ;;  %v5745_v21 = vor.u32 %v7642_v20, %v5744_v63  ;;  %v5826_v52 = vld [vmem:[#allocation8 + $0xc8] sm:$0xf0]  ;;  %v7653_v63 = vld [vmem:[#allocation8 + $0x84] sm:$0xf] }
 0x1e7   :  { %v8100_v6 = vpop.eup %8099  ;;  %v943_v23 = vmul.f32 1.442695, %v940_v22  ;;  %v7666_v22 = vld [vmem:[#allocation8 + $0xe4] sm:$0xf0] }
 0x1e8   :  { %v951_v24 = vpack.c.bf16 %v8100_v6, %v8100_v6  ;;  %v945_v25 = vsel %vm932_vm1, %v8100_v6, 0.0  ;;  %v7641_v6 = vld [vmem:[#allocation8 + $0x24] sm:$0xf] }
 0x1e9   :  { %8101 = vpow2.f32 %v943_v23  ;;  %946 = vadd.xlane.f32.xlu2 %v945_v25  ;;  %v5746_v23 = vld [vmem:[#allocation8 + $0x28] sm:$0xf0] }
 0x1ea   :  { %5714 = vmatmul.msk.bf16.vlgmr.msrb.gmra.mxu2 %vm932_vm1, %v951_v24  ;;  %v5841_v24 = vor.u32 %v7666_v22, %v5840_v5  ;;  %v5749_v25 = vor.u32 %v7641_v6, %v5746_v23  ;;  %v5794_v5 = vld [vmem:[#allocation8 + $0x88] sm:$0xf0] }
 0x1eb   :  { %1334 = vmatpush.bf16.msrb.mxu2 %v5789_v46  ;;  %v7637_v46 = vld [vmem:[#allocation8 + $0x4] sm:$0xf]  ;;  %v5797_v6 = vor.u32 %v7653_v63, %v5794_v5  ;;  %v5968_v5 = vld [vmem:[#allocation10 + $0xe0] sm:$0xf] }
 0x1ec   :  { %v1034_v26 = vpop.xlane.xlu1 %1033  ;;  %1321 = vmatpush.bf16.msrb.mxu1 %v5841_v24  ;;  %v5733_v49 = vor.u32 %v7637_v46, %v5730_v47 }
 0x1ed   :  { %v1038_v27 = vsub.f32 %v1016_v58, %v1034_v26  ;;  %v5769_v58 = vor.u32 %v7648_v55, %v5768_v54  ;;  %v7665_v26 = vld [vmem:[#allocation8 + $0xe4] sm:$0xf]  ;;  %v5829_v54 = vor.u32 %v7661_v51, %v5826_v52  ;;  %v5816_v55 = vld [vmem:[#allocation8 + $0xb0] sm:$0xf]  ;;  %v1135_v52 = vperm.slane %v8444_v43, 2 }
 0x1ee   :  { %v5817_v59 = vor.u32 %v7660_v57, %v5816_v55 }
 0x1ef   :  { %v8102_v28 = vpop.eup %8101  ;;  %v1040_v29 = vmul.f32 1.442695, %v1038_v27  ;;  %1335 = vmatpush.bf16.msrb.mxu2 %v5781_v53  ;;  %1308 = vmatpush.bf16.msrb.mxu0 %v5769_v58  ;;  %v5842_v27 = vld [vmem:[#allocation8 + $0xe8] sm:$0xf0]  ;;  %v7659_v58 = vld [vmem:[#allocation8 + $0xb4] sm:$0xf] }
 0x1f0   :  { %v952_v30 = vpack.c.bf16 %v8102_v28, %v8102_v28  ;;  %v948_v31 = vsel %vm932_vm1, %v8102_v28, 0.0  ;;  %v5845_v28 = vor.u32 %v7665_v26, %v5842_v27 }
 0x1f1   :  { %8103 = vpow2.f32 %v1040_v29  ;;  %949 = vadd.xlane.f32.xlu2 %v948_v31  ;;  %v5736_v29 = vld [vmem:[#allocation8 + $0x10] sm:$0xf] }
 0x1f2   :  { %5715 = vmatmul.msk.bf16.vlgmr.msrb.gmra.mxu3 %vm932_vm1, %v952_v30  ;;  %v7640_v30 = vld [vmem:[#allocation8 + $0x14] sm:$0xf0]  ;;  %v5832_v31 = vld [vmem:[#allocation8 + $0xd0] sm:$0xf] }
 0x1f3   :  { %1336 = vmatpush.bf16.msrb.mxu2 %v5773_v61  ;;  %1348 = vmatpush.bf16.msrb.mxu3 %v5853_v19  ;;  %v5818_v61 = vld [vmem:[#allocation8 + $0xb8] sm:$0xf0]  ;;  %v7654_v19 = vld [vmem:[#allocation8 + $0x84] sm:$0xf0] }
 0x1f4   :  { %v1037_v32 = vpop.xlane.xlu1 %1036 }
 0x1f5   :  { %v1039_v33 = vsub.f32 %v1029_v2, %v1037_v32  ;;  %v7646_v2 = vld [vmem:[#allocation8 + $0x44] sm:$0xf0]  ;;  %v5737_v32 = vor.u32 %v7640_v30, %v5736_v29 }
 0x1f6   :  { %v5761_v1 = vor.u32 %v7646_v2, %v5760_v0  ;;  %v5821_v0 = vor.u32 %v7659_v58, %v5818_v61  ;;  %v5808_v2 = vld [vmem:[#allocation8 + $0xa0] sm:$0xf] }
 0x1f7   :  { %v8104_v34 = vpop.eup %8103  ;;  %v1042_v35 = vmul.f32 1.442695, %v1039_v33  ;;  %1337 = vmatpush.bf16.msrb.mxu2 %v5765_v8  ;;  %1349 = vmatpush.bf16.msrb.mxu3 %v5845_v28  ;;  %v7664_v33 = vld [vmem:[#allocation8 + $0xd4] sm:$0xf0]  ;;  %v5809_v7 = vor.u32 %v7658_v4, %v5808_v2  ;;  %v5810_v8 = vld [vmem:[#allocation8 + $0xa8] sm:$0xf0] }
 0x1f8   :  { %v1050_v36 = vpack.c.bf16 %v8104_v34, %v8104_v34  ;;  %v1044_v37 = vsel %vm932_vm1, %v8104_v34, 0.0  ;;  %1309 = vmatpush.bf16.msrb.mxu0 %v5761_v1  ;;  %v7639_v34 = vld [vmem:[#allocation8 + $0x14] sm:$0xf]  ;;  %v7657_v1 = vld [vmem:[#allocation8 + $0xa4] sm:$0xf] }
 0x1f9   :  { %8105 = vpow2.f32 %v1042_v35  ;;  %1045 = vadd.xlane.f32.xlu0 %v1044_v37  ;;  %v5738_v35 = vld [vmem:[#allocation8 + $0x18] sm:$0xf0]  ;;  %v5813_v9 = vor.u32 %v7657_v1, %v5810_v8 }
 0x1fa   :  { %5716 = vmatmul.msk.bf16.vlgmr.msra.gmra.mxu2 %vm932_vm1, %v1050_v36  ;;  %v5833_v36 = vor.u32 %v7664_v33, %v5832_v31  ;;  %v5741_v37 = vor.u32 %v7639_v34, %v5738_v35 }
 0x1fb   :  { %1338 = vmatpush.bf16.msrb.mxu2 %v5757_v16 }
 0x1fc   :  { %1310 = vmatpush.bf16.msrb.mxu0 %v5753_v12  ;;  %1322 = vmatpush.bf16.msrb.mxu1 %v5833_v36  ;;  %v7655_v12 = vld [vmem:[#allocation8 + $0x94] sm:$0xf] }
 0x1fd   :  { %v5805_v17 = vor.u32 %v7655_v12, %v5802_v62 }
 0x1ff   :  { %v8106_v38 = vpop.eup %8105  ;;  %1339 = vmatpush.bf16.msrb.mxu2 %v5749_v25 }
 0x200   :  { %v1051_v39 = vpack.c.bf16 %v8106_v38, %v8106_v38  ;;  %v1047_v40 = vsel %vm932_vm1, %v8106_v38, 0.0  ;;  %1311 = vmatpush.bf16.msrb.mxu0 %v5745_v21  ;;  %v7663_v38 = vld [vmem:[#allocation8 + $0xd4] sm:$0xf]  ;;  %1323 = vmatpush.bf16.msrb.mxu1 %v5825_v48  ;;  %v5793_v21 = vor.u32 %v7654_v19, %v5792_v18  ;;  %v1134_v48 = vperm.slane %v8431_v3, 2 }
 0x201   :  { %1048 = vadd.xlane.f32.xlu1 %v1047_v40  ;;  %v8337_v18 = vmov 256.0  }
 0x202   :  { %5717 = vmatmul.msk.bf16.vlgmr.msra.gmra.mxu3 %vm932_vm1, %v1051_v39  ;;  %v5834_v39 = vld [vmem:[#allocation8 + $0xd8] sm:$0xf0] }
 0x203   :  { %v5837_v40 = vor.u32 %v7663_v38, %v5834_v39  ;;  %1340 = vmatpush.bf16.msrb.mxu2 %v5741_v37 }
 0x204   :  { %1312 = vmatpush.bf16.msrb.mxu0 %v5737_v32  ;;  %1324 = vmatpush.bf16.msrb.mxu1 %v5817_v59 }
 0x205   :  { %1350 = vmatpush.bf16.msrb.mxu3 %v5837_v40 }
 0x207   :  { %1341 = vmatpush.bf16.msrb.mxu2 %v5733_v49 }
 0x208   :  { %1313 = vmatpush.bf16.msrb.mxu0 %v5729_v44  ;;  %1325 = vmatpush.bf16.msrb.mxu1 %v5809_v7 }
 0x209   :  { %1351 = vmatpush.bf16.msrb.mxu3 %v5829_v54 }
 0x20c   :  { %1326 = vmatpush.bf16.msrb.mxu1 %v5801_v14 }
 0x20d   :  { %1352 = vmatpush.bf16.msrb.mxu3 %v5821_v0 }
 0x210   :  { %1327 = vmatpush.bf16.msrb.mxu1 %v5793_v21  ;;  %v7699_v21 = vld [vmem:[#allocation10 + $0xec] sm:$0xf0] }
 0x211   :  { %1353 = vmatpush.bf16.msrb.mxu3 %v5813_v9  ;;  %v124_v9 = vld [vmem:[#allocation2 + $0x8] sm:$0xff] }
 0x212   :  { %v127_v43 = vunpack.c.l.bf16 %v124_v9 }
 0x215   :  { %1354 = vmatpush.bf16.msrb.mxu3 %v5805_v17 }
 0x219   :  { %1355 = vmatpush.bf16.msrb.mxu3 %v5797_v6  ;;  %v5969_v6 = vor.u32 %v7699_v21, %v5968_v5  ;;  %v7717_v5 = vld [vmem:[#allocation10 + $0x184] sm:$0xf]  ;;  %v6050_v21 = vld [vmem:[#allocation10 + $0x190] sm:$0xf0] }
 0x21b   :  { %1825 = vmatpush.bf16.msra.mxu0 %v5969_v6  ;;  %v5904_v6 = vld [vmem:[#allocation10 + $0x60] sm:$0xf] }
 0x25c   :  { %v947_v53 = vpop.xlane.xlu2 %946 }
 0x25d   :  { %8107 = vrcp.f32 %v947_v53  ;;  %v123_v53 = vld [vmem:[#allocation2] sm:$0xff] }
 0x25e   :  { %v125_v57 = vunpack.c.l.bf16 %v123_v53  ;;  %v126_v59 = vunpack.c.h.bf16 %v123_v53 }
 0x263   :  { %v8108_v15 = vpop.eup %8107 }
 0x264   :  { %v950_v13 = vpop.xlane.xlu2 %949 }
 0x265   :  { %8109 = vrcp.f32 %v950_v13  ;;  %v128_v13 = vunpack.c.h.bf16 %v124_v9  ;;  %v7689_v9 = vld [vmem:[#allocation10 + $0xa4] sm:$0xf] }
 0x26b   :  { %v8110_v24 = vpop.eup %8109 }
 0x26c   :  { %v1046_v23 = vpop.xlane.xlu0 %1045 }
 0x26d   :  { %v971_v16 = vpop.f32.mrf.mxu2  ;;  %8111 = vrcp.f32 %v1046_v23  ;;  %v7731_v23 = vld [vmem:[#allocation10 + $0x1ec] sm:$0xf0] }
 0x26e   :  { %v996_v20 = vmul.f32 %v8108_v15, %v971_v16 }
 0x270   :  { %v998_v22 = vpack.c.bf16 %v996_v20, %v996_v20 }
 0x272   :  { %1000 = vst [vmem:[#allocation3] sm:$0xf] %v998_v22  ;;  %v6096_v22 = vld [vmem:[#allocation10 + $0x1e0] sm:$0xf] }
 0x273   :  { %v8112_v30 = vpop.eup %8111 }
 0x274   :  { %v1049_v29 = vpop.xlane.xlu1 %1048 }
 0x275   :  { %v973_v25 = vpop.f32.mrf.mxu2  ;;  %v990_v26 = vpop.f32.mrf.mxu3  ;;  %8113 = vrcp.f32 %v1049_v29  ;;  %v6098_v29 = vld [vmem:[#allocation10 + $0x1f0] sm:$0xf0] }
 0x276   :  { %v997_v27 = vmul.f32 %v8110_v24, %v990_v26  ;;  %8115 = vrcp.f32 %v8337_v18  ;;  %v7697_v24 = vld [vmem:[#allocation10 + $0xe4] sm:$0xf]  ;;  %v5970_v25 = vld [vmem:[#allocation10 + $0xf0] sm:$0xf0]  ;;  %v6097_v26 = vor.u32 %v7731_v23, %v6096_v22  ;;  %v6053_v22 = vor.u32 %v7717_v5, %v6050_v21  ;;  %v7683_v23 = vld [vmem:[#allocation10 + $0x6c] sm:$0xf0] }
 0x277   :  { %v7685_v18 = vld [vmem:[#allocation10 + $0x84] sm:$0xf]  ;;  %v7698_v5 = vld [vmem:[#allocation10 + $0xec] sm:$0xf]  ;;  %v5978_v21 = vld [vmem:[#allocation10 + $0xf8] sm:$0xf0] }
 0x278   :  { %v999_v28 = vpack.c.bf16 %v997_v27, %v997_v27  ;;  %v5973_v27 = vor.u32 %v7697_v24, %v5970_v25  ;;  %1839 = vmatpush.bf16.msra.mxu1 %v6097_v26  ;;  %v6032_v24 = vld [vmem:[#allocation10 + $0x160] sm:$0xf]  ;;  %v5905_v25 = vor.u32 %v7683_v23, %v5904_v6  ;;  %v7715_v26 = vld [vmem:[#allocation10 + $0x16c] sm:$0xf0]  ;;  %v5981_v6 = vor.u32 %v7698_v5, %v5978_v21  ;;  %v6106_v23 = vld [vmem:[#allocation10 + $0x1f8] sm:$0xf0] }
 0x279   :  { %v5720_v35 = vld [vmem:[#allocation3] sm:$0xf]  ;;  %v5896_v5 = vld [vmem:[#allocation10 + $0x48] sm:$0xf] }
 0x27a   :  { %1001 = vst [vmem:[#allocation3 + $0x8] sm:$0xf] %v999_v28  ;;  %v7729_v28 = vld [vmem:[#allocation10 + $0x1e4] sm:$0xf]  ;;  %1853 = vmatpush.bf16.msra.mxu2 %v5973_v27 }
 0x27b   :  { %v8114_v38 = vpop.eup %8113  ;;  %v7681_v27 = vld [vmem:[#allocation10 + $0x64] sm:$0xf] }
 0x27c   :  { %v8116_v19 = vpop.eup %8115 }
 0x27d   :  { %v992_v31 = vpop.f32.mrf.mxu3  ;;  %v1069_v32 = vpop.f32.mrf.mxu2  ;;  %v1373_v63 = vmul.f32 256.0, %v8116_v19  ;;  %vm1377_vm2 = vweird.f32 %v8116_v19 }
 0x27e   :  { %v1094_v33 = vmul.f32 %v8112_v30, %v1069_v32  ;;  %v5952_v30 = vld [vmem:[#allocation10 + $0xc0] sm:$0xf]  ;;  %v6101_v31 = vor.u32 %v7729_v28, %v6098_v29  ;;  %v7695_v32 = vld [vmem:[#allocation10 + $0xcc] sm:$0xf0]  ;;  %v5906_v28 = vld [vmem:[#allocation10 + $0x70] sm:$0xf0]  ;;  %v6033_v29 = vor.u32 %v7715_v26, %v6032_v24 }
 0x27f   :  { %v1374_v20 = vsub.f32 1.0, %v1373_v63  ;;  %v5960_v24 = vld [vmem:[#allocation10 + $0xc8] sm:$0xf] }
 0x280   :  { %v1096_v34 = vpack.c.bf16 %v1094_v33, %v1094_v33  ;;  %v6080_v33 = vld [vmem:[#allocation10 + $0x1c0] sm:$0xf]  ;;  %1867 = vmatpush.bf16.msra.mxu3 %v6101_v31  ;;  %v7713_v31 = vld [vmem:[#allocation10 + $0x164] sm:$0xf] }
 0x281   :  { %v7636_v36 = vld [vmem:[#allocation3 + $0x4] sm:$0xf0] }
 0x282   :  { %1098 = vst [vmem:[#allocation3 + $0x4] sm:$0xf] %v1096_v34  ;;  %v5721_v37 = vor.u32 %v7636_v36, %v5720_v35  ;;  %v7727_v34 = vld [vmem:[#allocation10 + $0x1cc] sm:$0xf0]  ;;  %v5953_v35 = vor.u32 %v7695_v32, %v5952_v30  ;;  %v5909_v30 = vor.u32 %v7681_v27, %v5906_v28  ;;  %v6034_v32 = vld [vmem:[#allocation10 + $0x170] sm:$0xf0] }
 0x283   :  { %v6081_v36 = vor.u32 %v7727_v34, %v6080_v33  ;;  %v6037_v33 = vor.u32 %v7713_v31, %v6034_v32  ;;  %v5888_v34 = vld [vmem:[#allocation10 + $0x40] sm:$0xf]  ;;  %v6088_v28 = vld [vmem:[#allocation10 + $0x1c8] sm:$0xf]  ;;  %v5962_v32 = vld [vmem:[#allocation10 + $0xd8] sm:$0xf0] }
 0x284   :  { %1314 = vmatmul.bf16.vlgmr.msrb.gmra.mxu0 %v5721_v37  ;;  %1342 = vmatmul.bf16.vlgmr.msrb.gmra.mxu2 %v5721_v37  ;;  %v7693_v37 = vld [vmem:[#allocation10 + $0xc4] sm:$0xf] }
 0x285   :  { %v1071_v39 = vpop.f32.mrf.mxu2  ;;  %v1088_v40 = vpop.f32.mrf.mxu3  ;;  %1826 = vmatpush.bf16.msra.mxu0 %v5953_v35  ;;  %1840 = vmatpush.bf16.msra.mxu1 %v6081_v36  ;;  %v7679_v35 = vld [vmem:[#allocation10 + $0x4c] sm:$0xf0]  ;;  %v6016_v36 = vld [vmem:[#allocation10 + $0x140] sm:$0xf] }
 0x286   :  { %v1095_v41 = vmul.f32 %v8114_v38, %v1088_v40  ;;  %v5954_v38 = vld [vmem:[#allocation10 + $0xd0] sm:$0xf0]  ;;  %v7725_v39 = vld [vmem:[#allocation10 + $0x1c4] sm:$0xf]  ;;  %v1375_v40 = vmul.f32 %v8116_v19, %v1374_v20 }
 0x288   :  { %v1097_v56 = vpack.c.bf16 %v1095_v41, %v1095_v41  ;;  %v5957_v41 = vor.u32 %v7693_v37, %v5954_v38  ;;  %v5889_v37 = vor.u32 %v7679_v35, %v5888_v34  ;;  %v7711_v38 = vld [vmem:[#allocation10 + $0x14c] sm:$0xf0]  ;;  %v6090_v34 = vld [vmem:[#allocation10 + $0x1d8] sm:$0xf0] }
 0x289   :  { %v7635_v44 = vld [vmem:[#allocation3 + $0x4] sm:$0xf] }
 0x28a   :  { %1099 = vst [vmem:[#allocation3 + $0xc] sm:$0xf] %v1097_v56  ;;  %v6082_v56 = vld [vmem:[#allocation10 + $0x1d0] sm:$0xf0]  ;;  %1854 = vmatpush.bf16.msra.mxu2 %v5957_v41  ;;  %v6017_v41 = vor.u32 %v7711_v38, %v6016_v36  ;;  %v7692_v38 = vld [vmem:[#allocation10 + $0xb4] sm:$0xf0] }
 0x28d   :  { %v1090_v42 = vpop.f32.mrf.mxu3 }
 0x28e   :  { %v6085_v42 = vor.u32 %v7725_v39, %v6082_v56  ;;  %v7677_v39 = vld [vmem:[#allocation10 + $0x44] sm:$0xf] }
 0x290   :  { %1868 = vmatpush.bf16.msra.mxu3 %v6085_v42  ;;  %v7709_v42 = vld [vmem:[#allocation10 + $0x144] sm:$0xf] }
 0x291   :  { %v5722_v60 = vld [vmem:[#allocation3 + $0x8] sm:$0xf0] }
 0x292   :  { %v5725_v46 = vor.u32 %v7635_v44, %v5722_v60  ;;  %v1376_v44 = vadd.f32 %v8116_v19, %v1375_v40  ;;  %v5890_v40 = vld [vmem:[#allocation10 + $0x50] sm:$0xf0] }
 0x293   :  { %v5893_v56 = vor.u32 %v7677_v39, %v5890_v40  ;;  %v6072_v39 = vld [vmem:[#allocation10 + $0x1a8] sm:$0xf] }
 0x294   :  { %1328 = vmatmul.bf16.vlgmr.msrb.gmra.mxu1 %v5725_v46  ;;  %1356 = vmatmul.bf16.vlgmr.msrb.gmra.mxu3 %v5725_v46  ;;  %v8488_v60 = vsel %vm1377_vm2, %v8116_v19, %v1376_v44  ;;  %v5922_v19 = vld [vmem:[#allocation10 + $0x90] sm:$0xf0] }
 0x295   :  { %v5925_v20 = vor.u32 %v7685_v18, %v5922_v19  ;;  %v6018_v44 = vld [vmem:[#allocation10 + $0x150] sm:$0xf0]  ;;  %v6104_v18 = vld [vmem:[#allocation10 + $0x1e8] sm:$0xf]  ;;  %v7732_v19 = vld [vmem:[#allocation10 + $0x1f4] sm:$0xf0] }
 0x301   :  { %v1315_v47 = vpop.f32.mrf.mxu0 }
 0x302   :  { %v1316_v54 = vadd.f32 %v1315_v47, %v1134_v48 }
 0x307   :  { %v1343_v49 = vpop.f32.mrf.mxu2 }
 0x308   :  { %v1344_v55 = vadd.f32 %v1343_v49, %v1135_v52 }
 0x309   :  { %v1317_v2 = vpop.f32.mrf.mxu0 }
 0x30a   :  { %v1318_v10 = vadd.f32 %v1317_v2, %v1134_v48  ;;  %v5936_v2 = vld [vmem:[#allocation10 + $0xa0] sm:$0xf] }
 0x30f   :  { %v1345_v7 = vpop.f32.mrf.mxu2 }
 0x310   :  { %v1346_v11 = vadd.f32 %v1345_v7, %v1135_v52 }
 0x311   :  { %v1329_v51 = vpop.f32.mrf.mxu1 }
 0x312   :  { %v1330_v58 = vadd.f32 %v1329_v51, %v1316_v54 }
 0x314   :  { %v1362_v4 = vadd.f32 %v1330_v58, %v125_v57 }
 0x317   :  { %v1357_v61 = vpop.f32.mrf.mxu3 }
 0x318   :  { %v1358_v0 = vadd.f32 %v1357_v61, %v1344_v55 }
 0x319   :  { %v1331_v8 = vpop.f32.mrf.mxu1 }
 0x31a   :  { %v1363_v1 = vadd.f32 %v1358_v0, %v126_v59  ;;  %v1332_v12 = vadd.f32 %v1331_v8, %v1318_v10  ;;  %v7723_v8 = vld [vmem:[#allocation10 + $0x1ac] sm:$0xf0]  ;;  %v5938_v10 = vld [vmem:[#allocation10 + $0xb0] sm:$0xf0] }
 0x31c   :  { %v1366_v3 = vadd.f32 %v1363_v1, %v1362_v4  ;;  %v1364_v15 = vadd.f32 %v1332_v12, %v127_v43  ;;  %v7721_v12 = vld [vmem:[#allocation10 + $0x1a4] sm:$0xf]  ;;  %v6066_v43 = vld [vmem:[#allocation10 + $0x1b0] sm:$0xf0] }
 0x31e   :  { %1367 = vadd.xlane.f32.xlu2 %v1366_v3 }
 0x31f   :  { %v1359_v14 = vpop.f32.mrf.mxu3 }
 0x320   :  { %v1360_v62 = vadd.f32 %v1359_v14, %v1346_v11  ;;  %v5941_v11 = vor.u32 %v7689_v9, %v5938_v10  ;;  %v5920_v14 = vld [vmem:[#allocation10 + $0x80] sm:$0xf] }
 0x321   :  { %v5984_v9 = vld [vmem:[#allocation10 + $0x100] sm:$0xf] }
 0x322   :  { %v1365_v16 = vadd.f32 %v1360_v62, %v128_v13  ;;  %v6069_v13 = vor.u32 %v7721_v12, %v6066_v43  ;;  %1855 = vmatpush.bf16.msra.mxu2 %v5941_v11  ;;  %v7687_v62 = vld [vmem:[#allocation10 + $0x8c] sm:$0xf0]  ;;  %v7669_v11 = vld [vmem:[#allocation10 + $0x4] sm:$0xf]  ;;  %v5858_v12 = vld [vmem:[#allocation10 + $0x10] sm:$0xf0] }
 0x324   :  { %v1369_v17 = vadd.f32 %v1365_v16, %v1364_v15  ;;  %1869 = vmatpush.bf16.msra.mxu3 %v6069_v13  ;;  %v5861_v13 = vor.u32 %v7669_v11, %v5858_v12  ;;  %v5912_v12 = vld [vmem:[#allocation10 + $0x68] sm:$0xf] }
 0x326   :  { %1370 = vadd.xlane.f32.xlu0 %v1369_v17  ;;  %v7719_v17 = vld [vmem:[#allocation10 + $0x18c] sm:$0xf0]  ;;  %1856 = vmatpush.bf16.msra.mxu2 %v5925_v20  ;;  %v6105_v20 = vor.u32 %v7732_v19, %v6104_v18 }
 0x328   :  { %1870 = vmatpush.bf16.msra.mxu3 %v6053_v22  ;;  %v7730_v22 = vld [vmem:[#allocation10 + $0x1ec] sm:$0xf] }
 0x329   :  { %v6109_v26 = vor.u32 %v7730_v22, %v6106_v23  ;;  %v6024_v23 = vld [vmem:[#allocation10 + $0x148] sm:$0xf] }
 0x32a   :  { %1857 = vmatpush.bf16.msra.mxu2 %v5909_v30  ;;  %v7694_v30 = vld [vmem:[#allocation10 + $0xcc] sm:$0xf] }
 0x32b   :  { %v5965_v35 = vor.u32 %v7694_v30, %v5962_v32  ;;  %v6026_v32 = vld [vmem:[#allocation10 + $0x158] sm:$0xf0] }
 0x32c   :  { %1871 = vmatpush.bf16.msra.mxu3 %v6037_v33  ;;  %v7726_v33 = vld [vmem:[#allocation10 + $0x1cc] sm:$0xf] }
 0x32d   :  { %v6093_v36 = vor.u32 %v7726_v33, %v6090_v34  ;;  %v5880_v33 = vld [vmem:[#allocation10 + $0x28] sm:$0xf] }
 0x32e   :  { %1858 = vmatpush.bf16.msra.mxu2 %v5893_v56  ;;  %v7690_v56 = vld [vmem:[#allocation10 + $0xac] sm:$0xf] }
 0x391   :  { %v1368_v46 = vpop.xlane.xlu2 %1367 }
 0x392   :  { %v1379_v47 = vmul.f32 %v8488_v60, %v1368_v46  ;;  %v6021_v46 = vor.u32 %v7709_v42, %v6018_v44  ;;  %v5946_v42 = vld [vmem:[#allocation10 + $0xb8] sm:$0xf0] }
 0x394   :  { %v8491_v48 = vsub.f32 %v1362_v4, %v1379_v47  ;;  %v8493_v49 = vsub.f32 %v1363_v1, %v1379_v47  ;;  %v7691_v4 = vld [vmem:[#allocation10 + $0xac] sm:$0xf0]  ;;  %v6064_v1 = vld [vmem:[#allocation10 + $0x1a0] sm:$0xf]  ;;  %1872 = vmatpush.bf16.msra.mxu3 %v6021_v46 }
 0x395   :  { %v5937_v7 = vor.u32 %v7691_v4, %v5936_v2  ;;  %v6065_v3 = vor.u32 %v7723_v8, %v6064_v1  ;;  %v5872_v47 = vld [vmem:[#allocation10 + $0x20] sm:$0xf]  ;;  %v7705_v2 = vld [vmem:[#allocation10 + $0x124] sm:$0xf]  ;;  %v6002_v4 = vld [vmem:[#allocation10 + $0x130] sm:$0xf0] }
 0x396   :  { %v1385_v51 = vmul.f32 %v8491_v48, %v8491_v48  ;;  %v1386_v52 = vmul.f32 %v8493_v49, %v8493_v49  ;;  %v6005_v1 = vor.u32 %v7705_v2, %v6002_v4  ;;  %v7671_v8 = vld [vmem:[#allocation10 + $0xc] sm:$0xf0]  ;;  %v7686_v2 = vld [vmem:[#allocation10 + $0x8c] sm:$0xf]  ;;  %v5930_v4 = vld [vmem:[#allocation10 + $0x98] sm:$0xf0] }
 0x397   :  { %1827 = vmatpush.bf16.msra.mxu0 %v5937_v7  ;;  %1841 = vmatpush.bf16.msra.mxu1 %v6065_v3  ;;  %v5856_v7 = vld [vmem:[#allocation10] sm:$0xf]  ;;  %v7703_v3 = vld [vmem:[#allocation10 + $0x10c] sm:$0xf0] }
 0x398   :  { %v1389_v53 = vadd.f32 %v1386_v52, %v1385_v51  ;;  %v7675_v51 = vld [vmem:[#allocation10 + $0x2c] sm:$0xf0]  ;;  %v6000_v52 = vld [vmem:[#allocation10 + $0x120] sm:$0xf]  ;;  %1873 = vmatpush.bf16.msra.mxu3 %v6005_v1  ;;  %v5857_v10 = vor.u32 %v7671_v8, %v5856_v7  ;;  %v5985_v43 = vor.u32 %v7703_v3, %v5984_v9  ;;  %v7718_v1 = vld [vmem:[#allocation10 + $0x18c] sm:$0xf]  ;;  %v5933_v3 = vor.u32 %v7686_v2, %v5930_v4 }
 0x399   :  { %v1371_v54 = vpop.xlane.xlu0 %1370  ;;  %v5866_v2 = vld [vmem:[#allocation10 + $0x18] sm:$0xf0] }
 0x39a   :  { %v1380_v55 = vmul.f32 %v8488_v60, %v1371_v54  ;;  %1390 = vadd.xlane.f32.xlu1 %v1389_v53  ;;  %v5873_v53 = vor.u32 %v7675_v51, %v5872_v47  ;;  %v7707_v54 = vld [vmem:[#allocation10 + $0x12c] sm:$0xf0]  ;;  %v5949_v47 = vor.u32 %v7690_v56, %v5946_v42  ;;  %v7722_v51 = vld [vmem:[#allocation10 + $0x1ac] sm:$0xf] }
 0x39b   :  { %v7706_v42 = vld [vmem:[#allocation10 + $0x12c] sm:$0xf] }
 0x39c   :  { %v8500_v57 = vsub.f32 %v1364_v15, %v1380_v55  ;;  %v8502_v58 = vsub.f32 %v1365_v16, %v1380_v55  ;;  %v6048_v15 = vld [vmem:[#allocation10 + $0x180] sm:$0xf]  ;;  %v5921_v16 = vor.u32 %v7687_v62, %v5920_v14  ;;  %v7673_v55 = vld [vmem:[#allocation10 + $0x24] sm:$0xf]  ;;  %v5986_v62 = vld [vmem:[#allocation10 + $0x110] sm:$0xf0] }
 0x39d   :  { %v6049_v63 = vor.u32 %v7719_v17, %v6048_v15  ;;  %v7701_v14 = vld [vmem:[#allocation10 + $0x104] sm:$0xf]  ;;  %v5976_v15 = vld [vmem:[#allocation10 + $0xe8] sm:$0xf]  ;;  %v7700_v17 = vld [vmem:[#allocation10 + $0xf4] sm:$0xf0] }
 0x39e   :  { %v1387_v59 = vmul.f32 %v8500_v57, %v8500_v57  ;;  %v1388_v61 = vmul.f32 %v8502_v58, %v8502_v58  ;;  %1828 = vmatpush.bf16.msra.mxu0 %v5921_v16  ;;  %v5989_v16 = vor.u32 %v7701_v14, %v5986_v62  ;;  %v7716_v62 = vld [vmem:[#allocation10 + $0x174] sm:$0xf0] }
 0x39f   :  { %1842 = vmatpush.bf16.msra.mxu1 %v6049_v63  ;;  %v5977_v63 = vor.u32 %v7700_v17, %v5976_v15  ;;  %v7682_v15 = vld [vmem:[#allocation10 + $0x6c] sm:$0xf] }
 0x3a0   :  { %v1392_v0 = vadd.f32 %v1388_v61, %v1387_v59  ;;  %v5874_v59 = vld [vmem:[#allocation10 + $0x30] sm:$0xf0]  ;;  %v6001_v61 = vor.u32 %v7707_v54, %v6000_v52  ;;  %1874 = vmatpush.bf16.msra.mxu3 %v5989_v16  ;;  %v6074_v52 = vld [vmem:[#allocation10 + $0x1b8] sm:$0xf0] }
 0x3a1   :  { %v5914_v16 = vld [vmem:[#allocation10 + $0x78] sm:$0xf0] }
 0x3a2   :  { %1393 = vadd.xlane.f32.xlu2 %v1392_v0  ;;  %1829 = vmatpush.bf16.msra.mxu0 %v5905_v25  ;;  %v5877_v0 = vor.u32 %v7673_v55, %v5874_v59  ;;  %v7696_v25 = vld [vmem:[#allocation10 + $0xd4] sm:$0xf0]  ;;  %v6077_v55 = vor.u32 %v7722_v51, %v6074_v52  ;;  %v5917_v19 = vor.u32 %v7682_v15, %v5914_v16  ;;  %v5864_v51 = vld [vmem:[#allocation10 + $0x8] sm:$0xf] }
 0x3a3   :  { %1843 = vmatpush.bf16.msra.mxu1 %v6033_v29  ;;  %v5961_v27 = vor.u32 %v7696_v25, %v5960_v24  ;;  %v7728_v29 = vld [vmem:[#allocation10 + $0x1d4] sm:$0xf0]  ;;  %v7678_v25 = vld [vmem:[#allocation10 + $0x4c] sm:$0xf] }
 0x3a4   :  { %1859 = vmatpush.bf16.msra.mxu2 %v5877_v0  ;;  %v6089_v31 = vor.u32 %v7728_v29, %v6088_v28  ;;  %1923 = vmatpush.bf16.msrb.mxu3 %v6109_v26  ;;  %v7688_v59 = vld [vmem:[#allocation10 + $0x94] sm:$0xf0]  ;;  %v5898_v26 = vld [vmem:[#allocation10 + $0x58] sm:$0xf0] }
 0x3a5   :  { %v7720_v0 = vld [vmem:[#allocation10 + $0x194] sm:$0xf0] }
 0x3a6   :  { %1830 = vmatpush.bf16.msra.mxu0 %v5889_v37  ;;  %v5944_v37 = vld [vmem:[#allocation10 + $0xa8] sm:$0xf]  ;;  %v7712_v24 = vld [vmem:[#allocation10 + $0x154] sm:$0xf0] }
 0x3a7   :  { %1844 = vmatpush.bf16.msra.mxu1 %v6017_v41  ;;  %v5945_v40 = vor.u32 %v7692_v38, %v5944_v37  ;;  %v7724_v41 = vld [vmem:[#allocation10 + $0x1b4] sm:$0xf0]  ;;  %v6008_v37 = vld [vmem:[#allocation10 + $0x128] sm:$0xf] }
 0x3a8   :  { %1860 = vmatpush.bf16.msra.mxu2 %v5861_v13  ;;  %v6073_v46 = vor.u32 %v7724_v41, %v6072_v39  ;;  %1924 = vmatpush.bf16.msrb.mxu3 %v6093_v36  ;;  %v6040_v13 = vld [vmem:[#allocation10 + $0x168] sm:$0xf]  ;;  %v7676_v36 = vld [vmem:[#allocation10 + $0x34] sm:$0xf0]  ;;  %v5882_v41 = vld [vmem:[#allocation10 + $0x38] sm:$0xf0] }
 0x3a9   :  { %v6041_v18 = vor.u32 %v7716_v62, %v6040_v13  ;;  %v7708_v38 = vld [vmem:[#allocation10 + $0x134] sm:$0xf0] }
 0x3aa   :  { %1831 = vmatpush.bf16.msra.mxu0 %v5873_v53  ;;  %v5928_v53 = vld [vmem:[#allocation10 + $0x88] sm:$0xf]  ;;  %v7672_v52 = vld [vmem:[#allocation10 + $0x14] sm:$0xf0] }
 0x3ab   :  { %1845 = vmatpush.bf16.msra.mxu1 %v6001_v61  ;;  %v6056_v61 = vld [vmem:[#allocation10 + $0x188] sm:$0xf]  ;;  %v5929_v8 = vor.u32 %v7688_v59, %v5928_v53  ;;  %v7704_v59 = vld [vmem:[#allocation10 + $0x114] sm:$0xf0] }
 0x3ac   :  { %1909 = vmatpush.bf16.msrb.mxu2 %v5981_v6  ;;  %v6057_v9 = vor.u32 %v7720_v0, %v6056_v61  ;;  %1925 = vmatpush.bf16.msrb.mxu3 %v6077_v55  ;;  %v7680_v6 = vld [vmem:[#allocation10 + $0x54] sm:$0xf0]  ;;  %v5992_v55 = vld [vmem:[#allocation10 + $0x108] sm:$0xf]  ;;  %v7670_v0 = vld [vmem:[#allocation10 + $0xc] sm:$0xf] }
 0x3ad   :  { %v5897_v30 = vor.u32 %v7680_v6, %v5896_v5 }
 0x3ae   :  { %1832 = vmatpush.bf16.msra.mxu0 %v5857_v10  ;;  %v6058_v10 = vld [vmem:[#allocation10 + $0x198] sm:$0xf0] }
 0x3af   :  { %1846 = vmatpush.bf16.msra.mxu1 %v5985_v43  ;;  %v6061_v11 = vor.u32 %v7718_v1, %v6058_v10  ;;  %v7684_v43 = vld [vmem:[#allocation10 + $0x74] sm:$0xf0]  ;;  %v7702_v1 = vld [vmem:[#allocation10 + $0x10c] sm:$0xf]  ;;  %v5865_v10 = vor.u32 %v7672_v52, %v5864_v51  ;;  %v7742_v51 = vld [vmem:[#allocation11 + $0x44] sm:$0xf0] }
 0x3b0   :  { %1910 = vmatpush.bf16.msrb.mxu2 %v5965_v35  ;;  %v5913_v14 = vor.u32 %v7684_v43, %v5912_v12  ;;  %v5901_v35 = vor.u32 %v7678_v25, %v5898_v26  ;;  %v5869_v43 = vor.u32 %v7670_v0, %v5866_v2  ;;  %v6296_v0 = vld [vmem:[#allocation11 + $0x170] sm:$0xf] }
 0x3b1   :  { %1926 = vmatpush.bf16.msrb.mxu3 %v6061_v11 }
 0x3b2   :  { %1881 = vmatpush.bf16.msrb.mxu0 %v5977_v63  ;;  %v7714_v63 = vld [vmem:[#allocation10 + $0x16c] sm:$0xf] }
 0x3b3   :  { %1895 = vmatpush.bf16.msrb.mxu1 %v6105_v20  ;;  %v6042_v20 = vld [vmem:[#allocation10 + $0x178] sm:$0xf0] }
 0x3b4   :  { %1911 = vmatpush.bf16.msrb.mxu2 %v5949_v47  ;;  %v6045_v22 = vor.u32 %v7714_v63, %v6042_v20  ;;  %v6009_v47 = vor.u32 %v7708_v38, %v6008_v37  ;;  %v8530_v63 = vld [vmem:[%s9141_s6 + $0x8] sm:$0xff]  ;;  %v6232_v37 = vld [vmem:[#allocation11 + $0xf0] sm:$0xf]  ;;  %v7764_v38 = vld [vmem:[#allocation11 + $0xf4] sm:$0xf0] }
 0x3b5   :  { %v1424_v20 = vperm.slane %v8530_v63, 4 }
 0x3b6   :  { %1882 = vmatpush.bf16.msrb.mxu0 %v5961_v27  ;;  %v7710_v27 = vld [vmem:[#allocation10 + $0x14c] sm:$0xf]  ;;  %1927 = vmatpush.bf16.msrb.mxu3 %v6045_v22 }
 0x3b7   :  { %1896 = vmatpush.bf16.msrb.mxu1 %v6089_v31  ;;  %v6025_v31 = vor.u32 %v7712_v24, %v6024_v23  ;;  %v6029_v39 = vor.u32 %v7710_v27, %v6026_v32  ;;  %v6168_v27 = vld [vmem:[#allocation11 + $0x70] sm:$0xf] }
 0x3b8   :  { %1912 = vmatpush.bf16.msrb.mxu2 %v5933_v3  ;;  %v5993_v3 = vor.u32 %v7704_v59, %v5992_v55  ;;  %v6136_v59 = vld [vmem:[#allocation11 + $0x30] sm:$0xf] }
 0x3ba   :  { %1883 = vmatpush.bf16.msrb.mxu0 %v5945_v40  ;;  %v7674_v40 = vld [vmem:[#allocation10 + $0x2c] sm:$0xf]  ;;  %1928 = vmatpush.bf16.msrb.mxu3 %v6029_v39  ;;  %v6233_v39 = vor.u32 %v7764_v38, %v6232_v37 }
 0x3bb   :  { %1897 = vmatpush.bf16.msrb.mxu1 %v6073_v46  ;;  %v5881_v46 = vor.u32 %v7676_v36, %v5880_v33 }
 0x3bc   :  { %1913 = vmatpush.bf16.msrb.mxu2 %v5917_v19  ;;  %v8524_v19 = vld [vmem:[%s9141_s6] sm:$0xff] }
 0x3be   :  { %1884 = vmatpush.bf16.msrb.mxu0 %v5929_v8  ;;  %v5994_v8 = vld [vmem:[#allocation10 + $0x118] sm:$0xf0] }
 0x3bf   :  { %1898 = vmatpush.bf16.msrb.mxu1 %v6057_v9  ;;  %v5997_v13 = vor.u32 %v7702_v1, %v5994_v8  ;;  %v6208_v8 = vld [vmem:[#allocation11 + $0xc0] sm:$0xf] }
 0x3c0   :  { %1914 = vmatpush.bf16.msrb.mxu2 %v5901_v35  ;;  %v7746_v35 = vld [vmem:[#allocation11 + $0x64] sm:$0xf0] }
 0x3c2   :  { %1885 = vmatpush.bf16.msrb.mxu0 %v5913_v14 }
 0x3c3   :  { %1899 = vmatpush.bf16.msrb.mxu1 %v6041_v18 }
 0x3c6   :  { %1886 = vmatpush.bf16.msrb.mxu0 %v5897_v30 }
 0x3c7   :  { %1900 = vmatpush.bf16.msrb.mxu1 %v6025_v31 }
 0x3ca   :  { %1887 = vmatpush.bf16.msrb.mxu0 %v5881_v46 }
 0x3cb   :  { %1901 = vmatpush.bf16.msrb.mxu1 %v6009_v47  ;;  %v6144_v47 = vld [vmem:[#allocation11 + $0x40] sm:$0xf] }
 0x3cc   :  { %v6145_v52 = vor.u32 %v7742_v51, %v6144_v47  ;;  %v7772_v47 = vld [vmem:[#allocation11 + $0x134] sm:$0xf0] }
 0x3ce   :  { %1888 = vmatpush.bf16.msrb.mxu0 %v5865_v10 }
 0x3cf   :  { %1902 = vmatpush.bf16.msrb.mxu1 %v5993_v3  ;;  %v6128_v3 = vld [vmem:[#allocation11 + $0x20] sm:$0xf] }
 0x40d   :  { %v1391_v44 = vpop.xlane.xlu1 %1390 }
 0x40e   :  { %v1395_v54 = vmul.f32 %v1391_v44, %v8488_v60  ;;  %v6010_v44 = vld [vmem:[#allocation10 + $0x138] sm:$0xf0] }
 0x40f   :  { %v6013_v61 = vor.u32 %v7706_v42, %v6010_v44  ;;  %v6224_v42 = vld [vmem:[#allocation11 + $0xe0] sm:$0xf]  ;;  %v7762_v44 = vld [vmem:[#allocation11 + $0xe4] sm:$0xf0] }
 0x410   :  { %v8509_v7 = vadd.f32 1e-12, %v1395_v54  ;;  %v5885_v54 = vor.u32 %v7674_v40, %v5882_v41  ;;  %v6152_v40 = vld [vmem:[#allocation11 + $0x50] sm:$0xf]  ;;  %v7744_v41 = vld [vmem:[#allocation11 + $0x54] sm:$0xf0]  ;;  %v6225_v46 = vor.u32 %v7762_v44, %v6224_v42 }
 0x411   :  { %1929 = vmatpush.bf16.msrb.mxu3 %v6013_v61  ;;  %v7740_v61 = vld [vmem:[#allocation11 + $0x34] sm:$0xf0] }
 0x412   :  { %8117 = vrsqrt.f32 %v8509_v7  ;;  %1915 = vmatpush.bf16.msrb.mxu2 %v5885_v54  ;;  %vm1405_vm4 = vweird.f32 %v8509_v7  ;;  %v7760_v54 = vld [vmem:[#allocation11 + $0xd4] sm:$0xf0]  ;;  %v6137_v2 = vor.u32 %v7740_v61, %v6136_v59  ;;  %v7750_v59 = vld [vmem:[#allocation11 + $0x84] sm:$0xf0]  ;;  %v6336_v61 = vld [vmem:[#allocation11 + $0x1c0] sm:$0xf] }
 0x413   :  { %v7792_v42 = vld [vmem:[#allocation11 + $0x1d4] sm:$0xf0] }
 0x415   :  { %v1394_v17 = vpop.xlane.xlu2 %1393  ;;  %1930 = vmatpush.bf16.msrb.mxu3 %v5997_v13  ;;  %v7778_v13 = vld [vmem:[#allocation11 + $0x164] sm:$0xf0] }
 0x416   :  { %v1396_v21 = vmul.f32 %v1394_v17, %v8488_v60  ;;  %1916 = vmatpush.bf16.msrb.mxu2 %v5869_v43 }
 0x418   :  { %v8118_v28 = vpop.eup %8117  ;;  %v8513_v29 = vadd.f32 1e-12, %v1396_v21  ;;  %v1430_v21 = vperm.slane %v8530_v63, 5 }
 0x419   :  { %v1400_v34 = vmul.f32 %v8118_v28, %v8509_v7  ;;  %vm1406_vm3 = vweird.f32 %v8118_v28  ;;  %v1423_v7 = vperm.slane %v8524_v19, 4 }
 0x41a   :  { %8119 = vrsqrt.f32 %v8513_v29  ;;  %vm1407_vm5 = vmor %vm1405_vm4, %vm1406_vm3  ;;  %vm1415_vm7 = vweird.f32 %v8513_v29 }
 0x41b   :  { %v1401_v56 = vmul.f32 %v8118_v28, %v1400_v34  ;;  %v6160_v34 = vld [vmem:[#allocation11 + $0x60] sm:$0xf] }
 0x41c   :  { %v6161_v36 = vor.u32 %v7746_v35, %v6160_v34  ;;  %v7774_v34 = vld [vmem:[#allocation11 + $0x144] sm:$0xf0]  ;;  %v7747_v35 = vld [vmem:[#allocation11 + $0x74] sm:$0xf] }
 0x41d   :  { %v1402_v53 = vmul.f32 0.5, %v1401_v56  ;;  %v6153_v56 = vor.u32 %v7744_v41, %v6152_v40  ;;  %v7752_v40 = vld [vmem:[#allocation11 + $0x94] sm:$0xf0] }
 0x41f   :  { %v1403_v4 = vsub.f32 1.5, %v1402_v53  ;;  %v6216_v53 = vld [vmem:[#allocation11 + $0xd0] sm:$0xf] }
 0x420   :  { %v8120_v9 = vpop.eup %8119  ;;  %v6217_v55 = vor.u32 %v7760_v54, %v6216_v53  ;;  %v6162_v53 = vld [vmem:[#allocation11 + $0x68] sm:$0xf0] }
 0x421   :  { %v1404_v11 = vmul.f32 %v8118_v28, %v1403_v4  ;;  %v1410_v12 = vmul.f32 %v8120_v9, %v8513_v29  ;;  %vm1416_vm6 = vweird.f32 %v8120_v9  ;;  %v7780_v4 = vld [vmem:[#allocation11 + $0x174] sm:$0xf0] }
 0x422   :  { %vm1417_vm8 = vmor %vm1415_vm7, %vm1416_vm6  ;;  %v6297_v1 = vor.u32 %v7780_v4, %v6296_v0  ;;  %v7763_v4 = vld [vmem:[#allocation11 + $0xf4] sm:$0xf] }
 0x423   :  { %v1411_v14 = vmul.f32 %v8120_v9, %v1410_v12  ;;  %v1408_v62 = vsel %vm1407_vm5, %v8118_v28, %v1404_v11  ;;  %v7748_v28 = vld [vmem:[#allocation11 + $0x74] sm:$0xf0]  ;;  %v7738_v11 = vld [vmem:[#allocation11 + $0x24] sm:$0xf0]  ;;  %v6288_v12 = vld [vmem:[#allocation11 + $0x160] sm:$0xf] }
 0x424   :  { %v1419_v17 = vmul.f32 %v1408_v62, %v8491_v48  ;;  %v1420_v18 = vmul.f32 %v1408_v62, %v8493_v49  ;;  %v1429_v49 = vperm.slane %v8524_v19, 5  ;;  %v6129_v43 = vor.u32 %v7738_v11, %v6128_v3  ;;  %v6200_v62 = vld [vmem:[#allocation11 + $0xb0] sm:$0xf]  ;;  %v7770_v3 = vld [vmem:[#allocation11 + $0x124] sm:$0xf0] }
 0x425   :  { %v1412_v15 = vmul.f32 0.5, %v1411_v14  ;;  %v6289_v14 = vor.u32 %v7778_v13, %v6288_v12  ;;  %v1501_v11 = vperm.slane %v8524_v19, 1  ;;  %v6154_v13 = vld [vmem:[#allocation11 + $0x58] sm:$0xf0] }
 0x426   :  { %v1425_v23 = vmul.f32 %v1423_v7, %v1419_v17  ;;  %v1426_v24 = vmul.f32 %v1424_v20, %v1420_v18  ;;  %v7796_v18 = vld [vmem:[#allocation11 + $0x1f4] sm:$0xf0] }
 0x427   :  { %v1413_v16 = vsub.f32 1.5, %v1412_v15  ;;  %v7756_v15 = vld [vmem:[#allocation11 + $0xb4] sm:$0xf0] }
 0x428   :  { %v8538_v30 = vadd.f32 %v1429_v49, %v1425_v23  ;;  %v8542_v29 = vadd.f32 %v1430_v21, %v1426_v24  ;;  %v6201_v17 = vor.u32 %v7756_v15, %v6200_v62  ;;  %v7754_v23 = vld [vmem:[#allocation11 + $0xa4] sm:$0xf0]  ;;  %v6352_v24 = vld [vmem:[#allocation11 + $0x1e0] sm:$0xf]  ;;  %v6328_v62 = vld [vmem:[#allocation11 + $0x1b0] sm:$0xf] }
 0x429   :  { %v1414_v5 = vmul.f32 %v8120_v9, %v1413_v16  ;;  %v6360_v16 = vld [vmem:[#allocation11 + $0x1f0] sm:$0xf]  ;;  %v7788_v15 = vld [vmem:[#allocation11 + $0x1b4] sm:$0xf0] }
 0x42b   :  { %v1418_v48 = vsel %vm1417_vm8, %v8120_v9, %v1414_v5  ;;  %v7758_v9 = vld [vmem:[#allocation11 + $0xc4] sm:$0xf0]  ;;  %v7736_v5 = vld [vmem:[#allocation11 + $0x14] sm:$0xf0] }
 0x42c   :  { %v1421_v22 = vmul.f32 %v1418_v48, %v8500_v57  ;;  %v1422_v6 = vmul.f32 %v1418_v48, %v8502_v58  ;;  %v6169_v58 = vor.u32 %v7748_v28, %v6168_v27  ;;  %v6209_v10 = vor.u32 %v7758_v9, %v6208_v8  ;;  %v6112_v28 = vld [vmem:[#allocation11] sm:$0xf] }
 0x42e   :  { %v1427_v25 = vmul.f32 %v1423_v7, %v1421_v22  ;;  %v1428_v26 = vmul.f32 %v1424_v20, %v1422_v6  ;;  %v6361_v7 = vor.u32 %v7796_v18, %v6360_v16  ;;  %v6120_v20 = vld [vmem:[#allocation11 + $0x10] sm:$0xf]  ;;  %v6192_v6 = vld [vmem:[#allocation11 + $0xa0] sm:$0xf]  ;;  %v6329_v16 = vor.u32 %v7788_v15, %v6328_v62  ;;  %v6226_v18 = vld [vmem:[#allocation11 + $0xe8] sm:$0xf0] }
 0x42f   :  { %v6121_v48 = vor.u32 %v7736_v5, %v6120_v20 }
 0x430   :  { %v8540_v31 = vadd.f32 %v1429_v49, %v1427_v25  ;;  %v8544_v32 = vadd.f32 %v1430_v21, %v1428_v26  ;;  %v6280_v49 = vld [vmem:[#allocation11 + $0x150] sm:$0xf]  ;;  %v7776_v21 = vld [vmem:[#allocation11 + $0x154] sm:$0xf0]  ;;  %v6193_v25 = vor.u32 %v7754_v23, %v6192_v6  ;;  %v7794_v26 = vld [vmem:[#allocation11 + $0x1e4] sm:$0xf0] }
 0x431   :  { %v6281_v22 = vor.u32 %v7776_v21, %v6280_v49  ;;  %v6353_v27 = vor.u32 %v7794_v26, %v6352_v24  ;;  %v7768_v49 = vld [vmem:[#allocation11 + $0x114] sm:$0xf0]  ;;  %v7741_v6 = vld [vmem:[#allocation11 + $0x44] sm:$0xf]  ;;  %v6146_v23 = vld [vmem:[#allocation11 + $0x48] sm:$0xf0] }
 0x432   :  { %v1435_v33 = vpack.c.bf16 %v8540_v31, %v8538_v30  ;;  %v1436_v57 = vpack.c.bf16 %v8544_v32, %v8542_v29  ;;  %v6149_v24 = vor.u32 %v7741_v6, %v6146_v23  ;;  %v7786_v26 = vld [vmem:[#allocation11 + $0x1a4] sm:$0xf0] }
 0x434   :  { %1833 = vmatmul.bf16.vlgmr.msra.gmra.mxu0 %v1435_v33  ;;  %1847 = vmatmul.bf16.vlgmr.msra.gmra.mxu1 %v1436_v57 }
 0x435   :  { %1861 = vmatmul.bf16.vlgmr.msra.gmra.mxu2 %v1435_v33  ;;  %1875 = vmatmul.bf16.vlgmr.msra.gmra.mxu3 %v1436_v57 }
 0x436   :  { %2399 = vmatpush.bf16.msra.mxu0 %v6169_v58  ;;  %2413 = vmatpush.bf16.msra.mxu1 %v6233_v39  ;;  %v6184_v39 = vld [vmem:[#allocation11 + $0x90] sm:$0xf] }
 0x437   :  { %2427 = vmatpush.bf16.msra.mxu2 %v6297_v1  ;;  %2441 = vmatpush.bf16.msra.mxu3 %v6361_v7  ;;  %v6185_v41 = vor.u32 %v7752_v40, %v6184_v39  ;;  %v6234_v1 = vld [vmem:[#allocation11 + $0xf8] sm:$0xf0]  ;;  %v7739_v39 = vld [vmem:[#allocation11 + $0x34] sm:$0xf] }
 0x438   :  { %v6237_v9 = vor.u32 %v7763_v4, %v6234_v1  ;;  %v6138_v40 = vld [vmem:[#allocation11 + $0x38] sm:$0xf0] }
 0x43a   :  { %2400 = vmatpush.bf16.msra.mxu0 %v6161_v36  ;;  %2414 = vmatpush.bf16.msra.mxu1 %v6225_v46  ;;  %v6170_v36 = vld [vmem:[#allocation11 + $0x78] sm:$0xf0]  ;;  %v6264_v46 = vld [vmem:[#allocation11 + $0x130] sm:$0xf] }
 0x43b   :  { %2428 = vmatpush.bf16.msra.mxu2 %v6289_v14  ;;  %2442 = vmatpush.bf16.msra.mxu3 %v6353_v27  ;;  %v6173_v38 = vor.u32 %v7747_v35, %v6170_v36  ;;  %v6265_v51 = vor.u32 %v7772_v47, %v6264_v46  ;;  %v6240_v35 = vld [vmem:[#allocation11 + $0x100] sm:$0xf]  ;;  %v7766_v36 = vld [vmem:[#allocation11 + $0x104] sm:$0xf0]  ;;  %v7784_v46 = vld [vmem:[#allocation11 + $0x194] sm:$0xf0] }
 0x43e   :  { %2401 = vmatpush.bf16.msra.mxu0 %v6153_v56  ;;  %2415 = vmatpush.bf16.msra.mxu1 %v6217_v55  ;;  %v6344_v56 = vld [vmem:[#allocation11 + $0x1d0] sm:$0xf]  ;;  %v6176_v55 = vld [vmem:[#allocation11 + $0x80] sm:$0xf] }
 0x43f   :  { %2429 = vmatpush.bf16.msra.mxu2 %v6281_v22  ;;  %v6345_v44 = vor.u32 %v7792_v42, %v6344_v56  ;;  %v6177_v0 = vor.u32 %v7750_v59, %v6176_v55  ;;  %v6141_v56 = vor.u32 %v7739_v39, %v6138_v40  ;;  %v6298_v42 = vld [vmem:[#allocation11 + $0x178] sm:$0xf0]  ;;  %v7757_v55 = vld [vmem:[#allocation11 + $0xc4] sm:$0xf]  ;;  %v6210_v59 = vld [vmem:[#allocation11 + $0xc8] sm:$0xf0] }
 0x440   :  { %v6213_v4 = vor.u32 %v7757_v55, %v6210_v59  ;;  %v7753_v39 = vld [vmem:[#allocation11 + $0xa4] sm:$0xf]  ;;  %v6194_v40 = vld [vmem:[#allocation11 + $0xa8] sm:$0xf0] }
 0x441   :  { %2443 = vmatpush.bf16.msra.mxu3 %v6345_v44  ;;  %v6312_v44 = vld [vmem:[#allocation11 + $0x190] sm:$0xf] }
 0x442   :  { %2402 = vmatpush.bf16.msra.mxu0 %v6145_v52  ;;  %2416 = vmatpush.bf16.msra.mxu1 %v6209_v10  ;;  %v7745_v52 = vld [vmem:[#allocation11 + $0x64] sm:$0xf]  ;;  %v6256_v10 = vld [vmem:[#allocation11 + $0x120] sm:$0xf] }
 0x443   :  { %v6165_v54 = vor.u32 %v7745_v52, %v6162_v53  ;;  %v6257_v12 = vor.u32 %v7770_v3, %v6256_v10  ;;  %v6130_v10 = vld [vmem:[#allocation11 + $0x28] sm:$0xf0] }
 0x444   :  { %1889 = vmatmul.bf16.vlgmr.msrb.gmra.mxu0 %v1435_v33  ;;  %1903 = vmatmul.bf16.vlgmr.msrb.gmra.mxu1 %v1436_v57 }
 0x445   :  { %1917 = vmatmul.bf16.vlgmr.msrb.gmra.mxu2 %v1435_v33  ;;  %1931 = vmatmul.bf16.vlgmr.msrb.gmra.mxu3 %v1436_v57  ;;  %v7734_v33 = vld [vmem:[#allocation11 + $0x4] sm:$0xf0]  ;;  %v6272_v57 = vld [vmem:[#allocation11 + $0x140] sm:$0xf] }
 0x446   :  { %2403 = vmatpush.bf16.msra.mxu0 %v6137_v2  ;;  %2417 = vmatpush.bf16.msra.mxu1 %v6201_v17  ;;  %v6113_v58 = vor.u32 %v7734_v33, %v6112_v28  ;;  %v6273_v37 = vor.u32 %v7774_v34, %v6272_v57  ;;  %v7790_v2 = vld [vmem:[#allocation11 + $0x1c4] sm:$0xf0]  ;;  %v7761_v17 = vld [vmem:[#allocation11 + $0xe4] sm:$0xf]  ;;  %v7759_v33 = vld [vmem:[#allocation11 + $0xd4] sm:$0xf] }
 0x447   :  { %v6337_v8 = vor.u32 %v7790_v2, %v6336_v61  ;;  %v6229_v5 = vor.u32 %v7761_v17, %v6226_v18  ;;  %v6218_v57 = vld [vmem:[#allocation11 + $0xd8] sm:$0xf0]  ;;  %v7782_v17 = vld [vmem:[#allocation11 + $0x184] sm:$0xf0]  ;;  %v7755_v18 = vld [vmem:[#allocation11 + $0xb4] sm:$0xf] }
 0x448   :  { %2430 = vmatpush.bf16.msra.mxu2 %v6273_v37  ;;  %v6221_v34 = vor.u32 %v7759_v33, %v6218_v57  ;;  %v7775_v57 = vld [vmem:[#allocation11 + $0x154] sm:$0xf] }
 0x449   :  { %2444 = vmatpush.bf16.msra.mxu3 %v6337_v8 }
 0x44a   :  { %2404 = vmatpush.bf16.msra.mxu0 %v6129_v43  ;;  %2418 = vmatpush.bf16.msra.mxu1 %v6193_v25  ;;  %v7743_v43 = vld [vmem:[#allocation11 + $0x54] sm:$0xf]  ;;  %v6320_v25 = vld [vmem:[#allocation11 + $0x1a0] sm:$0xf] }
 0x44b   :  { %v6157_v14 = vor.u32 %v7743_v43, %v6154_v13  ;;  %v6321_v28 = vor.u32 %v7786_v26, %v6320_v25  ;;  %v7777_v43 = vld [vmem:[#allocation11 + $0x164] sm:$0xf]  ;;  %v6290_v13 = vld [vmem:[#allocation11 + $0x168] sm:$0xf0]  ;;  %v7735_v25 = vld [vmem:[#allocation11 + $0x14] sm:$0xf] }
 0x44c   :  { %2431 = vmatpush.bf16.msra.mxu2 %v6265_v51  ;;  %v6122_v26 = vld [vmem:[#allocation11 + $0x18] sm:$0xf0] }
 0x44d   :  { %2445 = vmatpush.bf16.msra.mxu3 %v6329_v16  ;;  %v6293_v16 = vor.u32 %v7777_v43, %v6290_v13  ;;  %v6125_v33 = vor.u32 %v7735_v25, %v6122_v26  ;;  %v6186_v13 = vld [vmem:[#allocation11 + $0x98] sm:$0xf0] }
 0x44e   :  { %2405 = vmatpush.bf16.msra.mxu0 %v6121_v48  ;;  %2419 = vmatpush.bf16.msra.mxu1 %v6185_v41  ;;  %v6248_v48 = vld [vmem:[#allocation11 + $0x110] sm:$0xf]  ;;  %v7779_v41 = vld [vmem:[#allocation11 + $0x174] sm:$0xf] }
 0x44f   :  { %v6249_v22 = vor.u32 %v7768_v49, %v6248_v48  ;;  %v6301_v53 = vor.u32 %v7779_v41, %v6298_v42  ;;  %v7793_v41 = vld [vmem:[#allocation11 + $0x1e4] sm:$0xf] }
 0x450   :  { %2432 = vmatpush.bf16.msra.mxu2 %v6257_v12 }
 0x451   :  { %2446 = vmatpush.bf16.msra.mxu3 %v6321_v28 }
 0x452   :  { %2406 = vmatpush.bf16.msra.mxu0 %v6113_v58  ;;  %2420 = vmatpush.bf16.msra.mxu1 %v6177_v0  ;;  %v1502_v58 = vperm.slane %v8530_v63, 1 }
 0x454   :  { %2433 = vmatpush.bf16.msra.mxu2 %v6249_v22  ;;  %v6362_v22 = vld [vmem:[#allocation11 + $0x1f8] sm:$0xf0] }
 0x456   :  { %2455 = vmatpush.bf16.msrb.mxu0 %v6173_v38  ;;  %2469 = vmatpush.bf16.msrb.mxu1 %v6237_v9  ;;  %v6241_v38 = vor.u32 %v7766_v36, %v6240_v35  ;;  %v7737_v9 = vld [vmem:[#allocation11 + $0x24] sm:$0xf] }
 0x457   :  { %v6133_v12 = vor.u32 %v7737_v9, %v6130_v10  ;;  %v7751_v9 = vld [vmem:[#allocation11 + $0x94] sm:$0xf] }
 0x458   :  { %2434 = vmatpush.bf16.msra.mxu2 %v6241_v38 }
 0x45a   :  { %2456 = vmatpush.bf16.msrb.mxu0 %v6165_v54  ;;  %2470 = vmatpush.bf16.msrb.mxu1 %v6229_v5  ;;  %v6313_v54 = vor.u32 %v7784_v46, %v6312_v44 }
 0x45c   :  { %2483 = vmatpush.bf16.msrb.mxu2 %v6301_v53  ;;  %2447 = vmatpush.bf16.msra.mxu3 %v6313_v54  ;;  %v6354_v53 = vld [vmem:[#allocation11 + $0x1e8] sm:$0xf0] }
 0x45d   :  { %v6357_v59 = vor.u32 %v7793_v41, %v6354_v53  ;;  %v6258_v41 = vld [vmem:[#allocation11 + $0x128] sm:$0xf0] }
 0x45e   :  { %2457 = vmatpush.bf16.msrb.mxu0 %v6157_v14  ;;  %2471 = vmatpush.bf16.msrb.mxu1 %v6221_v34  ;;  %v6304_v14 = vld [vmem:[#allocation11 + $0x180] sm:$0xf]  ;;  %v6282_v34 = vld [vmem:[#allocation11 + $0x158] sm:$0xf0] }
 0x45f   :  { %v6305_v48 = vor.u32 %v7782_v17, %v6304_v14  ;;  %v6285_v38 = vor.u32 %v7775_v57, %v6282_v34  ;;  %v7791_v14 = vld [vmem:[#allocation11 + $0x1d4] sm:$0xf]  ;;  %v7789_v34 = vld [vmem:[#allocation11 + $0x1c4] sm:$0xf] }
 0x460   :  { %2484 = vmatpush.bf16.msrb.mxu2 %v6293_v16 }
 0x461   :  { %2448 = vmatpush.bf16.msra.mxu3 %v6305_v48 }
 0x462   :  { %2458 = vmatpush.bf16.msrb.mxu0 %v6149_v24  ;;  %2472 = vmatpush.bf16.msrb.mxu1 %v6213_v4 }
 0x464   :  { %2485 = vmatpush.bf16.msrb.mxu2 %v6285_v38 }
 0x466   :  { %2459 = vmatpush.bf16.msrb.mxu0 %v6141_v56 }
 0x46a   :  { %2460 = vmatpush.bf16.msrb.mxu0 %v6133_v12 }
 0x46e   :  { %2461 = vmatpush.bf16.msrb.mxu0 %v6125_v33 }
 0x4b1   :  { %v1834_v7 = vpop.f32.mrf.mxu0  ;;  %v1848_v20 = vpop.f32.mrf.mxu1 }
 0x4b2   :  { %v1835_v21 = vadd.f32 %v1834_v7, %v1501_v11  ;;  %v6202_v7 = vld [vmem:[#allocation11 + $0xb8] sm:$0xf0] }
 0x4b3   :  { %v6205_v49 = vor.u32 %v7755_v18, %v6202_v7  ;;  %v6189_v18 = vor.u32 %v7751_v9, %v6186_v13 }
 0x4b4   :  { %v8553_v27 = vadd.f32 %v1848_v20, %v1835_v21  ;;  %v8573_v20 = vld [vmem:[%s9141_s6 + $0x10] sm:$0xff] }
 0x4b5   :  { %v1503_v5 = vperm.slane %v8573_v20, 1  ;;  %v7795_v21 = vld [vmem:[#allocation11 + $0x1f4] sm:$0xf]  ;;  %2473 = vmatpush.bf16.msrb.mxu1 %v6205_v49 }
 0x4b6   :  { %v1937_v37 = vmul.f32 %v8553_v27, %v8553_v27  ;;  %v6365_v24 = vor.u32 %v7795_v21, %v6362_v22  ;;  %v7771_v49 = vld [vmem:[#allocation11 + $0x134] sm:$0xf]  ;;  %v6266_v21 = vld [vmem:[#allocation11 + $0x138] sm:$0xf0] }
 0x4b8   :  { %v1945_v47 = vmul.f32 %v1937_v37, %v8553_v27  ;;  %v1862_v51 = vpop.f32.mrf.mxu2  ;;  %v1876_v52 = vpop.f32.mrf.mxu3  ;;  %2497 = vmatpush.bf16.msrb.mxu3 %v6365_v24  ;;  %v6178_v24 = vld [vmem:[#allocation11 + $0x88] sm:$0xf0] }
 0x4b9   :  { %v1863_v61 = vadd.f32 %v1862_v51, %v1502_v58  ;;  %v1836_v0 = vpop.f32.mrf.mxu0  ;;  %v1850_v2 = vpop.f32.mrf.mxu1 }
 0x4ba   :  { %v1953_v1 = vmul.f32 0.044715, %v1945_v47  ;;  %v1837_v8 = vadd.f32 %v1836_v0, %v1501_v11  ;;  %v8585_v47 = vld [vmem:[%s9141_s6 + $0x18] sm:$0xff] }
 0x4bb   :  { %v8563_v3 = vadd.f32 %v1876_v52, %v1863_v61  ;;  %v1504_v51 = vperm.slane %v8585_v47, 1  ;;  %v6197_v52 = vor.u32 %v7753_v39, %v6194_v40  ;;  %v6114_v61 = vld [vmem:[#allocation11 + $0x8] sm:$0xf0] }
 0x4bc   :  { %v1961_v62 = vadd.f32 %v1953_v1, %v8553_v27  ;;  %v8566_v15 = vadd.f32 %v1850_v2, %v1837_v8  ;;  %v7773_v1 = vld [vmem:[#allocation11 + $0x144] sm:$0xf]  ;;  %v6274_v8 = vld [vmem:[#allocation11 + $0x148] sm:$0xf0]  ;;  %2498 = vmatpush.bf16.msrb.mxu3 %v6357_v59 }
 0x4bd   :  { %v1938_v11 = vmul.f32 %v8563_v3, %v8563_v3  ;;  %2474 = vmatpush.bf16.msrb.mxu1 %v6197_v52  ;;  %v6277_v43 = vor.u32 %v7773_v1, %v6274_v8 }
 0x4be   :  { %v1969_v6 = vmul.f32 0.7978846, %v1961_v62  ;;  %v1941_v23 = vmul.f32 %v8566_v15, %v8566_v15  ;;  %v6346_v62 = vld [vmem:[#allocation11 + $0x1d8] sm:$0xf0] }
 0x4bf   :  { %v1946_v28 = vmul.f32 %v1938_v11, %v8563_v3  ;;  %v6349_v7 = vor.u32 %v7791_v14, %v6346_v62  ;;  %2486 = vmatpush.bf16.msrb.mxu2 %v6277_v43  ;;  %v6250_v62 = vld [vmem:[#allocation11 + $0x118] sm:$0xf0] }
 0x4c0   :  { %v1949_v35 = vmul.f32 %v1941_v23, %v8566_v15  ;;  %v1864_v36 = vpop.f32.mrf.mxu2  ;;  %v1878_v37 = vpop.f32.mrf.mxu3  ;;  %8121 = vtanh.f32 %v1969_v6  ;;  %v6269_v6 = vor.u32 %v7771_v49, %v6266_v21  ;;  %v7749_v23 = vld [vmem:[#allocation11 + $0x84] sm:$0xf] }
 0x4c1   :  { %v1954_v56 = vmul.f32 0.044715, %v1946_v28  ;;  %v1865_v42 = vadd.f32 %v1864_v36, %v1502_v58  ;;  %v1890_v44 = vpop.f32.mrf.mxu0  ;;  %v1904_v46 = vpop.f32.mrf.mxu1  ;;  %v7733_v58 = vld [vmem:[#allocation11 + $0x4] sm:$0xf]  ;;  %2475 = vmatpush.bf16.msrb.mxu1 %v6189_v18  ;;  %2499 = vmatpush.bf16.msrb.mxu3 %v6349_v7  ;;  %v6181_v57 = vor.u32 %v7749_v23, %v6178_v24  ;;  %v6242_v24 = vld [vmem:[#allocation11 + $0x108] sm:$0xf0] }
 0x4c2   :  { %v1957_v54 = vmul.f32 0.044715, %v1949_v35  ;;  %v1891_v55 = vadd.f32 %v1890_v44, %v1503_v5  ;;  %v6117_v4 = vor.u32 %v7733_v58, %v6114_v61  ;;  %v6338_v35 = vld [vmem:[#allocation11 + $0x1c8] sm:$0xf0]  ;;  %v7769_v36 = vld [vmem:[#allocation11 + $0x124] sm:$0xf] }
 0x4c3   :  { %v1962_v0 = vadd.f32 %v1954_v56, %v8563_v3  ;;  %v8591_v2 = vadd.f32 %v1878_v37, %v1865_v42  ;;  %v6341_v40 = vor.u32 %v7789_v34, %v6338_v35  ;;  %2487 = vmatpush.bf16.msrb.mxu2 %v6269_v6  ;;  %v6261_v44 = vor.u32 %v7769_v36, %v6258_v41  ;;  %v7787_v58 = vld [vmem:[#allocation11 + $0x1b4] sm:$0xf]  ;;  %v6330_v61 = vld [vmem:[#allocation11 + $0x1b8] sm:$0xf0]  ;;  %v7765_v49 = vld [vmem:[#allocation11 + $0x104] sm:$0xf] }
 0x4c4   :  { %v1965_v10 = vadd.f32 %v1957_v54, %v8566_v15  ;;  %v8594_v12 = vadd.f32 %v1904_v46, %v1891_v55  ;;  %2462 = vmatpush.bf16.msrb.mxu0 %v6117_v4 }
 0x4c5   :  { %v1970_v16 = vmul.f32 0.7978846, %v1962_v0  ;;  %v1942_v17 = vmul.f32 %v8591_v2, %v8591_v2  ;;  %2476 = vmatpush.bf16.msrb.mxu1 %v6181_v57  ;;  %2500 = vmatpush.bf16.msrb.mxu3 %v6341_v40  ;;  %v6314_v57 = vld [vmem:[#allocation11 + $0x198] sm:$0xf0] }
 0x4c6   :  { %v1973_v11 = vmul.f32 0.7978846, %v1965_v10  ;;  %v1939_v48 = vmul.f32 %v8594_v12, %v8594_v12  ;;  %v8122_v25 = vpop.eup %8121  ;;  %v7767_v10 = vld [vmem:[#allocation11 + $0x114] sm:$0xf] }
 0x4c7   :  { %8123 = vtanh.f32 %v1970_v16  ;;  %v1950_v22 = vmul.f32 %v1942_v17, %v8591_v2  ;;  %v1985_v46 = vadd.f32 1.0, %v8122_v25  ;;  %2488 = vmatpush.bf16.msrb.mxu2 %v6261_v44  ;;  %v7785_v16 = vld [vmem:[#allocation11 + $0x1a4] sm:$0xf] }
 0x4c8   :  { %8125 = vtanh.f32 %v1973_v11  ;;  %v1947_v26 = vmul.f32 %v1939_v48, %v8594_v12  ;;  %v1918_v28 = vpop.f32.mrf.mxu2  ;;  %v1932_v33 = vpop.f32.mrf.mxu3  ;;  %v6253_v11 = vor.u32 %v7767_v10, %v6250_v62  ;;  %v6322_v48 = vld [vmem:[#allocation11 + $0x1a8] sm:$0xf0] }
 0x4c9   :  { %v1958_v37 = vmul.f32 0.044715, %v1950_v22  ;;  %v1919_v38 = vadd.f32 %v1918_v28, %v1504_v51  ;;  %v1892_v39 = vpop.f32.mrf.mxu0  ;;  %v1906_v54 = vpop.f32.mrf.mxu1  ;;  %v1993_v43 = vmul.f32 0.5, %v1985_v46  ;;  %v6325_v23 = vor.u32 %v7785_v16, %v6322_v48 }
 0x4ca   :  { %v1955_v56 = vmul.f32 0.044715, %v1947_v26  ;;  %v1893_v42 = vadd.f32 %v1892_v39, %v1503_v5  ;;  %v6333_v5 = vor.u32 %v7787_v58, %v6330_v61  ;;  %v6245_v28 = vor.u32 %v7765_v49, %v6242_v24 }
 0x4cb   :  { %v1966_v52 = vadd.f32 %v1958_v37, %v8591_v2  ;;  %v8607_v53 = vadd.f32 %v1932_v33, %v1919_v38  ;;  %2489 = vmatpush.bf16.msrb.mxu2 %v6253_v11  ;;  %v7783_v33 = vld [vmem:[#allocation11 + $0x194] sm:$0xf]  ;;  %v2001_v34 = vmul.f32 %v1993_v43, %v8553_v27  ;;  %v7781_v27 = vld [vmem:[#allocation11 + $0x184] sm:$0xf] }
 0x4cc   :  { %v1963_v55 = vadd.f32 %v1955_v56, %v8594_v12  ;;  %v8610_v59 = vadd.f32 %v1906_v54, %v1893_v42  ;;  %2501 = vmatpush.bf16.msrb.mxu3 %v6333_v5 }
 0x4cd   :  { %v8124_v0 = vpop.eup %8123  ;;  %v1974_v4 = vmul.f32 0.7978846, %v1966_v52  ;;  %v1940_v20 = vmul.f32 %v8607_v53, %v8607_v53  ;;  %v6306_v52 = vld [vmem:[#allocation11 + $0x188] sm:$0xf0] }
 0x4ce   :  { %v8126_v1 = vpop.eup %8125  ;;  %v1971_v8 = vmul.f32 0.7978846, %v1963_v55  ;;  %v1943_v9 = vmul.f32 %v8610_v59, %v8610_v59  ;;  %v1986_v17 = vadd.f32 1.0, %v8124_v0 }
 0x4cf   :  { %8127 = vtanh.f32 %v1974_v4  ;;  %v1948_v13 = vmul.f32 %v1940_v20, %v8607_v53  ;;  %v1989_v14 = vadd.f32 1.0, %v8126_v1  ;;  %2490 = vmatpush.bf16.msrb.mxu2 %v6245_v28  ;;  %v2078_v28 = vperm.slane %v8530_v63, 3 }
 0x4d0   :  { %v1951_v18 = vmul.f32 %v1943_v9, %v8610_v59  ;;  %v1920_v7 = vpop.f32.mrf.mxu2  ;;  %8129 = vtanh.f32 %v1971_v8  ;;  %v1934_v26 = vpop.f32.mrf.mxu3  ;;  %2502 = vmatpush.bf16.msrb.mxu3 %v6325_v23  ;;  %v1994_v56 = vmul.f32 0.5, %v1986_v17 }
 0x4d1   :  { %v1956_v21 = vmul.f32 0.044715, %v1948_v13  ;;  %v1921_v22 = vadd.f32 %v1920_v7, %v1504_v51  ;;  %v1997_v6 = vmul.f32 0.5, %v1989_v14  ;;  %v6317_v51 = vor.u32 %v7783_v33, %v6314_v57 }
 0x4d2   :  { %v1959_v25 = vmul.f32 0.044715, %v1951_v18  ;;  %v2002_v61 = vmul.f32 %v1994_v56, %v8563_v3 }
 0x4d3   :  { %v1964_v35 = vadd.f32 %v1956_v21, %v8607_v53  ;;  %v1935_v36 = vadd.f32 %v1934_v26, %v1921_v22  ;;  %v2005_v37 = vmul.f32 %v1997_v6, %v8566_v15  ;;  %v6309_v15 = vor.u32 %v7781_v27, %v6306_v52 }
 0x4d4   :  { %v1967_v47 = vadd.f32 %v1959_v25, %v8610_v59  ;;  %2503 = vmatpush.bf16.msrb.mxu3 %v6317_v51  ;;  %v2077_v25 = vperm.slane %v8524_v19, 3 }
 0x4d5   :  { %v8128_v38 = vpop.eup %8127  ;;  %v1972_v39 = vmul.f32 0.7978846, %v1964_v35  ;;  %v1944_v40 = vmul.f32 %v1935_v36, %v1935_v36  ;;  %v2009_v41 = vpack.c.bf16 %v2005_v37, %v2001_v34 }
 0x4d6   :  { %v1975_v42 = vmul.f32 0.7978846, %v1967_v47  ;;  %v1990_v44 = vadd.f32 1.0, %v8128_v38  ;;  %v8130_v54 = vpop.eup %8129 }
 0x4d7   :  { %v1952_v46 = vmul.f32 %v1944_v40, %v1935_v36  ;;  %2407 = vmatmul.bf16.vlgmr.msra.gmra.mxu0 %v2009_v41  ;;  %v1987_v4 = vadd.f32 1.0, %v8130_v54 }
 0x4d8   :  { %8131 = vtanh.f32 %v1975_v42  ;;  %v1998_v55 = vmul.f32 0.5, %v1990_v44  ;;  %2504 = vmatpush.bf16.msrb.mxu3 %v6309_v15 }
 0x4d9   :  { %8133 = vtanh.f32 %v1972_v39  ;;  %v1960_v58 = vmul.f32 0.044715, %v1952_v46  ;;  %v1995_v10 = vmul.f32 0.5, %v1987_v4 }
 0x4da   :  { %v2006_v0 = vmul.f32 %v1998_v55, %v8591_v2 }
 0x4db   :  { %v1968_v20 = vadd.f32 %v1960_v58, %v1935_v36  ;;  %v2003_v62 = vmul.f32 %v1995_v10, %v8594_v12  ;;  %v7839_v10 = vld [vmem:[#allocation5 + $0x454] sm:$0xf] }
 0x4dc   :  { %v2010_v5 = vpack.c.bf16 %v2006_v0, %v2002_v61 }
 0x4dd   :  { %v1976_v1 = vmul.f32 0.7978846, %v1968_v20  ;;  %v6542_v20 = vld [vmem:[#allocation5 + $0x450] sm:$0xf] }
 0x4de   :  { %v8132_v8 = vpop.eup %8131  ;;  %2421 = vmatmul.bf16.vlgmr.msra.gmra.mxu1 %v2010_v5 }
 0x4df   :  { %v8134_v9 = vpop.eup %8133  ;;  %8135 = vtanh.f32 %v1976_v1  ;;  %v1991_v43 = vadd.f32 1.0, %v8132_v8  ;;  %v6734_v1 = vld [vmem:[#allocation5 + $0x5d0] sm:$0xf] }
 0x4e0   :  { %v1988_v14 = vadd.f32 1.0, %v8134_v9  ;;  %v7890_v9 = vld [vmem:[#allocation5 + $0x5e4] sm:$0xf0] }
 0x4e1   :  { %v1999_v13 = vmul.f32 0.5, %v1991_v43  ;;  %v6544_v43 = vld [vmem:[#allocation5 + $0x468] sm:$0xf0] }
 0x4e2   :  { %v1996_v2 = vmul.f32 0.5, %v1988_v14  ;;  %v6547_v14 = vor.u32 %v7839_v10, %v6544_v43 }
 0x4e3   :  { %v2007_v16 = vmul.f32 %v1999_v13, %v8610_v59  ;;  %v6735_v13 = vor.u32 %v7890_v9, %v6734_v1 }
 0x4e4   :  { %v2004_v11 = vmul.f32 %v1996_v2, %v8607_v53  ;;  %v7884_v2 = vld [vmem:[#allocation5 + $0x5b4] sm:$0xf0] }
 0x4e5   :  { %v8136_v3 = vpop.eup %8135  ;;  %v2011_v17 = vpack.c.bf16 %v2007_v16, %v2003_v62  ;;  %v7887_v62 = vld [vmem:[#allocation5 + $0x5d4] sm:$0xf]  ;;  %v6736_v16 = vld [vmem:[#allocation5 + $0x5e8] sm:$0xf0]  ;;  %3183 = vmatpush.bf16.msra.mxu1 %v6735_v13 }
 0x4e6   :  { %v1992_v18 = vadd.f32 1.0, %v8136_v3  ;;  %v6739_v3 = vor.u32 %v7887_v62, %v6736_v16 }
 0x4e7   :  { %2435 = vmatmul.bf16.vlgmr.msra.gmra.mxu2 %v2011_v17  ;;  %2463 = vmatmul.bf16.vlgmr.msrb.gmra.mxu0 %v2009_v41 }
 0x4e8   :  { %v2000_v7 = vmul.f32 0.5, %v1992_v18  ;;  %3197 = vmatpush.bf16.msra.mxu2 %v6547_v14 }
 0x4ea   :  { %v2008_v48 = vmul.f32 %v2000_v7, %v1935_v36 }
 0x4ec   :  { %v2012_v49 = vpack.c.bf16 %v2008_v48, %v2004_v11  ;;  %v7833_v11 = vld [vmem:[#allocation5 + $0x424] sm:$0xf]  ;;  %v6520_v48 = vld [vmem:[#allocation5 + $0x438] sm:$0xf0] }
 0x4ee   :  { %2449 = vmatmul.bf16.vlgmr.msra.gmra.mxu3 %v2012_v49  ;;  %2477 = vmatmul.bf16.vlgmr.msrb.gmra.mxu1 %v2010_v5  ;;  %v7842_v5 = vld [vmem:[#allocation5 + $0x464] sm:$0xf0] }
 0x4ef   :  { %v6543_v8 = vor.u32 %v7842_v5, %v6542_v20  ;;  %3211 = vmatpush.bf16.msra.mxu3 %v6739_v3 }
 0x4f1   :  { %3169 = vmatpush.bf16.msra.mxu0 %v6543_v8 }
 0x4f7   :  { %2491 = vmatmul.bf16.vlgmr.msrb.gmra.mxu2 %v2011_v17  ;;  %v6710_v17 = vld [vmem:[#allocation5 + $0x5a0] sm:$0xf] }
 0x4f8   :  { %v6711_v7 = vor.u32 %v7884_v2, %v6710_v17  ;;  %v6422_v2 = vld [vmem:[#allocation5 + $0x360] sm:$0xf] }
 0x4fa   :  { %3184 = vmatpush.bf16.msra.mxu1 %v6711_v7  ;;  %v6614_v7 = vld [vmem:[#allocation5 + $0x4e0] sm:$0xf] }
 0x4fe   :  { %2505 = vmatmul.bf16.vlgmr.msrb.gmra.mxu3 %v2012_v49  ;;  %v7881_v49 = vld [vmem:[#allocation5 + $0x5a4] sm:$0xf] }
 0x554   :  { %v2408_v21 = vpop.f32.mrf.mxu0 }
 0x555   :  { %v2409_v57 = vadd.f32 %v2408_v21, %v2077_v25  ;;  %v6523_v21 = vor.u32 %v7833_v11, %v6520_v48  ;;  %v7860_v48 = vld [vmem:[#allocation5 + $0x4f4] sm:$0xf0] }
 0x557   :  { %3198 = vmatpush.bf16.msra.mxu2 %v6523_v21  ;;  %v6424_v21 = vld [vmem:[#allocation5 + $0x378] sm:$0xf0] }
 0x55b   :  { %v2422_v22 = vpop.f32.mrf.mxu1 }
 0x55c   :  { %v2410_v6 = vpop.f32.mrf.mxu0  ;;  %v2423_v35 = vadd.f32 %v2422_v22, %v2409_v57  ;;  %v6712_v22 = vld [vmem:[#allocation5 + $0x5b8] sm:$0xf0] }
 0x55d   :  { %v2411_v41 = vadd.f32 %v2410_v6, %v2077_v25  ;;  %v7830_v6 = vld [vmem:[#allocation5 + $0x404] sm:$0xf0]  ;;  %v7827_v25 = vld [vmem:[#allocation5 + $0x3f4] sm:$0xf] }
 0x563   :  { %v2424_v59 = vpop.f32.mrf.mxu1 }
 0x564   :  { %v2464_v26 = vpop.f32.mrf.mxu0  ;;  %v2425_v44 = vadd.f32 %v2424_v59, %v2411_v41  ;;  %v6715_v59 = vor.u32 %v7881_v49, %v6712_v22  ;;  %v6664_v41 = vld [vmem:[#allocation5 + $0x558] sm:$0xf0]  ;;  %v7809_v49 = vld [vmem:[#allocation5 + $0x364] sm:$0xf] }
 0x565   :  { %v2465_v36 = vadd.f32 %v2464_v26, %v2078_v28  ;;  %v6427_v22 = vor.u32 %v7809_v49, %v6424_v21  ;;  %v6694_v49 = vld [vmem:[#allocation5 + $0x578] sm:$0xf] }
 0x566   :  { %3212 = vmatpush.bf16.msra.mxu3 %v6715_v59  ;;  %v6398_v59 = vld [vmem:[#allocation5 + $0x330] sm:$0xf] }
 0x56a   :  { %v2436_v12 = vpop.f32.mrf.mxu2 }
 0x56b   :  { %v2478_v33 = vpop.f32.mrf.mxu1  ;;  %v2437_v37 = vadd.f32 %v2436_v12, %v2423_v35  ;;  %v6494_v12 = vld [vmem:[#allocation5 + $0x3f0] sm:$0xf]  ;;  %v6470_v35 = vld [vmem:[#allocation5 + $0x3c0] sm:$0xf] }
 0x56c   :  { %v2479_v47 = vadd.f32 %v2478_v33, %v2465_v36  ;;  %v2466_v39 = vpop.f32.mrf.mxu0  ;;  %v6495_v26 = vor.u32 %v7830_v6, %v6494_v12  ;;  %v7875_v33 = vld [vmem:[#allocation5 + $0x574] sm:$0xf]  ;;  %v7824_v36 = vld [vmem:[#allocation5 + $0x3d4] sm:$0xf0]  ;;  %v7857_v12 = vld [vmem:[#allocation5 + $0x4e4] sm:$0xf] }
 0x56d   :  { %v2467_v19 = vadd.f32 %v2466_v39, %v2078_v28  ;;  %v6496_v28 = vld [vmem:[#allocation5 + $0x408] sm:$0xf0]  ;;  %v6472_v39 = vld [vmem:[#allocation5 + $0x3d8] sm:$0xf0] }
 0x571   :  { %v2450_v23 = vpop.f32.mrf.mxu3 }
 0x572   :  { %v2438_v24 = vpop.f32.mrf.mxu2  ;;  %v2451_v51 = vadd.f32 %v2450_v23, %v2437_v37  ;;  %v6686_v23 = vld [vmem:[#allocation5 + $0x570] sm:$0xf]  ;;  %v6662_v37 = vld [vmem:[#allocation5 + $0x540] sm:$0xf] }
 0x573   :  { %v2480_v42 = vpop.f32.mrf.mxu1  ;;  %v2439_v52 = vadd.f32 %v2438_v24, %v2425_v44  ;;  %v7878_v24 = vld [vmem:[#allocation5 + $0x584] sm:$0xf0] }
 0x574   :  { %v8632_v46 = vadd.f32 %v2451_v51, %v8538_v30  ;;  %v2481_v54 = vadd.f32 %v2480_v42, %v2467_v19  ;;  %v6687_v57 = vor.u32 %v7878_v24, %v6686_v23  ;;  %v7872_v51 = vld [vmem:[#allocation5 + $0x554] sm:$0xf0]  ;;  %v6446_v19 = vld [vmem:[#allocation5 + $0x390] sm:$0xf]  ;;  %v7806_v23 = vld [vmem:[#allocation5 + $0x344] sm:$0xf0] }
 0x575   :  { %v6663_v42 = vor.u32 %v7872_v51, %v6662_v37  ;;  %v6590_v24 = vld [vmem:[#allocation5 + $0x4b0] sm:$0xf]  ;;  %v6374_v37 = vld [vmem:[#allocation5 + $0x300] sm:$0xf] }
 0x576   :  { %3185 = vmatpush.bf16.msra.mxu1 %v6687_v57  ;;  %v6566_v51 = vld [vmem:[#allocation5 + $0x480] sm:$0xf] }
 0x579   :  { %v2452_v53 = vpop.f32.mrf.mxu3 }
 0x57a   :  { %v2492_v34 = vpop.f32.mrf.mxu2  ;;  %v2453_v15 = vadd.f32 %v2452_v53, %v2439_v52  ;;  %v6688_v53 = vld [vmem:[#allocation5 + $0x588] sm:$0xf0]  ;;  %v6638_v52 = vld [vmem:[#allocation5 + $0x510] sm:$0xf]  ;;  %3186 = vmatpush.bf16.msra.mxu1 %v6663_v42 }
 0x57b   :  { %v2493_v38 = vadd.f32 %v2492_v34, %v2479_v47  ;;  %v6499_v34 = vor.u32 %v7827_v25, %v6496_v28  ;;  %v6691_v47 = vor.u32 %v7875_v33, %v6688_v53  ;;  %v6399_v25 = vor.u32 %v7806_v23, %v6398_v59  ;;  %v7803_v28 = vld [vmem:[#allocation5 + $0x334] sm:$0xf]  ;;  %v6400_v33 = vld [vmem:[#allocation5 + $0x348] sm:$0xf0]  ;;  %v7876_v59 = vld [vmem:[#allocation5 + $0x57c] sm:$0xf] }
 0x57c   :  { %v8643_v30 = vadd.f32 %v2453_v15, %v8540_v31  ;;  %v7836_v31 = vld [vmem:[#allocation5 + $0x434] sm:$0xf0]  ;;  %v7815_v15 = vld [vmem:[#allocation5 + $0x394] sm:$0xf]  ;;  %v6403_v57 = vor.u32 %v7803_v28, %v6400_v33  ;;  %v6670_v28 = vld [vmem:[#allocation5 + $0x548] sm:$0xf] }
 0x57d   :  { %3199 = vmatpush.bf16.msra.mxu2 %v6499_v34  ;;  %3213 = vmatpush.bf16.msra.mxu3 %v6691_v47  ;;  %v7851_v34 = vld [vmem:[#allocation5 + $0x4b4] sm:$0xf]  ;;  %v7800_v47 = vld [vmem:[#allocation5 + $0x314] sm:$0xf0] }
 0x57e   :  { %v6696_v23 = vld [vmem:[#allocation5 + $0x590] sm:$0xf0] }
 0x581   :  { %v2506_v40 = vpop.f32.mrf.mxu3 }
 0x582   :  { %v2507_v56 = vadd.f32 %v2506_v40, %v2493_v38  ;;  %v2494_v27 = vpop.f32.mrf.mxu2  ;;  %v7821_v38 = vld [vmem:[#allocation5 + $0x3c4] sm:$0xf] }
 0x583   :  { %v2495_v58 = vadd.f32 %v2494_v27, %v2481_v54  ;;  %v7869_v40 = vld [vmem:[#allocation5 + $0x544] sm:$0xf]  ;;  %v6475_v44 = vor.u32 %v7821_v38, %v6472_v39  ;;  %v7818_v27 = vld [vmem:[#allocation5 + $0x3a4] sm:$0xf0]  ;;  %v6375_v38 = vor.u32 %v7800_v47, %v6374_v37  ;;  %v7848_v39 = vld [vmem:[#allocation5 + $0x494] sm:$0xf0] }
 0x584   :  { %v8635_v63 = vadd.f32 %v2507_v56, %v8542_v29  ;;  %v6471_v56 = vor.u32 %v7824_v36, %v6470_v35  ;;  %v6667_v54 = vor.u32 %v7869_v40, %v6664_v41  ;;  %v6447_v20 = vor.u32 %v7818_v27, %v6446_v19  ;;  %v6592_v35 = vld [vmem:[#allocation5 + $0x4c8] sm:$0xf0]  ;;  %v7797_v40 = vld [vmem:[#allocation5 + $0x304] sm:$0xf]  ;;  %v6376_v41 = vld [vmem:[#allocation5 + $0x318] sm:$0xf0] }
 0x585   :  { %3200 = vmatpush.bf16.msra.mxu2 %v6475_v44  ;;  %v6595_v36 = vor.u32 %v7851_v34, %v6592_v35  ;;  %v6379_v42 = vor.u32 %v7797_v40, %v6376_v41  ;;  %v7845_v44 = vld [vmem:[#allocation5 + $0x484] sm:$0xf]  ;;  %v6568_v19 = vld [vmem:[#allocation5 + $0x498] sm:$0xf0]  ;;  %v6550_v27 = vld [vmem:[#allocation5 + $0x458] sm:$0xf] }
 0x586   :  { %v2515_v55 = vadd.f32 %v8635_v63, %v8632_v46  ;;  %3214 = vmatpush.bf16.msra.mxu3 %v6667_v54  ;;  %v7843_v54 = vld [vmem:[#allocation5 + $0x46c] sm:$0xf0]  ;;  %v6480_v34 = vld [vmem:[#allocation5 + $0x3e0] sm:$0xf0]  ;;  %v7870_v37 = vld [vmem:[#allocation5 + $0x54c] sm:$0xf] }
 0x587   :  { %v6672_v47 = vld [vmem:[#allocation5 + $0x560] sm:$0xf0]  ;;  %v6646_v40 = vld [vmem:[#allocation5 + $0x518] sm:$0xf] }
 0x588   :  { %2516 = vadd.xlane.f32.xlu0 %v2515_v55  ;;  %v7866_v55 = vld [vmem:[#allocation5 + $0x524] sm:$0xf0] }
 0x589   :  { %v2508_v61 = vpop.f32.mrf.mxu3  ;;  %v6639_v1 = vor.u32 %v7866_v55, %v6638_v52  ;;  %v6571_v52 = vor.u32 %v7845_v44, %v6568_v19  ;;  %v6742_v55 = vld [vmem:[#allocation5 + $0x5d8] sm:$0xf]  ;;  %v6456_v44 = vld [vmem:[#allocation5 + $0x3b0] sm:$0xf0] }
 0x58a   :  { %v2509_v0 = vadd.f32 %v2508_v61, %v2495_v58  ;;  %v6448_v58 = vld [vmem:[#allocation5 + $0x3a8] sm:$0xf0]  ;;  %v7863_v61 = vld [vmem:[#allocation5 + $0x514] sm:$0xf] }
 0x58b   :  { %v6451_v8 = vor.u32 %v7815_v15, %v6448_v58  ;;  %3187 = vmatpush.bf16.msra.mxu1 %v6639_v1  ;;  %v7891_v15 = vld [vmem:[#allocation5 + $0x5ec] sm:$0xf0]  ;;  %v6551_v58 = vor.u32 %v7843_v54, %v6550_v27  ;;  %v6744_v1 = vld [vmem:[#allocation5 + $0x5f0] sm:$0xf0] }
 0x58c   :  { %v8640_v4 = vadd.f32 %v2509_v0, %v8544_v32  ;;  %v6518_v32 = vld [vmem:[#allocation5 + $0x420] sm:$0xf]  ;;  %v6640_v0 = vld [vmem:[#allocation5 + $0x528] sm:$0xf0]  ;;  %v6648_v54 = vld [vmem:[#allocation5 + $0x530] sm:$0xf0] }
 0x58d   :  { %v6519_v18 = vor.u32 %v7836_v31, %v6518_v32  ;;  %v6643_v9 = vor.u32 %v7863_v61, %v6640_v0  ;;  %3201 = vmatpush.bf16.msra.mxu2 %v6451_v8  ;;  %v6743_v61 = vor.u32 %v7891_v15, %v6742_v55  ;;  %v7840_v0 = vld [vmem:[#allocation5 + $0x45c] sm:$0xf]  ;;  %v6526_v8 = vld [vmem:[#allocation5 + $0x428] sm:$0xf] }
 0x58e   :  { %v2518_v29 = vadd.f32 %v8640_v4, %v8643_v30  ;;  %v6430_v15 = vld [vmem:[#allocation5 + $0x368] sm:$0xf] }
 0x58f   :  { %3170 = vmatpush.bf16.msra.mxu0 %v6519_v18  ;;  %3215 = vmatpush.bf16.msra.mxu3 %v6643_v9  ;;  %v7812_v18 = vld [vmem:[#allocation5 + $0x374] sm:$0xf0]  ;;  %v7837_v9 = vld [vmem:[#allocation5 + $0x43c] sm:$0xf0] }
 0x590   :  { %2519 = vadd.xlane.f32.xlu1 %v2518_v29  ;;  %v6423_v11 = vor.u32 %v7812_v18, %v6422_v2  ;;  %v6720_v2 = vld [vmem:[#allocation5 + $0x5c0] sm:$0xf0] }
 0x591   :  { %3202 = vmatpush.bf16.msra.mxu2 %v6427_v22  ;;  %v7828_v22 = vld [vmem:[#allocation5 + $0x3fc] sm:$0xf] }
 0x593   :  { %3171 = vmatpush.bf16.msra.mxu0 %v6495_v26  ;;  %v7854_v26 = vld [vmem:[#allocation5 + $0x4c4] sm:$0xf0] }
 0x594   :  { %v6591_v53 = vor.u32 %v7854_v26, %v6590_v24  ;;  %v6699_v24 = vor.u32 %v7876_v59, %v6696_v23  ;;  %v7825_v26 = vld [vmem:[#allocation5 + $0x3dc] sm:$0xf0] }
 0x595   :  { %3203 = vmatpush.bf16.msra.mxu2 %v6403_v57  ;;  %v7822_v57 = vld [vmem:[#allocation5 + $0x3cc] sm:$0xf]  ;;  %v7849_v23 = vld [vmem:[#allocation5 + $0x49c] sm:$0xf0] }
 0x597   :  { %3172 = vmatpush.bf16.msra.mxu0 %v6471_v56  ;;  %v6567_v56 = vor.u32 %v7848_v39, %v6566_v51  ;;  %v6675_v51 = vor.u32 %v7870_v37, %v6672_v47  ;;  %v7819_v39 = vld [vmem:[#allocation5 + $0x3ac] sm:$0xf0] }
 0x599   :  { %3204 = vmatpush.bf16.msra.mxu2 %v6379_v42  ;;  %v7816_v42 = vld [vmem:[#allocation5 + $0x39c] sm:$0xf] }
 0x59a   :  { %v6459_v27 = vor.u32 %v7816_v42, %v6456_v44 }
 0x59b   :  { %3173 = vmatpush.bf16.msra.mxu0 %v6447_v20  ;;  %v7888_v20 = vld [vmem:[#allocation5 + $0x5dc] sm:$0xf] }
 0x59f   :  { %3174 = vmatpush.bf16.msra.mxu0 %v6423_v11  ;;  %v6502_v11 = vld [vmem:[#allocation5 + $0x3f8] sm:$0xf] }
 0x5a3   :  { %3175 = vmatpush.bf16.msra.mxu0 %v6399_v25  ;;  %v6478_v25 = vld [vmem:[#allocation5 + $0x3c8] sm:$0xf] }
 0x5a4   :  { %v6479_v33 = vor.u32 %v7825_v26, %v6478_v25  ;;  %v6384_v25 = vld [vmem:[#allocation5 + $0x320] sm:$0xf0] }
 0x5a7   :  { %3176 = vmatpush.bf16.msra.mxu0 %v6375_v38  ;;  %v6454_v38 = vld [vmem:[#allocation5 + $0x398] sm:$0xf] }
 0x5a8   :  { %v6455_v41 = vor.u32 %v7819_v39, %v6454_v38 }
 0x5ab   :  { %3225 = vmatpush.bf16.msrb.mxu0 %v6551_v58  ;;  %v7813_v58 = vld [vmem:[#allocation5 + $0x37c] sm:$0xf0] }
 0x5fb   :  { %v2517_v29 = vpop.xlane.xlu0 %2516 }
 0x5fc   :  { %v2521_v5 = vmul.f32 %v2517_v29, %v8488_v60  ;;  %v6552_v29 = vld [vmem:[#allocation5 + $0x470] sm:$0xf0] }
 0x5fe   :  { %v8649_v10 = vsub.f32 %v8632_v46, %v2521_v5  ;;  %v8652_v43 = vsub.f32 %v8635_v63, %v2521_v5  ;;  %v6555_v5 = vor.u32 %v7840_v0, %v6552_v29  ;;  %v6431_v0 = vor.u32 %v7813_v58, %v6430_v15  ;;  %v7861_v29 = vld [vmem:[#allocation5 + $0x4fc] sm:$0xf0] }
 0x600   :  { %v2527_v13 = vmul.f32 %v8649_v10, %v8649_v10  ;;  %v2528_v14 = vmul.f32 %v8652_v43, %v8652_v43  ;;  %3253 = vmatpush.bf16.msrb.mxu2 %v6555_v5  ;;  %v6432_v5 = vld [vmem:[#allocation5 + $0x380] sm:$0xf0] }
 0x602   :  { %v2531_v62 = vadd.f32 %v2528_v14, %v2527_v13  ;;  %v6747_v13 = vor.u32 %v7888_v20, %v6744_v1  ;;  %v6527_v14 = vor.u32 %v7837_v9, %v6526_v8  ;;  %v7810_v20 = vld [vmem:[#allocation5 + $0x36c] sm:$0xf] }
 0x603   :  { %v2520_v16 = vpop.xlane.xlu1 %2519  ;;  %v6435_v8 = vor.u32 %v7810_v20, %v6432_v5  ;;  %v7858_v9 = vld [vmem:[#allocation5 + $0x4ec] sm:$0xf] }
 0x604   :  { %v2522_v32 = vmul.f32 %v2520_v16, %v8488_v60  ;;  %2532 = vadd.xlane.f32.xlu2 %v2531_v62  ;;  %v6718_v62 = vld [vmem:[#allocation5 + $0x5a8] sm:$0xf]  ;;  %v7885_v16 = vld [vmem:[#allocation5 + $0x5bc] sm:$0xf0]  ;;  %3226 = vmatpush.bf16.msrb.mxu0 %v6527_v14 }
 0x606   :  { %v8660_v46 = vsub.f32 %v8643_v30, %v2522_v32  ;;  %v8663_v63 = vsub.f32 %v8640_v4, %v2522_v32  ;;  %v6615_v30 = vor.u32 %v7860_v48, %v6614_v7  ;;  %v6616_v4 = vld [vmem:[#allocation5 + $0x4f8] sm:$0xf0]  ;;  %v7834_v32 = vld [vmem:[#allocation5 + $0x42c] sm:$0xf]  ;;  %v7831_v48 = vld [vmem:[#allocation5 + $0x40c] sm:$0xf0] }
 0x607   :  { %v6619_v6 = vor.u32 %v7857_v12, %v6616_v4  ;;  %v6503_v21 = vor.u32 %v7831_v48, %v6502_v11  ;;  %v6504_v12 = vld [vmem:[#allocation5 + $0x410] sm:$0xf0] }
 0x608   :  { %v2529_v3 = vmul.f32 %v8660_v46, %v8660_v46  ;;  %v2530_v31 = vmul.f32 %v8663_v63, %v8663_v63  ;;  %3188 = vmatpush.bf16.msra.mxu1 %v6615_v30  ;;  %v7879_v30 = vld [vmem:[#allocation5 + $0x58c] sm:$0xf0] }
 0x609   :  { %3216 = vmatpush.bf16.msra.mxu3 %v6619_v6  ;;  %v6695_v4 = vor.u32 %v7879_v30, %v6694_v49  ;;  %v6507_v6 = vor.u32 %v7828_v22, %v6504_v12  ;;  %3227 = vmatpush.bf16.msrb.mxu0 %v6503_v21  ;;  %v7852_v49 = vld [vmem:[#allocation5 + $0x4bc] sm:$0xf]  ;;  %v6600_v21 = vld [vmem:[#allocation5 + $0x4d0] sm:$0xf0]  ;;  %v6382_v12 = vld [vmem:[#allocation5 + $0x308] sm:$0xf] }
 0x60a   :  { %v2534_v17 = vadd.f32 %v2530_v31, %v2529_v3  ;;  %v6719_v3 = vor.u32 %v7885_v16, %v6718_v62  ;;  %v6528_v31 = vld [vmem:[#allocation5 + $0x440] sm:$0xf0]  ;;  %v6406_v16 = vld [vmem:[#allocation5 + $0x338] sm:$0xf]  ;;  %v6603_v22 = vor.u32 %v7852_v49, %v6600_v21 }
 0x60b   :  { %v6531_v18 = vor.u32 %v7834_v32, %v6528_v31  ;;  %v7807_v32 = vld [vmem:[#allocation5 + $0x34c] sm:$0xf0] }
 0x60c   :  { %2535 = vadd.xlane.f32.xlu0 %v2534_v17  ;;  %3189 = vmatpush.bf16.msra.mxu1 %v6591_v53  ;;  %v7882_v17 = vld [vmem:[#allocation5 + $0x5ac] sm:$0xf]  ;;  %v7873_v53 = vld [vmem:[#allocation5 + $0x55c] sm:$0xf0] }
 0x60d   :  { %3217 = vmatpush.bf16.msra.mxu3 %v6595_v36  ;;  %v6723_v7 = vor.u32 %v7882_v17, %v6720_v2  ;;  %3254 = vmatpush.bf16.msrb.mxu2 %v6531_v18  ;;  %v6671_v35 = vor.u32 %v7873_v53, %v6670_v28  ;;  %v6483_v36 = vor.u32 %v7822_v57, %v6480_v34  ;;  %v7855_v2 = vld [vmem:[#allocation5 + $0x4cc] sm:$0xf0]  ;;  %v7804_v18 = vld [vmem:[#allocation5 + $0x33c] sm:$0xf]  ;;  %v6576_v53 = vld [vmem:[#allocation5 + $0x4a0] sm:$0xf0] }
 0x60e   :  { %3228 = vmatpush.bf16.msrb.mxu0 %v6479_v33  ;;  %v6407_v17 = vor.u32 %v7807_v32, %v6406_v16  ;;  %v7846_v33 = vld [vmem:[#allocation5 + $0x48c] sm:$0xf]  ;;  %v6558_v16 = vld [vmem:[#allocation5 + $0x460] sm:$0xf]  ;;  %v7844_v32 = vld [vmem:[#allocation5 + $0x474] sm:$0xf0] }
 0x60f   :  { %v6579_v34 = vor.u32 %v7846_v33, %v6576_v53  ;;  %v6559_v49 = vor.u32 %v7844_v32, %v6558_v16  ;;  %v6510_v53 = vld [vmem:[#allocation5 + $0x400] sm:$0xf]  ;;  %v6656_v16 = vld [vmem:[#allocation5 + $0x538] sm:$0xf0] }
 0x610   :  { %3190 = vmatpush.bf16.msra.mxu1 %v6567_v56  ;;  %v7867_v56 = vld [vmem:[#allocation5 + $0x52c] sm:$0xf0] }
 0x611   :  { %3218 = vmatpush.bf16.msra.mxu3 %v6571_v52  ;;  %3255 = vmatpush.bf16.msrb.mxu2 %v6507_v6  ;;  %v6647_v19 = vor.u32 %v7867_v56, %v6646_v40  ;;  %v7864_v52 = vld [vmem:[#allocation5 + $0x51c] sm:$0xf]  ;;  %v6574_v6 = vld [vmem:[#allocation5 + $0x488] sm:$0xf] }
 0x612   :  { %v6651_v55 = vor.u32 %v7864_v52, %v6648_v54  ;;  %3229 = vmatpush.bf16.msrb.mxu0 %v6455_v41  ;;  %v6575_v26 = vor.u32 %v7849_v23, %v6574_v6  ;;  %v8189_v52 = vld [vmem:[%s9141_s6] sm:$0xff]  ;;  %v6726_v6 = vld [vmem:[#allocation5 + $0x5b0] sm:$0xf]  ;;  %v7835_v23 = vld [vmem:[#allocation5 + $0x434] sm:$0xf] }
 0x613   :  { %v2565_v54 = vperm.slane %v8189_v52, 6 }
 0x614   :  { %3239 = vmatpush.bf16.msrb.mxu1 %v6743_v61  ;;  %v6622_v61 = vld [vmem:[#allocation5 + $0x4e8] sm:$0xf] }
 0x615   :  { %3267 = vmatpush.bf16.msrb.mxu3 %v6747_v13  ;;  %3256 = vmatpush.bf16.msrb.mxu2 %v6483_v36  ;;  %v6623_v1 = vor.u32 %v7861_v29, %v6622_v61  ;;  %v6624_v13 = vld [vmem:[#allocation5 + $0x500] sm:$0xf0]  ;;  %v2571_v29 = vperm.slane %v8189_v52, 7  ;;  %v7874_v52 = vld [vmem:[#allocation5 + $0x564] sm:$0xf0] }
 0x616   :  { %v6627_v14 = vor.u32 %v7858_v9, %v6624_v13  ;;  %3230 = vmatpush.bf16.msrb.mxu0 %v6431_v0 }
 0x618   :  { %3240 = vmatpush.bf16.msrb.mxu1 %v6719_v3  ;;  %v6598_v3 = vld [vmem:[#allocation5 + $0x4b8] sm:$0xf] }
 0x619   :  { %3268 = vmatpush.bf16.msrb.mxu3 %v6723_v7  ;;  %3257 = vmatpush.bf16.msrb.mxu2 %v6459_v27  ;;  %v6408_v7 = vld [vmem:[#allocation5 + $0x350] sm:$0xf0]  ;;  %v6599_v11 = vor.u32 %v7855_v2, %v6598_v3  ;;  %v6750_v3 = vld [vmem:[#allocation5 + $0x5e0] sm:$0xf] }
 0x61a   :  { %v6411_v48 = vor.u32 %v7804_v18, %v6408_v7  ;;  %3231 = vmatpush.bf16.msrb.mxu0 %v6407_v17  ;;  %v6560_v7 = vld [vmem:[#allocation5 + $0x478] sm:$0xf0] }
 0x61c   :  { %3241 = vmatpush.bf16.msrb.mxu1 %v6695_v4  ;;  %v7801_v4 = vld [vmem:[#allocation5 + $0x31c] sm:$0xf0] }
 0x61d   :  { %3269 = vmatpush.bf16.msrb.mxu3 %v6699_v24  ;;  %3258 = vmatpush.bf16.msrb.mxu2 %v6435_v8  ;;  %v6383_v59 = vor.u32 %v7801_v4, %v6382_v12  ;;  %v7798_v24 = vld [vmem:[#allocation5 + $0x30c] sm:$0xf] }
 0x61e   :  { %v6387_v28 = vor.u32 %v7798_v24, %v6384_v25  ;;  %v6536_v24 = vld [vmem:[#allocation5 + $0x448] sm:$0xf0]  ;;  %v7883_v25 = vld [vmem:[#allocation5 + $0x5b4] sm:$0xf] }
 0x61f   :  { %3232 = vmatpush.bf16.msrb.mxu0 %v6383_v59  ;;  %v7886_v59 = vld [vmem:[#allocation5 + $0x5c4] sm:$0xf0] }
 0x620   :  { %3242 = vmatpush.bf16.msrb.mxu1 %v6671_v35  ;;  %v6727_v33 = vor.u32 %v7886_v59, %v6726_v6  ;;  %v6414_v59 = vld [vmem:[#allocation5 + $0x340] sm:$0xf] }
 0x621   :  { %3270 = vmatpush.bf16.msrb.mxu3 %v6675_v51  ;;  %3259 = vmatpush.bf16.msrb.mxu2 %v6411_v48 }
 0x624   :  { %3243 = vmatpush.bf16.msrb.mxu1 %v6647_v19 }
 0x625   :  { %3271 = vmatpush.bf16.msrb.mxu3 %v6651_v55  ;;  %3260 = vmatpush.bf16.msrb.mxu2 %v6387_v28  ;;  %v8190_v55 = vld [vmem:[%s9141_s6 + $0x8] sm:$0xff] }
 0x626   :  { %v2566_v15 = vperm.slane %v8190_v55, 6  ;;  %v2572_v20 = vperm.slane %v8190_v55, 7  ;;  %v6488_v55 = vld [vmem:[#allocation5 + $0x3e8] sm:$0xf0] }
 0x628   :  { %3244 = vmatpush.bf16.msrb.mxu1 %v6623_v1 }
 0x629   :  { %3272 = vmatpush.bf16.msrb.mxu3 %v6627_v14 }
 0x62c   :  { %3245 = vmatpush.bf16.msrb.mxu1 %v6599_v11  ;;  %v7889_v11 = vld [vmem:[#allocation5 + $0x5e4] sm:$0xf] }
 0x62d   :  { %3273 = vmatpush.bf16.msrb.mxu3 %v6603_v22  ;;  %v7838_v22 = vld [vmem:[#allocation5 + $0x444] sm:$0xf0] }
 0x630   :  { %3246 = vmatpush.bf16.msrb.mxu1 %v6575_v26  ;;  %v6728_v26 = vld [vmem:[#allocation5 + $0x5c8] sm:$0xf0] }
 0x631   :  { %3274 = vmatpush.bf16.msrb.mxu3 %v6579_v34  ;;  %v6539_v34 = vor.u32 %v7835_v23, %v6536_v24  ;;  %v7808_v23 = vld [vmem:[#allocation5 + $0x354] sm:$0xf0] }
 0x677   :  { %v2533_v62 = vpop.xlane.xlu2 %2532 }
 0x678   :  { %v2537_v31 = vmul.f32 %v2533_v62, %v8488_v60 }
 0x67a   :  { %v2539_v30 = vadd.f32 1e-12, %v2537_v31  ;;  %v7841_v31 = vld [vmem:[#allocation5 + $0x464] sm:$0xf] }
 0x67b   :  { %v6563_v12 = vor.u32 %v7841_v31, %v6560_v7  ;;  %v7814_v31 = vld [vmem:[#allocation5 + $0x384] sm:$0xf0] }
 0x67c   :  { %8137 = vrsqrt.f32 %v2539_v30  ;;  %vm2547_vm10 = vweird.f32 %v2539_v30 }
 0x67f   :  { %v2536_v57 = vpop.xlane.xlu0 %2535 }
 0x680   :  { %v2538_v35 = vmul.f32 %v2536_v57, %v8488_v60  ;;  %v7832_v57 = vld [vmem:[#allocation5 + $0x414] sm:$0xf0] }
 0x682   :  { %v8138_v36 = vpop.eup %8137  ;;  %v2540_v37 = vadd.f32 1e-12, %v2538_v35  ;;  %v6731_v35 = vor.u32 %v7883_v25, %v6728_v26  ;;  %v6606_v26 = vld [vmem:[#allocation5 + $0x4c0] sm:$0xf] }
 0x683   :  { %v2542_v47 = vmul.f32 %v8138_v36, %v2539_v30  ;;  %vm2548_vm9 = vweird.f32 %v8138_v36  ;;  %v6534_v30 = vld [vmem:[#allocation5 + $0x430] sm:$0xf] }
 0x684   :  { %8139 = vrsqrt.f32 %v2540_v37  ;;  %vm2549_vm11 = vmor %vm2547_vm10, %vm2548_vm9  ;;  %vm2557_vm13 = vweird.f32 %v2540_v37  ;;  %v6535_v28 = vor.u32 %v7838_v22, %v6534_v30  ;;  %v6440_v30 = vld [vmem:[#allocation5 + $0x388] sm:$0xf0]  ;;  %v7859_v22 = vld [vmem:[#allocation5 + $0x4f4] sm:$0xf] }
 0x685   :  { %v2543_v51 = vmul.f32 %v8138_v36, %v2542_v47  ;;  %v7829_v47 = vld [vmem:[#allocation5 + $0x404] sm:$0xf] }
 0x687   :  { %v2544_v38 = vmul.f32 0.5, %v2543_v51  ;;  %v6512_v51 = vld [vmem:[#allocation5 + $0x418] sm:$0xf0] }
 0x689   :  { %v2545_v39 = vsub.f32 1.5, %v2544_v38  ;;  %v7877_v38 = vld [vmem:[#allocation5 + $0x584] sm:$0xf] }
 0x68a   :  { %v8140_v40 = vpop.eup %8139 }
 0x68b   :  { %v2546_v41 = vmul.f32 %v8138_v36, %v2545_v39  ;;  %v2552_v56 = vmul.f32 %v8140_v40, %v2540_v37  ;;  %vm2558_vm12 = vweird.f32 %v8140_v40  ;;  %v7880_v37 = vld [vmem:[#allocation5 + $0x594] sm:$0xf0]  ;;  %v6704_v39 = vld [vmem:[#allocation5 + $0x598] sm:$0xf0] }
 0x68c   :  { %vm2559_vm14 = vmor %vm2557_vm13, %vm2558_vm12  ;;  %vm5289_vm12 = vcmask 1041408  }
 0x68d   :  { %v2553_v42 = vmul.f32 %v8140_v40, %v2552_v56  ;;  %v2550_v44 = vsel %vm2549_vm11, %v8138_v36, %v2546_v41  ;;  %v6702_v36 = vld [vmem:[#allocation5 + $0x580] sm:$0xf]  ;;  %v6486_v56 = vld [vmem:[#allocation5 + $0x3d0] sm:$0xf]  ;;  %vm5064_vm11 = vcmask 1041409  }
 0x68e   :  { %v2561_v58 = vmul.f32 %v2550_v44, %v8649_v10  ;;  %v2562_v61 = vmul.f32 %v2550_v44, %v8652_v43  ;;  %v7892_v10 = vld [vmem:[#allocation5 + $0x5f4] sm:$0xf0]  ;;  %v6703_v41 = vor.u32 %v7880_v37, %v6702_v36  ;;  %v6515_v44 = vor.u32 %v7829_v47, %v6512_v51  ;;  %v6390_v37 = vld [vmem:[#allocation5 + $0x310] sm:$0xf]  ;;  %v7802_v47 = vld [vmem:[#allocation5 + $0x324] sm:$0xf0] }
 0x68f   :  { %v2554_v19 = vmul.f32 0.5, %v2553_v42  ;;  %v6751_v21 = vor.u32 %v7892_v10, %v6750_v3  ;;  %v7826_v42 = vld [vmem:[#allocation5 + $0x3e4] sm:$0xf0]  ;;  %v6438_v10 = vld [vmem:[#allocation5 + $0x370] sm:$0xf] }
 0x690   :  { %v2567_v1 = vmul.f32 %v2565_v54, %v2561_v58  ;;  %v2568_v8 = vmul.f32 %v2566_v15, %v2562_v61  ;;  %v6680_v58 = vld [vmem:[#allocation5 + $0x568] sm:$0xf0]  ;;  %v6487_v61 = vor.u32 %v7826_v42, %v6486_v56  ;;  %v7847_v42 = vld [vmem:[#allocation5 + $0x494] sm:$0xf] }
 0x691   :  { %v2555_v27 = vsub.f32 1.5, %v2554_v19  ;;  %v6707_v19 = vor.u32 %v7877_v38, %v6704_v39  ;;  %v6582_v39 = vld [vmem:[#allocation5 + $0x490] sm:$0xf]  ;;  %v6392_v56 = vld [vmem:[#allocation5 + $0x328] sm:$0xf0] }
 0x692   :  { %v8681_v43 = vadd.f32 %v2571_v29, %v2567_v1  ;;  %v8683_v17 = vadd.f32 %v2572_v20, %v2568_v8  ;;  %v6654_v8 = vld [vmem:[#allocation5 + $0x520] sm:$0xf] }
 0x693   :  { %v2556_v0 = vmul.f32 %v8140_v40, %v2555_v27  ;;  %v6678_v27 = vld [vmem:[#allocation5 + $0x550] sm:$0xf] }
 0x695   :  { %v2560_v5 = vsel %vm2559_vm14, %v8140_v40, %v2556_v0  ;;  %v6511_v40 = vor.u32 %v7832_v57, %v6510_v53  ;;  %v6679_v0 = vor.u32 %v7874_v52, %v6678_v27  ;;  %v6416_v53 = vld [vmem:[#allocation5 + $0x358] sm:$0xf0]  ;;  %v7853_v57 = vld [vmem:[#allocation5 + $0x4c4] sm:$0xf] }
 0x696   :  { %v2563_v9 = vmul.f32 %v2560_v5, %v8660_v46  ;;  %v2564_v13 = vmul.f32 %v2560_v5, %v8663_v63  ;;  %v6752_v46 = vld [vmem:[#allocation5 + $0x5f8] sm:$0xf0] }
 0x697   :  { %v6755_v4 = vor.u32 %v7889_v11, %v6752_v46  ;;  %v6630_v46 = vld [vmem:[#allocation5 + $0x4f0] sm:$0xf] }
 0x698   :  { %v2569_v14 = vmul.f32 %v2565_v54, %v2563_v9  ;;  %v2570_v62 = vmul.f32 %v2566_v15, %v2564_v13  ;;  %v7823_v54 = vld [vmem:[#allocation5 + $0x3d4] sm:$0xf]  ;;  %v7868_v9 = vld [vmem:[#allocation5 + $0x534] sm:$0xf0]  ;;  %v7817_v13 = vld [vmem:[#allocation5 + $0x3a4] sm:$0xf] }
 0x699   :  { %v7871_v15 = vld [vmem:[#allocation5 + $0x554] sm:$0xf]  ;;  %v6491_v5 = vor.u32 %v7823_v54, %v6488_v55  ;;  %v6655_v3 = vor.u32 %v7868_v9, %v6654_v8 }
 0x69a   :  { %v8685_v2 = vadd.f32 %v2571_v29, %v2569_v14  ;;  %v8687_v18 = vadd.f32 %v2572_v20, %v2570_v62  ;;  %v6462_v29 = vld [vmem:[#allocation5 + $0x3a0] sm:$0xf]  ;;  %v7820_v20 = vld [vmem:[#allocation5 + $0x3b4] sm:$0xf0]  ;;  %v6683_v1 = vor.u32 %v7871_v15, %v6680_v58  ;;  %v6464_v14 = vld [vmem:[#allocation5 + $0x3b8] sm:$0xf0] }
 0x69b   :  { %v7865_v62 = vld [vmem:[#allocation5 + $0x524] sm:$0xf]  ;;  %v6463_v32 = vor.u32 %v7820_v20, %v6462_v29  ;;  %v6467_v7 = vor.u32 %v7817_v13, %v6464_v14 }
 0x69c   :  { %v8691_v63 = vpack.c.bf16 %v8685_v2, %v8681_v43  ;;  %v8695_v48 = vpack.c.bf16 %v8687_v18, %v8683_v17  ;;  %v6659_v11 = vor.u32 %v7865_v62, %v6656_v16  ;;  %v6368_v20 = vld [vmem:[%s9141_s6 + $0x40] sm:$0xff]  ;;  %v6369_v62 = vld [vmem:[%s9141_s6 + $0x48] sm:$0xff] }
 0x69e   :  { %3177 = vmatmul.bf16.vlgmr.msra.gmra.mxu0 %v8691_v63  ;;  %3191 = vmatmul.bf16.vlgmr.msra.gmra.mxu1 %v8695_v48 }
 0x69f   :  { %3205 = vmatmul.bf16.vlgmr.msra.gmra.mxu2 %v8691_v63  ;;  %3219 = vmatmul.bf16.vlgmr.msra.gmra.mxu3 %v8695_v48 }
 0x6a0   :  { %3281 = vmatpush.bf16.msra.mxu0 %v6559_v49  ;;  %3295 = vmatpush.bf16.msra.mxu1 %v6751_v21  ;;  %v7862_v49 = vld [vmem:[#allocation5 + $0x504] sm:$0xf0]  ;;  %v7811_v21 = vld [vmem:[#allocation5 + $0x374] sm:$0xf] }
 0x6a1   :  { %3309 = vmatpush.bf16.msra.mxu2 %v6563_v12  ;;  %3323 = vmatpush.bf16.msra.mxu3 %v6755_v4  ;;  %v6632_v12 = vld [vmem:[#allocation5 + $0x508] sm:$0xf0]  ;;  %v6439_v4 = vor.u32 %v7814_v31, %v6438_v10  ;;  %v6631_v6 = vor.u32 %v7862_v49, %v6630_v46  ;;  %v6443_v24 = vor.u32 %v7811_v21, %v6440_v30 }
 0x6a2   :  { %v6635_v25 = vor.u32 %v7859_v22, %v6632_v12 }
 0x6a4   :  { %3282 = vmatpush.bf16.msra.mxu0 %v6535_v28  ;;  %3296 = vmatpush.bf16.msra.mxu1 %v6727_v33  ;;  %v7856_v28 = vld [vmem:[#allocation5 + $0x4d4] sm:$0xf0]  ;;  %v7805_v33 = vld [vmem:[#allocation5 + $0x344] sm:$0xf] }
 0x6a5   :  { %3310 = vmatpush.bf16.msra.mxu2 %v6539_v34  ;;  %3324 = vmatpush.bf16.msra.mxu3 %v6731_v35  ;;  %v6608_v34 = vld [vmem:[#allocation5 + $0x4d8] sm:$0xf0]  ;;  %v6415_v35 = vor.u32 %v7808_v23, %v6414_v59  ;;  %v6607_v36 = vor.u32 %v7856_v28, %v6606_v26  ;;  %v6419_v51 = vor.u32 %v7805_v33, %v6416_v53 }
 0x6a6   :  { %v6611_v38 = vor.u32 %v7853_v57, %v6608_v34 }
 0x6a8   :  { %3283 = vmatpush.bf16.msra.mxu0 %v6511_v40  ;;  %3297 = vmatpush.bf16.msra.mxu1 %v6703_v41  ;;  %v7850_v40 = vld [vmem:[#allocation5 + $0x4a4] sm:$0xf0]  ;;  %v7799_v41 = vld [vmem:[#allocation5 + $0x314] sm:$0xf] }
 0x6a9   :  { %3311 = vmatpush.bf16.msra.mxu2 %v6515_v44  ;;  %3325 = vmatpush.bf16.msra.mxu3 %v6707_v19  ;;  %v6584_v44 = vld [vmem:[#allocation5 + $0x4a8] sm:$0xf0]  ;;  %v6391_v19 = vor.u32 %v7802_v47, %v6390_v37  ;;  %v6583_v27 = vor.u32 %v7850_v40, %v6582_v39  ;;  %v6395_v52 = vor.u32 %v7799_v41, %v6392_v56 }
 0x6aa   :  { %v6587_v54 = vor.u32 %v7847_v42, %v6584_v44 }
 0x6ac   :  { %3284 = vmatpush.bf16.msra.mxu0 %v6487_v61  ;;  %3298 = vmatpush.bf16.msra.mxu1 %v6679_v0 }
 0x6ad   :  { %3312 = vmatpush.bf16.msra.mxu2 %v6491_v5  ;;  %3326 = vmatpush.bf16.msra.mxu3 %v6683_v1  ;;  %v2685_v5 = vperm.slane %v6368_v20, 0  ;;  %v8715_v1 = vld [vmem:[%s9141_s6 + $0x30] sm:$0xff] }
 0x6ae   :  { %3233 = vmatmul.bf16.vlgmr.msrb.gmra.mxu0 %v8691_v63  ;;  %3247 = vmatmul.bf16.vlgmr.msrb.gmra.mxu1 %v8695_v48  ;;  %v2683_v13 = vperm.slane %v8715_v1, 0 }
 0x6af   :  { %3261 = vmatmul.bf16.vlgmr.msrb.gmra.mxu2 %v8691_v63  ;;  %3275 = vmatmul.bf16.vlgmr.msrb.gmra.mxu3 %v8695_v48 }
 0x6b0   :  { %3285 = vmatpush.bf16.msra.mxu0 %v6463_v32  ;;  %3299 = vmatpush.bf16.msra.mxu1 %v6655_v3  ;;  %v2686_v32 = vperm.slane %v6369_v62, 0 }
 0x6b1   :  { %3313 = vmatpush.bf16.msra.mxu2 %v6467_v7  ;;  %3327 = vmatpush.bf16.msra.mxu3 %v6659_v11 }
 0x6b4   :  { %3286 = vmatpush.bf16.msra.mxu0 %v6439_v4  ;;  %3300 = vmatpush.bf16.msra.mxu1 %v6631_v6  ;;  %v6370_v4 = vld [vmem:[%s9141_s6 + $0x50] sm:$0xff] }
 0x6b5   :  { %3314 = vmatpush.bf16.msra.mxu2 %v6443_v24  ;;  %3328 = vmatpush.bf16.msra.mxu3 %v6635_v25  ;;  %v8729_v25 = vld [vmem:[%s9141_s6 + $0x38] sm:$0xff]  ;;  %v2687_v26 = vperm.slane %v6370_v4, 0 }
 0x6b6   :  { %v2684_v57 = vperm.slane %v8729_v25, 0 }
 0x6b8   :  { %3287 = vmatpush.bf16.msra.mxu0 %v6415_v35  ;;  %3301 = vmatpush.bf16.msra.mxu1 %v6607_v36 }
 0x6b9   :  { %3315 = vmatpush.bf16.msra.mxu2 %v6419_v51  ;;  %3329 = vmatpush.bf16.msra.mxu3 %v6611_v38  ;;  %v6371_v51 = vld [vmem:[%s9141_s6 + $0x58] sm:$0xff] }
 0x6ba   :  { %v2688_v56 = vperm.slane %v6371_v51, 0 }
 0x6bc   :  { %3288 = vmatpush.bf16.msra.mxu0 %v6391_v19  ;;  %3302 = vmatpush.bf16.msra.mxu1 %v6583_v27 }
 0x6bd   :  { %3316 = vmatpush.bf16.msra.mxu2 %v6395_v52  ;;  %3330 = vmatpush.bf16.msra.mxu3 %v6587_v54 }
 0x6bf   :  { %3289 = vmatmul.bf16.vlgmr.msra.gmra.mxu0 %v8691_v63  ;;  %3303 = vmatmul.bf16.vlgmr.msra.gmra.mxu1 %v8695_v48 }
 0x6c0   :  { %3317 = vmatmul.bf16.vlgmr.msra.gmra.mxu2 %v8691_v63  ;;  %3331 = vmatmul.bf16.vlgmr.msra.gmra.mxu3 %v8695_v48 }
 0x71b   :  { %v3178_v55 = vpop.f32.mrf.mxu0  ;;  %v3192_v15 = vpop.f32.mrf.mxu1 }
 0x71c   :  { %v3179_v3 = vadd.f32 %v3178_v55, %v2683_v13 }
 0x71e   :  { %v3193_v21 = vadd.f32 %v3192_v15, %v3179_v3 }
 0x720   :  { %v3337_v59 = vpack.c.bf16 %v3193_v21, %v3193_v21 }
 0x722   :  { %v3206_v58 = vpop.f32.mrf.mxu2  ;;  %v3220_v61 = vpop.f32.mrf.mxu3 }
 0x723   :  { %v3180_v0 = vpop.f32.mrf.mxu0  ;;  %v3194_v29 = vpop.f32.mrf.mxu1  ;;  %v3207_v40 = vadd.f32 %v3206_v58, %v2684_v57 }
 0x724   :  { %v3181_v23 = vadd.f32 %v3180_v0, %v2683_v13 }
 0x725   :  { %v3221_v52 = vadd.f32 %v3220_v61, %v3207_v40 }
 0x726   :  { %v3195_v34 = vadd.f32 %v3194_v29, %v3181_v23 }
 0x728   :  { %v3338_v41 = vpack.c.bf16 %v3195_v34, %v3195_v34 }
 0x72a   :  { %v3208_v8 = vpop.f32.mrf.mxu2  ;;  %v8717_v63 = vpop.f32.mrf.mxu3 }
 0x72b   :  { %v3234_v48 = vpop.f32.mrf.mxu0  ;;  %v3248_v9 = vpop.f32.mrf.mxu1 }
 0x72c   :  { %v3235_v14 = vadd.f32 %v3234_v48, %v2685_v5  ;;  %v3209_v48 = vadd.f32 %v3208_v8, %v2684_v57 }
 0x72e   :  { %v3249_v16 = vadd.f32 %v3248_v9, %v3235_v14  ;;  %v3223_v61 = vadd.f32 %v8717_v63, %v3209_v48  ;;  %v6828_v48 = vld [vmem:[#allocation8 + $0x178] sm:$0xf0] }
 0x730   :  { %v3339_v10 = vpack.c.bf16 %v3249_v16, %v3249_v16 }
 0x732   :  { %v3262_v31 = vpop.f32.mrf.mxu2  ;;  %v3276_v7 = vpop.f32.mrf.mxu3  ;;  %3348 = vmatpush.bf16.xpose.msrb.mxu0 %v3339_v10  ;;  %v3436_v10 = vpack.c.bf16 %v3223_v61, %v3223_v61  ;;  %v6820_v61 = vld [vmem:[#allocation8 + $0x168] sm:$0xf0] }
 0x733   :  { %v3263_v11 = vadd.f32 %v3262_v31, %v2686_v32  ;;  %v3236_v46 = vpop.f32.mrf.mxu0  ;;  %v3250_v49 = vpop.f32.mrf.mxu1 }
 0x734   :  { %v3237_v30 = vadd.f32 %v3236_v46, %v2685_v5  ;;  %v3435_v5 = vpack.c.bf16 %v3221_v52, %v3221_v52 }
 0x735   :  { %v3277_v22 = vadd.f32 %v3276_v7, %v3263_v11 }
 0x736   :  { %v3251_v12 = vadd.f32 %v3250_v49, %v3237_v30 }
 0x737   :  { %v3437_v6 = vpack.c.bf16 %v3277_v22, %v3277_v22 }
 0x738   :  { %v3340_v24 = vpack.c.bf16 %v3251_v12, %v3251_v12 }
 0x739   :  { %3349 = vmatmul.bf16.vlgmr.msrb.gmra.mxu0 %v3337_v59 }
 0x73a   :  { %3446 = vmatpush.bf16.xpose.msra.mxu0 %v3437_v6  ;;  %v3264_v28 = vpop.f32.mrf.mxu2  ;;  %v3278_v33 = vpop.f32.mrf.mxu3  ;;  %3361 = vmatpush.bf16.xpose.msrb.mxu1 %v3340_v24 }
 0x73b   :  { %v3265_v53 = vadd.f32 %v3264_v28, %v2686_v32 }
 0x73c   :  { %v3290_v35 = vpop.f32.mrf.mxu0  ;;  %v3304_v36 = vpop.f32.mrf.mxu1 }
 0x73d   :  { %v3279_v37 = vadd.f32 %v3278_v33, %v3265_v53  ;;  %v3291_v47 = vadd.f32 %v3290_v35, %v2687_v26 }
 0x73f   :  { %v3438_v38 = vpack.c.bf16 %v3279_v37, %v3279_v37  ;;  %v3305_v39 = vadd.f32 %v3304_v36, %v3291_v47 }
 0x741   :  { %v3387_v42 = vpack.c.bf16 %v3305_v39, %v3305_v39  ;;  %3362 = vmatmul.bf16.vlgmr.msrb.gmra.mxu1 %v3338_v41 }
 0x742   :  { %3459 = vmatpush.bf16.xpose.msra.mxu1 %v3438_v38 }
 0x743   :  { %v3393_v44 = vsel %vm958_vm0, %v3387_v42, 0  ;;  %v3318_v19 = vpop.f32.mrf.mxu2  ;;  %v3332_v27 = vpop.f32.mrf.mxu3 }
 0x744   :  { %v3319_v54 = vadd.f32 %v3318_v19, %v2688_v56  ;;  %v3292_v55 = vpop.f32.mrf.mxu0  ;;  %3402 = vmatpush.bf16.msrb.mxu2 %v3393_v44  ;;  %v3306_v29 = vpop.f32.mrf.mxu1 }
 0x745   :  { %v3293_v15 = vadd.f32 %v3292_v55, %v2687_v26 }
 0x746   :  { %v3333_v0 = vadd.f32 %v3332_v27, %v3319_v54 }
 0x747   :  { %v3307_v20 = vadd.f32 %v3306_v29, %v3293_v15  ;;  %v7910_v29 = vld [vmem:[#allocation8 + $0x174] sm:$0xf0] }
 0x748   :  { %v3485_v58 = vpack.c.bf16 %v3333_v0, %v3333_v0  ;;  %v6826_v0 = vld [vmem:[#allocation8 + $0x170] sm:$0xf] }
 0x749   :  { %v3388_v9 = vpack.c.bf16 %v3307_v20, %v3307_v20  ;;  %3447 = vmatmul.bf16.vlgmr.msra.gmra.mxu0 %v3435_v5  ;;  %v7909_v20 = vld [vmem:[#allocation8 + $0x174] sm:$0xf]  ;;  %v6827_v5 = vor.u32 %v7910_v29, %v6826_v0  ;;  %v6876_v29 = vld [vmem:[#allocation8 + $0x1d8] sm:$0xf0] }
 0x74a   :  { %v3491_v13 = vsel %vm958_vm0, %v3485_v58, 0  ;;  %v6831_v58 = vor.u32 %v7909_v20, %v6828_v48  ;;  %v7921_v0 = vld [vmem:[#allocation8 + $0x1d4] sm:$0xf]  ;;  %v7896_v48 = vld [vmem:[#allocation8 + $0x104] sm:$0xf0] }
 0x74b   :  { %v3412_v14 = vsel %vm958_vm0, %v3388_v9, 0  ;;  %v3320_v62 = vpop.f32.mrf.mxu2  ;;  %3500 = vmatpush.bf16.msra.mxu2 %v3491_v13  ;;  %v3334_v32 = vpop.f32.mrf.mxu3  ;;  %v6818_v9 = vld [vmem:[#allocation8 + $0x160] sm:$0xf]  ;;  %v7908_v13 = vld [vmem:[#allocation8 + $0x164] sm:$0xf0]  ;;  %3740 = vmatpush.bf16.msrb.mxu0 %v6827_v5  ;;  %v6879_v20 = vor.u32 %v7921_v0, %v6876_v29 }
 0x74c   :  { %v3321_v16 = vadd.f32 %v3320_v62, %v2688_v56  ;;  %3421 = vmatpush.bf16.msrb.mxu3 %v3412_v14  ;;  %v7907_v14 = vld [vmem:[#allocation8 + $0x164] sm:$0xf]  ;;  %v6819_v62 = vor.u32 %v7908_v13, %v6818_v9  ;;  %v6770_v5 = vld [vmem:[#allocation8 + $0x100] sm:$0xf]  ;;  %v7920_v13 = vld [vmem:[#allocation8 + $0x1c4] sm:$0xf0] }
 0x74d   :  { %v6771_v9 = vor.u32 %v7896_v48, %v6770_v5 }
 0x74e   :  { %v3335_v3 = vadd.f32 %v3334_v32, %v3321_v16  ;;  %v6823_v16 = vor.u32 %v7907_v14, %v6820_v61  ;;  %v6810_v32 = vld [vmem:[#allocation8 + $0x150] sm:$0xf]  ;;  %v7895_v14 = vld [vmem:[#allocation8 + $0x104] sm:$0xf] }
 0x74f   :  { %3741 = vmatpush.bf16.msrb.mxu0 %v6819_v62  ;;  %v6772_v62 = vld [vmem:[#allocation8 + $0x108] sm:$0xf0] }
 0x750   :  { %v3486_v31 = vpack.c.bf16 %v3335_v3, %v3335_v3  ;;  %v7906_v3 = vld [vmem:[#allocation8 + $0x154] sm:$0xf0] }
 0x751   :  { %3460 = vmatmul.bf16.vlgmr.msra.gmra.mxu1 %v3436_v10  ;;  %v7905_v10 = vld [vmem:[#allocation8 + $0x154] sm:$0xf] }
 0x752   :  { %v3510_v7 = vsel %vm958_vm0, %v3486_v31, 0  ;;  %v6811_v31 = vor.u32 %v7906_v3, %v6810_v32  ;;  %v7919_v32 = vld [vmem:[#allocation8 + $0x1c4] sm:$0xf]  ;;  %v6868_v3 = vld [vmem:[#allocation8 + $0x1c8] sm:$0xf0] }
 0x753   :  { %3519 = vmatpush.bf16.msra.mxu3 %v3510_v7  ;;  %v6812_v7 = vld [vmem:[#allocation8 + $0x158] sm:$0xf0] }
 0x754   :  { %3742 = vmatpush.bf16.msrb.mxu0 %v6811_v31  ;;  %v6858_v31 = vld [vmem:[#allocation8 + $0x1b0] sm:$0xf] }
 0x7b6   :  { %v3350_v8 = vpop.f32.mrf.mxu0 }
 0x7b7   :  { %v3351_v11 = vadd.f32 %v3350_v8, %v8461_v45  ;;  %v6815_v8 = vor.u32 %v7905_v10, %v6812_v7  ;;  %v6871_v10 = vor.u32 %v7919_v32, %v6868_v3  ;;  %v7918_v7 = vld [vmem:[#allocation8 + $0x1b4] sm:$0xf0]  ;;  %v3568_v3 = vperm.slane %v8715_v1, 2 }
 0x7b9   :  { %v3367_v46 = vsel %vm932_vm1, %v3351_v11, -inf }
 0x7ba   :  { %3368 = vmax.xlane.f32.xlu1 %v3367_v46  ;;  %v7904_v46 = vld [vmem:[#allocation8 + $0x144] sm:$0xf0] }
 0x7be   :  { %v3352_v49 = vpop.f32.mrf.mxu0  ;;  %v3363_v21 = vpop.f32.mrf.mxu1 }
 0x7bf   :  { %v3364_v63 = vadd.f32 %v3363_v21, %v8465_v50  ;;  %v7903_v49 = vld [vmem:[#allocation8 + $0x144] sm:$0xf] }
 0x7c1   :  { %v3370_v30 = vsel %vm932_vm1, %v3364_v63, -inf }
 0x7c2   :  { %3371 = vmax.xlane.f32.xlu2 %v3370_v30 }
 0x7c6   :  { %v3365_v22 = vpop.f32.mrf.mxu1  ;;  %v3448_v12 = vpop.f32.mrf.mxu0 }
 0x7c7   :  { %v3449_v4 = vadd.f32 %v3448_v12, %v8461_v45  ;;  %v6794_v22 = vld [vmem:[#allocation8 + $0x130] sm:$0xf]  ;;  %v7902_v12 = vld [vmem:[#allocation8 + $0x134] sm:$0xf0] }
 0x7c9   :  { %v3465_v6 = vsel %vm932_vm1, %v3449_v4, -inf }
 0x7ca   :  { %3466 = vmax.xlane.f32.xlu0 %v3465_v6  ;;  %v6795_v6 = vor.u32 %v7902_v12, %v6794_v22  ;;  %v7915_v22 = vld [vmem:[#allocation8 + $0x1a4] sm:$0xf] }
 0x7ce   :  { %v3450_v59 = vpop.f32.mrf.mxu0  ;;  %v3461_v23 = vpop.f32.mrf.mxu1 }
 0x7cf   :  { %v3462_v24 = vadd.f32 %v3461_v23, %v8465_v50  ;;  %v7926_v59 = vld [vmem:[#allocation8 + $0x1f4] sm:$0xf0]  ;;  %v7901_v23 = vld [vmem:[#allocation8 + $0x134] sm:$0xf] }
 0x7d1   :  { %v3468_v26 = vsel %vm932_vm1, %v3462_v24, -inf }
 0x7d2   :  { %3469 = vmax.xlane.f32.xlu1 %v3468_v26 }
 0x7d6   :  { %v3463_v28 = vpop.f32.mrf.mxu1 }
 0x82d   :  { %v3369_v33 = vpop.xlane.xlu1 %3368 }
 0x82e   :  { %v3373_v53 = vsub.f32 %v3351_v11, %v3369_v33  ;;  %v6802_v11 = vld [vmem:[#allocation8 + $0x140] sm:$0xf]  ;;  %v7925_v33 = vld [vmem:[#allocation8 + $0x1f4] sm:$0xf] }
 0x82f   :  { %v6803_v21 = vor.u32 %v7904_v46, %v6802_v11  ;;  %v6859_v46 = vor.u32 %v7918_v7, %v6858_v31  ;;  %v3569_v7 = vperm.slane %v8729_v25, 2 }
 0x830   :  { %v3375_v57 = vmul.f32 1.442695, %v3373_v53  ;;  %v6892_v53 = vld [vmem:[#allocation8 + $0x1f8] sm:$0xf0] }
 0x831   :  { %3743 = vmatpush.bf16.msrb.mxu0 %v6803_v21 }
 0x832   :  { %8141 = vpow2.f32 %v3375_v57  ;;  %v6895_v57 = vor.u32 %v7925_v33, %v6892_v53  ;;  %v6844_v33 = vld [vmem:[#allocation8 + $0x198] sm:$0xf0] }
 0x835   :  { %v3372_v34 = vpop.xlane.xlu2 %3371  ;;  %3744 = vmatpush.bf16.msrb.mxu0 %v6795_v6 }
 0x836   :  { %v3374_v35 = vsub.f32 %v3364_v63, %v3372_v34  ;;  %v6804_v63 = vld [vmem:[#allocation8 + $0x148] sm:$0xf0]  ;;  %v6786_v34 = vld [vmem:[#allocation8 + $0x120] sm:$0xf] }
 0x837   :  { %v6807_v30 = vor.u32 %v7903_v49, %v6804_v63  ;;  %v6860_v49 = vld [vmem:[#allocation8 + $0x1b8] sm:$0xf0]  ;;  %v6850_v63 = vld [vmem:[#allocation8 + $0x1a0] sm:$0xf] }
 0x838   :  { %v8142_v36 = vpop.eup %8141  ;;  %v3377_v37 = vmul.f32 1.442695, %v3374_v35  ;;  %v7900_v35 = vld [vmem:[#allocation8 + $0x124] sm:$0xf0] }
 0x839   :  { %v3385_v45 = vpack.c.bf16 %v8142_v36, %v8142_v36  ;;  %v3379_v47 = vsel %vm932_vm1, %v8142_v36, 0.0  ;;  %v6882_v36 = vld [vmem:[#allocation8 + $0x1e0] sm:$0xf] }
 0x83a   :  { %8143 = vpow2.f32 %v3377_v37  ;;  %3380 = vadd.xlane.f32.xlu2 %v3379_v47  ;;  %v6787_v37 = vor.u32 %v7900_v35, %v6786_v34  ;;  %v7899_v47 = vld [vmem:[#allocation8 + $0x124] sm:$0xf]  ;;  %v6834_v35 = vld [vmem:[#allocation8 + $0x180] sm:$0xf] }
 0x83b   :  { %6756 = vmatmul.msk.bf16.vlgmr.msrb.gmra.mxu2 %vm932_vm1, %v3385_v45  ;;  %v7924_v45 = vld [vmem:[#allocation8 + $0x1e4] sm:$0xf0] }
 0x83c   :  { %3768 = vmatpush.bf16.msrb.mxu2 %v6831_v58  ;;  %3745 = vmatpush.bf16.msrb.mxu0 %v6787_v37  ;;  %v6866_v58 = vld [vmem:[#allocation8 + $0x1c0] sm:$0xf]  ;;  %v7911_v37 = vld [vmem:[#allocation8 + $0x184] sm:$0xf] }
 0x83d   :  { %v3467_v50 = vpop.xlane.xlu0 %3466  ;;  %v6867_v61 = vor.u32 %v7920_v13, %v6866_v58 }
 0x83e   :  { %v3471_v51 = vsub.f32 %v3449_v4, %v3467_v50  ;;  %v6890_v4 = vld [vmem:[#allocation8 + $0x1f0] sm:$0xf]  ;;  %v6788_v50 = vld [vmem:[#allocation8 + $0x128] sm:$0xf0] }
 0x83f   :  { %v6891_v26 = vor.u32 %v7926_v59, %v6890_v4  ;;  %v6852_v4 = vld [vmem:[#allocation8 + $0x1a8] sm:$0xf0]  ;;  %v6842_v59 = vld [vmem:[#allocation8 + $0x190] sm:$0xf] }
 0x840   :  { %v8144_v38 = vpop.eup %8143  ;;  %v3473_v39 = vmul.f32 1.442695, %v3471_v51  ;;  %3769 = vmatpush.bf16.msrb.mxu2 %v6823_v16  ;;  %v6883_v51 = vor.u32 %v7924_v45, %v6882_v36  ;;  %v6775_v16 = vor.u32 %v7895_v14, %v6772_v62  ;;  %v6855_v6 = vor.u32 %v7915_v22, %v6852_v4  ;;  %v7912_v36 = vld [vmem:[#allocation8 + $0x184] sm:$0xf0] }
 0x841   :  { %v3386_v40 = vpack.c.bf16 %v8144_v38, %v8144_v38  ;;  %v3382_v41 = vsel %vm932_vm1, %v8144_v38, 0.0  ;;  %3754 = vmatpush.bf16.msrb.mxu1 %v6891_v26  ;;  %v6791_v38 = vor.u32 %v7899_v47, %v6788_v50  ;;  %v6836_v47 = vld [vmem:[#allocation8 + $0x188] sm:$0xf0]  ;;  %v6835_v50 = vor.u32 %v7912_v36, %v6834_v35  ;;  %v7955_v35 = vld [vmem:[#allocation10 + $0x2e4] sm:$0xf] }
 0x842   :  { %8145 = vpow2.f32 %v3473_v39  ;;  %3383 = vadd.xlane.f32.xlu0 %v3382_v41  ;;  %v7923_v39 = vld [vmem:[#allocation8 + $0x1e4] sm:$0xf]  ;;  %v7012_v36 = vld [vmem:[#allocation10 + $0x2f0] sm:$0xf0] }
 0x843   :  { %6757 = vmatmul.msk.bf16.vlgmr.msrb.gmra.mxu3 %vm932_vm1, %v3386_v40  ;;  %v6884_v40 = vld [vmem:[#allocation8 + $0x1e8] sm:$0xf0] }
 0x844   :  { %3770 = vmatpush.bf16.msrb.mxu2 %v6815_v8  ;;  %3782 = vmatpush.bf16.msrb.mxu3 %v6895_v57  ;;  %v6887_v41 = vor.u32 %v7923_v39, %v6884_v40  ;;  %v7917_v8 = vld [vmem:[#allocation8 + $0x1b4] sm:$0xf] }
 0x845   :  { %v3470_v56 = vpop.xlane.xlu1 %3469  ;;  %3755 = vmatpush.bf16.msrb.mxu1 %v6883_v51  ;;  %v6863_v21 = vor.u32 %v7917_v8, %v6860_v49 }
 0x846   :  { %v3472_v42 = vsub.f32 %v3462_v24, %v3470_v56  ;;  %v6796_v24 = vld [vmem:[#allocation8 + $0x138] sm:$0xf0]  ;;  %v6778_v56 = vld [vmem:[#allocation8 + $0x110] sm:$0xf] }
 0x847   :  { %v6799_v28 = vor.u32 %v7901_v23, %v6796_v24  ;;  %v7914_v23 = vld [vmem:[#allocation8 + $0x194] sm:$0xf0]  ;;  %v7913_v24 = vld [vmem:[#allocation8 + $0x194] sm:$0xf] }
 0x848   :  { %v8146_v44 = vpop.eup %8145  ;;  %v3475_v19 = vmul.f32 1.442695, %v3472_v42  ;;  %3771 = vmatpush.bf16.msrb.mxu2 %v6807_v30  ;;  %v7898_v42 = vld [vmem:[#allocation8 + $0x114] sm:$0xf0]  ;;  %3783 = vmatpush.bf16.msrb.mxu3 %v6887_v41  ;;  %v7916_v30 = vld [vmem:[#allocation8 + $0x1a4] sm:$0xf0]  ;;  %v6847_v34 = vor.u32 %v7913_v24, %v6844_v33 }
 0x849   :  { %v3483_v27 = vpack.c.bf16 %v8146_v44, %v8146_v44  ;;  %v3477_v52 = vsel %vm932_vm1, %v8146_v44, 0.0  ;;  %v6874_v44 = vld [vmem:[#allocation8 + $0x1d0] sm:$0xf]  ;;  %v6851_v12 = vor.u32 %v7916_v30, %v6850_v63 }
 0x84a   :  { %8147 = vpow2.f32 %v3475_v19  ;;  %3478 = vadd.xlane.f32.xlu1 %v3477_v52  ;;  %v6779_v19 = vor.u32 %v7898_v42, %v6778_v56  ;;  %v7897_v52 = vld [vmem:[#allocation8 + $0x114] sm:$0xf] }
 0x84b   :  { %6758 = vmatmul.msk.bf16.vlgmr.msra.gmra.mxu2 %vm932_vm1, %v3483_v27  ;;  %v7922_v27 = vld [vmem:[#allocation8 + $0x1d4] sm:$0xf0] }
 0x84c   :  { %3772 = vmatpush.bf16.msrb.mxu2 %v6799_v28  ;;  %3746 = vmatpush.bf16.msrb.mxu0 %v6779_v19  ;;  %v6843_v28 = vor.u32 %v7914_v23, %v6842_v59 }
 0x84d   :  { %3784 = vmatpush.bf16.msrb.mxu3 %v6879_v20 }
 0x850   :  { %v8148_v54 = vpop.eup %8147  ;;  %3773 = vmatpush.bf16.msrb.mxu2 %v6791_v38  ;;  %3747 = vmatpush.bf16.msrb.mxu0 %v6771_v9  ;;  %v6839_v38 = vor.u32 %v7911_v37, %v6836_v47  ;;  %v7987_v47 = vld [vmem:[#allocation10 + $0x3e4] sm:$0xf] }
 0x851   :  { %v3484_v55 = vpack.c.bf16 %v8148_v54, %v8148_v54  ;;  %v3480_v15 = vsel %vm932_vm1, %v8148_v54, 0.0  ;;  %v6780_v54 = vld [vmem:[#allocation8 + $0x118] sm:$0xf0]  ;;  %3785 = vmatpush.bf16.msrb.mxu3 %v6871_v10 }
 0x852   :  { %3481 = vadd.xlane.f32.xlu2 %v3480_v15  ;;  %v6783_v15 = vor.u32 %v7897_v52, %v6780_v54 }
 0x853   :  { %6759 = vmatmul.msk.bf16.vlgmr.msra.gmra.mxu3 %vm932_vm1, %v3484_v55  ;;  %v6875_v55 = vor.u32 %v7922_v27, %v6874_v44 }
 0x854   :  { %3774 = vmatpush.bf16.msrb.mxu2 %v6783_v15 }
 0x855   :  { %3756 = vmatpush.bf16.msrb.mxu1 %v6875_v55  ;;  %3786 = vmatpush.bf16.msrb.mxu3 %v6863_v21 }
 0x858   :  { %3775 = vmatpush.bf16.msrb.mxu2 %v6775_v16 }
 0x859   :  { %3757 = vmatpush.bf16.msrb.mxu1 %v6867_v61  ;;  %3787 = vmatpush.bf16.msrb.mxu3 %v6855_v6 }
 0x85d   :  { %3758 = vmatpush.bf16.msrb.mxu1 %v6859_v46  ;;  %3788 = vmatpush.bf16.msrb.mxu3 %v6847_v34 }
 0x861   :  { %3759 = vmatpush.bf16.msrb.mxu1 %v6851_v12  ;;  %3789 = vmatpush.bf16.msrb.mxu3 %v6839_v38 }
 0x865   :  { %3760 = vmatpush.bf16.msrb.mxu1 %v6843_v28 }
 0x869   :  { %3761 = vmatpush.bf16.msrb.mxu1 %v6835_v50  ;;  %v7140_v50 = vld [vmem:[#allocation10 + $0x3f0] sm:$0xf0] }
 0x86a   :  { %v7143_v38 = vor.u32 %v7987_v47, %v7140_v50  ;;  %v7076_v47 = vld [vmem:[#allocation10 + $0x370] sm:$0xf0] }
 0x86c   :  { %4295 = vmatpush.bf16.msra.mxu3 %v7143_v38  ;;  %v7937_v38 = vld [vmem:[#allocation10 + $0x24c] sm:$0xf0] }
 0x8ad   :  { %v3381_v11 = vpop.xlane.xlu2 %3380 }
 0x8ae   :  { %8149 = vrcp.f32 %v3381_v11 }
 0x8b4   :  { %v8150_v53 = vpop.eup %8149 }
 0x8b5   :  { %v3384_v26 = vpop.xlane.xlu0 %3383 }
 0x8b6   :  { %8151 = vrcp.f32 %v3384_v26 }
 0x8bc   :  { %v8152_v40 = vpop.eup %8151 }
 0x8bd   :  { %v3479_v39 = vpop.xlane.xlu1 %3478 }
 0x8be   :  { %v3404_v57 = vpop.f32.mrf.mxu2  ;;  %8153 = vrcp.f32 %v3479_v39  ;;  %v7953_v39 = vld [vmem:[#allocation10 + $0x2cc] sm:$0xf0] }
 0x8bf   :  { %v3429_v45 = vmul.f32 %v8150_v53, %v3404_v57  ;;  %v7010_v53 = vld [vmem:[#allocation10 + $0x2e0] sm:$0xf]  ;;  %v7957_v57 = vld [vmem:[#allocation10 + $0x2ec] sm:$0xf0] }
 0x8c0   :  { %v7011_v34 = vor.u32 %v7957_v57, %v7010_v53  ;;  %v7941_v53 = vld [vmem:[#allocation10 + $0x26c] sm:$0xf0]  ;;  %v7074_v57 = vld [vmem:[#allocation10 + $0x360] sm:$0xf] }
 0x8c1   :  { %v3431_v51 = vpack.c.bf16 %v3429_v45, %v3429_v45  ;;  %v7015_v45 = vor.u32 %v7955_v35, %v7012_v36  ;;  %v6948_v35 = vld [vmem:[#allocation10 + $0x270] sm:$0xf0] }
 0x8c2   :  { %4253 = vmatpush.bf16.msra.mxu0 %v7011_v34  ;;  %v7973_v34 = vld [vmem:[#allocation10 + $0x36c] sm:$0xf0] }
 0x8c3   :  { %3433 = vst [vmem:[#allocation3] sm:$0xf] %v3431_v51  ;;  %v6994_v51 = vld [vmem:[#allocation10 + $0x2c0] sm:$0xf]  ;;  %4281 = vmatpush.bf16.msra.mxu2 %v7015_v45  ;;  %v7075_v36 = vor.u32 %v7973_v34, %v7074_v57  ;;  %v7971_v45 = vld [vmem:[#allocation10 + $0x364] sm:$0xf] }
 0x8c4   :  { %v8154_v27 = vpop.eup %8153  ;;  %v7079_v50 = vor.u32 %v7971_v45, %v7076_v47  ;;  %v7130_v34 = vld [vmem:[#allocation10 + $0x3c8] sm:$0xf]  ;;  %v7984_v45 = vld [vmem:[#allocation10 + $0x3cc] sm:$0xf]  ;;  %v7132_v47 = vld [vmem:[#allocation10 + $0x3d8] sm:$0xf0] }
 0x8c5   :  { %v3482_v19 = vpop.xlane.xlu2 %3481 }
 0x8c6   :  { %v3406_v41 = vpop.f32.mrf.mxu2  ;;  %v3423_v56 = vpop.f32.mrf.mxu3  ;;  %8155 = vrcp.f32 %v3482_v19 }
 0x8c7   :  { %v3430_v42 = vmul.f32 %v8152_v40, %v3423_v56  ;;  %v7985_v40 = vld [vmem:[#allocation10 + $0x3cc] sm:$0xf0]  ;;  %v7951_v56 = vld [vmem:[#allocation10 + $0x2c4] sm:$0xf] }
 0x8c9   :  { %v3432_v44 = vpack.c.bf16 %v3430_v42, %v3430_v42  ;;  %v6996_v42 = vld [vmem:[#allocation10 + $0x2d0] sm:$0xf0] }
 0x8ca   :  { %v6762_v0 = vld [vmem:[#allocation3] sm:$0xf]  ;;  %v6999_v19 = vor.u32 %v7951_v56, %v6996_v42 }
 0x8cb   :  { %3434 = vst [vmem:[#allocation3 + $0x8] sm:$0xf] %v3432_v44  ;;  %v7983_v44 = vld [vmem:[#allocation10 + $0x3c4] sm:$0xf] }
 0x8cc   :  { %v8156_v5 = vpop.eup %8155  ;;  %4282 = vmatpush.bf16.msra.mxu2 %v6999_v19  ;;  %v7060_v19 = vld [vmem:[#allocation10 + $0x350] sm:$0xf0] }
 0x8ce   :  { %v3425_v52 = vpop.f32.mrf.mxu3  ;;  %v3502_v54 = vpop.f32.mrf.mxu2 }
 0x8cf   :  { %v3527_v55 = vmul.f32 %v8154_v27, %v3502_v54  ;;  %v7124_v27 = vld [vmem:[#allocation10 + $0x3d0] sm:$0xf0] }
 0x8d0   :  { %v7127_v52 = vor.u32 %v7983_v44, %v7124_v27  ;;  %v7967_v44 = vld [vmem:[#allocation10 + $0x344] sm:$0xf] }
 0x8d1   :  { %v3529_v15 = vpack.c.bf16 %v3527_v55, %v3527_v55  ;;  %v7063_v27 = vor.u32 %v7967_v44, %v7060_v19 }
 0x8d2   :  { %v7894_v29 = vld [vmem:[#allocation3 + $0x4] sm:$0xf0]  ;;  %4296 = vmatpush.bf16.msra.mxu3 %v7127_v52  ;;  %v6914_v52 = vld [vmem:[#allocation10 + $0x220] sm:$0xf] }
 0x8d3   :  { %3531 = vst [vmem:[#allocation3 + $0x4] sm:$0xf] %v3529_v15  ;;  %v6763_v20 = vor.u32 %v7894_v29, %v6762_v0 }
 0x8d5   :  { %3748 = vmatmul.bf16.vlgmr.msrb.gmra.mxu0 %v6763_v20  ;;  %3776 = vmatmul.bf16.vlgmr.msrb.gmra.mxu2 %v6763_v20 }
 0x8d6   :  { %v3504_v48 = vpop.f32.mrf.mxu2  ;;  %v3521_v58 = vpop.f32.mrf.mxu3 }
 0x8d7   :  { %v3528_v9 = vmul.f32 %v8156_v5, %v3521_v58 }
 0x8d9   :  { %v3530_v13 = vpack.c.bf16 %v3528_v9, %v3528_v9 }
 0x8da   :  { %v7893_v62 = vld [vmem:[#allocation3 + $0x4] sm:$0xf] }
 0x8db   :  { %3532 = vst [vmem:[#allocation3 + $0xc] sm:$0xf] %v3530_v13 }
 0x8de   :  { %v3523_v14 = vpop.f32.mrf.mxu3 }
 0x8e2   :  { %v6764_v61 = vld [vmem:[#allocation3 + $0x8] sm:$0xf0] }
 0x8e3   :  { %v6767_v16 = vor.u32 %v7893_v62, %v6764_v61 }
 0x8e5   :  { %3762 = vmatmul.bf16.vlgmr.msrb.gmra.mxu1 %v6767_v16  ;;  %3790 = vmatmul.bf16.vlgmr.msrb.gmra.mxu3 %v6767_v16  ;;  %v6978_v16 = vld [vmem:[#allocation10 + $0x2a0] sm:$0xf] }
 0x952   :  { %v3749_v32 = vpop.f32.mrf.mxu0 }
 0x953   :  { %v3750_v8 = vadd.f32 %v3749_v32, %v3568_v3  ;;  %v7949_v32 = vld [vmem:[#allocation10 + $0x2ac] sm:$0xf0] }
 0x958   :  { %v3777_v10 = vpop.f32.mrf.mxu2 }
 0x959   :  { %v3778_v11 = vadd.f32 %v3777_v10, %v3569_v7  ;;  %v6979_v10 = vor.u32 %v7949_v32, %v6978_v16  ;;  %v6898_v32 = vld [vmem:[#allocation10 + $0x200] sm:$0xf] }
 0x95a   :  { %v3751_v63 = vpop.f32.mrf.mxu0 }
 0x95b   :  { %v3752_v6 = vadd.f32 %v3751_v63, %v3568_v3  ;;  %v7106_v3 = vld [vmem:[#allocation10 + $0x3a0] sm:$0xf] }
 0x960   :  { %v3779_v12 = vpop.f32.mrf.mxu2 }
 0x961   :  { %v3780_v23 = vadd.f32 %v3779_v12, %v3569_v7  ;;  %v7947_v7 = vld [vmem:[#allocation10 + $0x2a4] sm:$0xf]  ;;  %v7090_v12 = vld [vmem:[#allocation10 + $0x380] sm:$0xf] }
 0x962   :  { %v3763_v31 = vpop.f32.mrf.mxu1 }
 0x963   :  { %v3764_v46 = vadd.f32 %v3763_v31, %v3750_v8  ;;  %v7981_v31 = vld [vmem:[#allocation10 + $0x3ac] sm:$0xf0]  ;;  %v6980_v8 = vld [vmem:[#allocation10 + $0x2b0] sm:$0xf0] }
 0x965   :  { %v3796_v30 = vadd.f32 %v3764_v46, %v8681_v43  ;;  %v7138_v43 = vld [vmem:[#allocation10 + $0x3e0] sm:$0xf]  ;;  %v6983_v46 = vor.u32 %v7947_v7, %v6980_v8  ;;  %v7961_v7 = vld [vmem:[#allocation10 + $0x30c] sm:$0xf0]  ;;  %v7927_v8 = vld [vmem:[#allocation10 + $0x204] sm:$0xf] }
 0x967   :  { %4283 = vmatpush.bf16.msra.mxu2 %v6983_v46 }
 0x968   :  { %v3791_v49 = vpop.f32.mrf.mxu3 }
 0x969   :  { %v3792_v21 = vadd.f32 %v3791_v49, %v3778_v11  ;;  %v7107_v11 = vor.u32 %v7981_v31, %v7106_v3  ;;  %v7979_v49 = vld [vmem:[#allocation10 + $0x3a4] sm:$0xf]  ;;  %v7929_v3 = vld [vmem:[#allocation10 + $0x20c] sm:$0xf0] }
 0x96a   :  { %v3765_v4 = vpop.f32.mrf.mxu1  ;;  %v6899_v31 = vor.u32 %v7929_v3, %v6898_v32  ;;  %v7976_v32 = vld [vmem:[#allocation10 + $0x38c] sm:$0xf]  ;;  %v7100_v3 = vld [vmem:[#allocation10 + $0x398] sm:$0xf0] }
 0x96b   :  { %v3797_v22 = vadd.f32 %v3792_v21, %v8683_v17  ;;  %v3766_v1 = vadd.f32 %v3765_v4, %v3752_v6  ;;  %v7989_v17 = vld [vmem:[#allocation10 + $0x3ec] sm:$0xf0]  ;;  %v7108_v21 = vld [vmem:[#allocation10 + $0x3b0] sm:$0xf0] }
 0x96c   :  { %v7139_v37 = vor.u32 %v7989_v17, %v7138_v43  ;;  %v7111_v63 = vor.u32 %v7979_v49, %v7108_v21  ;;  %v7977_v6 = vld [vmem:[#allocation10 + $0x38c] sm:$0xf0]  ;;  %v7939_v17 = vld [vmem:[#allocation10 + $0x264] sm:$0xf] }
 0x96d   :  { %v3800_v59 = vadd.f32 %v3797_v22, %v3796_v30  ;;  %v3798_v25 = vadd.f32 %v3766_v1, %v8685_v2  ;;  %v7122_v2 = vld [vmem:[#allocation10 + $0x3c0] sm:$0xf]  ;;  %v7091_v1 = vor.u32 %v7977_v6, %v7090_v12  ;;  %v7959_v21 = vld [vmem:[#allocation10 + $0x304] sm:$0xf]  ;;  %v7958_v12 = vld [vmem:[#allocation10 + $0x2f4] sm:$0xf0] }
 0x96e   :  { %4267 = vmatpush.bf16.msra.mxu1 %v7139_v37  ;;  %v7123_v41 = vor.u32 %v7985_v40, %v7122_v2  ;;  %4297 = vmatpush.bf16.msra.mxu3 %v7111_v63  ;;  %v6951_v37 = vor.u32 %v7939_v17, %v6948_v35  ;;  %v7969_v40 = vld [vmem:[#allocation10 + $0x34c] sm:$0xf0]  ;;  %v7028_v63 = vld [vmem:[#allocation10 + $0x310] sm:$0xf0]  ;;  %v7990_v6 = vld [vmem:[#allocation10 + $0x3f4] sm:$0xf0] }
 0x96f   :  { %3801 = vadd.xlane.f32.xlu0 %v3800_v59  ;;  %v7943_v59 = vld [vmem:[#allocation10 + $0x284] sm:$0xf]  ;;  %v7986_v17 = vld [vmem:[#allocation10 + $0x3d4] sm:$0xf0]  ;;  %v7952_v35 = vld [vmem:[#allocation10 + $0x2cc] sm:$0xf] }
 0x970   :  { %v3793_v24 = vpop.f32.mrf.mxu3 }
 0x971   :  { %v3794_v26 = vadd.f32 %v3793_v24, %v3780_v23  ;;  %v6964_v23 = vld [vmem:[#allocation10 + $0x290] sm:$0xf0] }
 0x972   :  { %4268 = vmatpush.bf16.msra.mxu1 %v7123_v41  ;;  %v6967_v24 = vor.u32 %v7943_v59, %v6964_v23  ;;  %v6932_v41 = vld [vmem:[#allocation10 + $0x250] sm:$0xf0] }
 0x973   :  { %v3799_v28 = vadd.f32 %v3794_v26, %v8687_v18  ;;  %v6995_v18 = vor.u32 %v7953_v39, %v6994_v51  ;;  %v7975_v26 = vld [vmem:[#allocation10 + $0x384] sm:$0xf]  ;;  %v6930_v51 = vld [vmem:[#allocation10 + $0x240] sm:$0xf] }
 0x974   :  { %4284 = vmatpush.bf16.msra.mxu2 %v6967_v24  ;;  %v7058_v39 = vld [vmem:[#allocation10 + $0x340] sm:$0xf]  ;;  %v6931_v2 = vor.u32 %v7937_v38, %v6930_v51  ;;  %v7020_v24 = vld [vmem:[#allocation10 + $0x2f8] sm:$0xf0]  ;;  %v7135_v51 = vor.u32 %v7984_v45, %v7132_v47  ;;  %v6986_v38 = vld [vmem:[#allocation10 + $0x2a8] sm:$0xf] }
 0x975   :  { %v3803_v33 = vadd.f32 %v3799_v28, %v3798_v25  ;;  %4254 = vmatpush.bf16.msra.mxu0 %v6995_v18  ;;  %v7935_v18 = vld [vmem:[#allocation10 + $0x244] sm:$0xf]  ;;  %v7059_v56 = vor.u32 %v7969_v40, %v7058_v39  ;;  %v7950_v39 = vld [vmem:[#allocation10 + $0x2b4] sm:$0xf0] }
 0x976   :  { %4269 = vmatpush.bf16.msra.mxu1 %v7107_v11  ;;  %v6935_v42 = vor.u32 %v7935_v18, %v6932_v41  ;;  %v6900_v11 = vld [vmem:[#allocation10 + $0x210] sm:$0xf0]  ;;  %v6987_v40 = vor.u32 %v7950_v39, %v6986_v38  ;;  %v7982_v18 = vld [vmem:[#allocation10 + $0x3b4] sm:$0xf0]  ;;  %v7948_v41 = vld [vmem:[#allocation10 + $0x2ac] sm:$0xf] }
 0x977   :  { %3804 = vadd.xlane.f32.xlu1 %v3803_v33  ;;  %v6946_v33 = vld [vmem:[#allocation10 + $0x260] sm:$0xf]  ;;  %v6903_v49 = vor.u32 %v7927_v8, %v6900_v11  ;;  %v7942_v8 = vld [vmem:[#allocation10 + $0x274] sm:$0xf0]  ;;  %v7082_v11 = vld [vmem:[#allocation10 + $0x368] sm:$0xf] }
 0x978   :  { %v6947_v43 = vor.u32 %v7941_v53, %v6946_v33  ;;  %4285 = vmatpush.bf16.msra.mxu2 %v6951_v37  ;;  %v7002_v33 = vld [vmem:[#allocation10 + $0x2c8] sm:$0xf]  ;;  %v7954_v53 = vld [vmem:[#allocation10 + $0x2d4] sm:$0xf0]  ;;  %v7004_v37 = vld [vmem:[#allocation10 + $0x2d8] sm:$0xf0] }
 0x979   :  { %4255 = vmatpush.bf16.msra.mxu0 %v6979_v10  ;;  %v7026_v10 = vld [vmem:[#allocation10 + $0x300] sm:$0xf]  ;;  %v7934_v47 = vld [vmem:[#allocation10 + $0x234] sm:$0xf0]  ;;  %v7932_v39 = vld [vmem:[#allocation10 + $0x22c] sm:$0xf] }
 0x97a   :  { %4270 = vmatpush.bf16.msra.mxu1 %v7091_v1  ;;  %v7027_v46 = vor.u32 %v7961_v7, %v7026_v10  ;;  %v7956_v1 = vld [vmem:[#allocation10 + $0x2ec] sm:$0xf]  ;;  %v6954_v7 = vld [vmem:[#allocation10 + $0x268] sm:$0xf] }
 0x97c   :  { %4286 = vmatpush.bf16.msra.mxu2 %v6935_v42 }
 0x97e   :  { %4271 = vmatpush.bf16.msra.mxu1 %v7075_v36  ;;  %v7131_v36 = vor.u32 %v7986_v17, %v7130_v34 }
 0x982   :  { %4272 = vmatpush.bf16.msra.mxu1 %v7059_v56  ;;  %v6988_v56 = vld [vmem:[#allocation10 + $0x2b8] sm:$0xf0] }
 0x983   :  { %v6991_v19 = vor.u32 %v7948_v41, %v6988_v56  ;;  %v7052_v41 = vld [vmem:[#allocation10 + $0x338] sm:$0xf0] }
 0x9e2   :  { %v3802_v54 = vpop.xlane.xlu0 %3801 }
 0x9e3   :  { %v3806_v55 = vmul.f32 %v3802_v54, %v8488_v60  ;;  %v7933_v54 = vld [vmem:[#allocation10 + $0x22c] sm:$0xf0] }
 0x9e5   :  { %v8763_v15 = vsub.f32 %v3796_v30, %v3806_v55  ;;  %v8765_v0 = vsub.f32 %v3797_v22, %v3806_v55  ;;  %v6962_v30 = vld [vmem:[#allocation10 + $0x280] sm:$0xf]  ;;  %v7945_v22 = vld [vmem:[#allocation10 + $0x28c] sm:$0xf0] }
 0x9e6   :  { %v6963_v4 = vor.u32 %v7945_v22, %v6962_v30  ;;  %v7042_v55 = vld [vmem:[#allocation10 + $0x320] sm:$0xf]  ;;  %v7018_v30 = vld [vmem:[#allocation10 + $0x2e8] sm:$0xf]  ;;  %v7031_v22 = vor.u32 %v7959_v21, %v7028_v63  ;;  %v7940_v21 = vld [vmem:[#allocation10 + $0x26c] sm:$0xf] }
 0x9e7   :  { %v3812_v29 = vmul.f32 %v8763_v15, %v8763_v15  ;;  %v3813_v20 = vmul.f32 %v8765_v0, %v8765_v0  ;;  %v7019_v59 = vor.u32 %v7958_v12, %v7018_v30  ;;  %v6956_v63 = vld [vmem:[#allocation10 + $0x278] sm:$0xf0] }
 0x9e8   :  { %4256 = vmatpush.bf16.msra.mxu0 %v6963_v4  ;;  %v7146_v4 = vld [vmem:[#allocation10 + $0x3e8] sm:$0xf]  ;;  %v6959_v12 = vor.u32 %v7940_v21, %v6956_v63  ;;  %v8794_v21 = vld [vmem:[%s9141_s6 + $0x30] sm:$0xff] }
 0x9e9   :  { %v3816_v5 = vadd.f32 %v3813_v20, %v3812_v29  ;;  %v6915_v29 = vor.u32 %v7933_v54, %v6914_v52  ;;  %v7965_v20 = vld [vmem:[#allocation10 + $0x32c] sm:$0xf0]  ;;  %v7147_v23 = vor.u32 %v7990_v6, %v7146_v4  ;;  %v7116_v52 = vld [vmem:[#allocation10 + $0x3b8] sm:$0xf0]  ;;  %v7972_v4 = vld [vmem:[#allocation10 + $0x36c] sm:$0xf] }
 0x9ea   :  { %v3805_v48 = vpop.xlane.xlu1 %3804  ;;  %v7084_v6 = vld [vmem:[#allocation10 + $0x378] sm:$0xf0]  ;;  %v3850_v63 = vperm.slane %v8794_v21, 4 }
 0x9eb   :  { %v3807_v58 = vmul.f32 %v3805_v48, %v8488_v60  ;;  %3817 = vadd.xlane.f32.xlu2 %v3816_v5  ;;  %v7931_v5 = vld [vmem:[#allocation10 + $0x224] sm:$0xf]  ;;  %v6916_v48 = vld [vmem:[#allocation10 + $0x230] sm:$0xf0] }
 0x9ec   :  { %4257 = vmatpush.bf16.msra.mxu0 %v6947_v43  ;;  %v7003_v43 = vor.u32 %v7954_v53, %v7002_v33  ;;  %v6940_v33 = vld [vmem:[#allocation10 + $0x258] sm:$0xf0]  ;;  %v7968_v53 = vld [vmem:[#allocation10 + $0x34c] sm:$0xf] }
 0x9ed   :  { %v8772_v9 = vsub.f32 %v3798_v25, %v3807_v58  ;;  %v8774_v13 = vsub.f32 %v3799_v28, %v3807_v58  ;;  %v7092_v25 = vld [vmem:[#allocation10 + $0x390] sm:$0xf0]  ;;  %v7043_v58 = vor.u32 %v7965_v20, %v7042_v55  ;;  %v7946_v20 = vld [vmem:[#allocation10 + $0x294] sm:$0xf0] }
 0x9ee   :  { %v7095_v28 = vor.u32 %v7975_v26, %v7092_v25  ;;  %v7988_v26 = vld [vmem:[#allocation10 + $0x3ec] sm:$0xf]  ;;  %v7023_v25 = vor.u32 %v7956_v1, %v7020_v24  ;;  %v7087_v1 = vor.u32 %v7972_v4, %v7084_v6  ;;  %v7938_v24 = vld [vmem:[#allocation10 + $0x254] sm:$0xf0]  ;;  %v3856_v6 = vperm.slane %v8794_v21, 5 }
 0x9ef   :  { %v3814_v14 = vmul.f32 %v8772_v9, %v8772_v9  ;;  %v3815_v62 = vmul.f32 %v8774_v13, %v8774_v13  ;;  %4273 = vmatpush.bf16.msra.mxu1 %v7043_v58 }
 0x9f0   :  { %4298 = vmatpush.bf16.msra.mxu3 %v7095_v28  ;;  %4258 = vmatpush.bf16.msra.mxu0 %v6931_v2  ;;  %v7148_v28 = vld [vmem:[#allocation10 + $0x3f8] sm:$0xf0]  ;;  %v7114_v2 = vld [vmem:[#allocation10 + $0x3a8] sm:$0xf] }
 0x9f1   :  { %v3819_v61 = vadd.f32 %v3815_v62, %v3814_v14  ;;  %v6919_v14 = vor.u32 %v7931_v5, %v6916_v48  ;;  %v7963_v62 = vld [vmem:[#allocation10 + $0x324] sm:$0xf]  ;;  %v7151_v57 = vor.u32 %v7988_v26, %v7148_v28  ;;  %v7115_v44 = vor.u32 %v7982_v18, %v7114_v2  ;;  %v7098_v5 = vld [vmem:[#allocation10 + $0x388] sm:$0xf]  ;;  %v7936_v28 = vld [vmem:[#allocation10 + $0x24c] sm:$0xf] }
 0x9f2   :  { %v7066_v26 = vld [vmem:[#allocation10 + $0x348] sm:$0xf]  ;;  %v6943_v45 = vor.u32 %v7936_v28, %v6940_v33  ;;  %v6924_v2 = vld [vmem:[#allocation10 + $0x238] sm:$0xf0]  ;;  %v7964_v18 = vld [vmem:[#allocation10 + $0x32c] sm:$0xf] }
 0x9f3   :  { %3820 = vadd.xlane.f32.xlu0 %v3819_v61  ;;  %v7044_v61 = vld [vmem:[#allocation10 + $0x330] sm:$0xf0]  ;;  %4287 = vmatpush.bf16.msra.mxu2 %v6919_v14  ;;  %v7978_v14 = vld [vmem:[#allocation10 + $0x394] sm:$0xf0] }
 0x9f4   :  { %4299 = vmatpush.bf16.msra.mxu3 %v7079_v50  ;;  %4259 = vmatpush.bf16.msra.mxu0 %v6915_v29  ;;  %v7047_v16 = vor.u32 %v7963_v62, %v7044_v61  ;;  %v7007_v50 = vor.u32 %v7952_v35, %v7004_v37  ;;  %v6970_v29 = vld [vmem:[#allocation10 + $0x288] sm:$0xf]  ;;  %v7944_v62 = vld [vmem:[#allocation10 + $0x28c] sm:$0xf]  ;;  %v7099_v61 = vor.u32 %v7978_v14, %v7098_v5  ;;  %v7068_v35 = vld [vmem:[#allocation10 + $0x358] sm:$0xf0] }
 0x9f5   :  { %4274 = vmatpush.bf16.msra.mxu1 %v7027_v46  ;;  %v6971_v58 = vor.u32 %v7946_v20, %v6970_v29  ;;  %v6955_v46 = vor.u32 %v7942_v8, %v6954_v7  ;;  %v7071_v38 = vor.u32 %v7968_v53, %v7068_v35  ;;  %v7055_v29 = vor.u32 %v7964_v18, %v7052_v41  ;;  %v7928_v20 = vld [vmem:[#allocation10 + $0x20c] sm:$0xf]  ;;  %v6908_v5 = vld [vmem:[#allocation10 + $0x218] sm:$0xf0]  ;;  %v8006_v53 = vld [vmem:[#allocation11 + $0x274] sm:$0xf0] }
 0x9f6   :  { %v7960_v14 = vld [vmem:[#allocation10 + $0x30c] sm:$0xf]  ;;  %v7186_v41 = vld [vmem:[#allocation11 + $0x240] sm:$0xf] }
 0x9f7   :  { %4288 = vmatpush.bf16.msra.mxu2 %v6903_v49  ;;  %v7974_v49 = vld [vmem:[#allocation10 + $0x374] sm:$0xf0] }
 0x9f8   :  { %4300 = vmatpush.bf16.msra.mxu3 %v7063_v27  ;;  %4260 = vmatpush.bf16.msra.mxu0 %v6899_v31  ;;  %v7980_v27 = vld [vmem:[#allocation10 + $0x3ac] sm:$0xf]  ;;  %v7103_v31 = vor.u32 %v7976_v32, %v7100_v3 }
 0x9f9   :  { %4323 = vmatpush.bf16.msrb.mxu1 %v7147_v23  ;;  %v7119_v55 = vor.u32 %v7980_v27, %v7116_v52  ;;  %v6927_v52 = vor.u32 %v7932_v39, %v6924_v2  ;;  %v7266_v2 = vld [vmem:[#allocation11 + $0x2e0] sm:$0xf] }
 0x9fb   :  { %4337 = vmatpush.bf16.msrb.mxu2 %v7023_v25  ;;  %v7970_v25 = vld [vmem:[#allocation10 + $0x354] sm:$0xf0] }
 0x9fc   :  { %4301 = vmatpush.bf16.msra.mxu3 %v7047_v16  ;;  %4309 = vmatpush.bf16.msrb.mxu0 %v7019_v59  ;;  %v6972_v16 = vld [vmem:[#allocation10 + $0x298] sm:$0xf0]  ;;  %v6938_v59 = vld [vmem:[#allocation10 + $0x248] sm:$0xf]  ;;  %v7067_v17 = vor.u32 %v7970_v25, %v7066_v26 }
 0x9fd   :  { %4324 = vmatpush.bf16.msrb.mxu1 %v7131_v36  ;;  %v6975_v10 = vor.u32 %v7944_v62, %v6972_v16  ;;  %v6939_v34 = vor.u32 %v7938_v24, %v6938_v59  ;;  %v6922_v36 = vld [vmem:[#allocation10 + $0x228] sm:$0xf]  ;;  %v7036_v62 = vld [vmem:[#allocation10 + $0x318] sm:$0xf0] }
 0x9fe   :  { %v6923_v56 = vor.u32 %v7934_v47, %v6922_v36  ;;  %v7039_v7 = vor.u32 %v7960_v14, %v7036_v62  ;;  %v8004_v36 = vld [vmem:[#allocation11 + $0x264] sm:$0xf0]  ;;  %v8022_v47 = vld [vmem:[#allocation11 + $0x2f4] sm:$0xf0] }
 0x9ff   :  { %4338 = vmatpush.bf16.msrb.mxu2 %v7007_v50  ;;  %v7050_v50 = vld [vmem:[#allocation10 + $0x328] sm:$0xf] }
 0xa00   :  { %4302 = vmatpush.bf16.msra.mxu3 %v7031_v22  ;;  %4310 = vmatpush.bf16.msrb.mxu0 %v7003_v43  ;;  %v7083_v22 = vor.u32 %v7974_v49, %v7082_v11  ;;  %v8016_v14 = vld [vmem:[#allocation11 + $0x2c4] sm:$0xf0] }
 0xa01   :  { %4325 = vmatpush.bf16.msrb.mxu1 %v7115_v44  ;;  %v6906_v44 = vld [vmem:[#allocation10 + $0x208] sm:$0xf] }
 0xa03   :  { %4339 = vmatpush.bf16.msrb.mxu2 %v6991_v19  ;;  %v7930_v19 = vld [vmem:[#allocation10 + $0x214] sm:$0xf0] }
 0xa04   :  { %4351 = vmatpush.bf16.msrb.mxu3 %v7151_v57  ;;  %4311 = vmatpush.bf16.msrb.mxu0 %v6987_v40  ;;  %v6907_v16 = vor.u32 %v7930_v19, %v6906_v44  ;;  %v7258_v44 = vld [vmem:[#allocation11 + $0x2d0] sm:$0xf]  ;;  %v8018_v19 = vld [vmem:[#allocation11 + $0x2d4] sm:$0xf0] }
 0xa05   :  { %4326 = vmatpush.bf16.msrb.mxu1 %v7099_v61 }
 0xa07   :  { %4340 = vmatpush.bf16.msrb.mxu2 %v6975_v10 }
 0xa08   :  { %4352 = vmatpush.bf16.msrb.mxu3 %v7135_v51  ;;  %4312 = vmatpush.bf16.msrb.mxu0 %v6971_v58  ;;  %v7966_v51 = vld [vmem:[#allocation10 + $0x334] sm:$0xf0] }
 0xa09   :  { %4327 = vmatpush.bf16.msrb.mxu1 %v7083_v22 }
 0xa0b   :  { %4341 = vmatpush.bf16.msrb.mxu2 %v6959_v12 }
 0xa0c   :  { %4353 = vmatpush.bf16.msrb.mxu3 %v7119_v55  ;;  %4313 = vmatpush.bf16.msrb.mxu0 %v6955_v46  ;;  %v7962_v55 = vld [vmem:[#allocation10 + $0x314] sm:$0xf0] }
 0xa0d   :  { %4328 = vmatpush.bf16.msrb.mxu1 %v7067_v17 }
 0xa0f   :  { %4342 = vmatpush.bf16.msrb.mxu2 %v6943_v45  ;;  %v7274_v45 = vld [vmem:[#allocation11 + $0x2f0] sm:$0xf] }
 0xa10   :  { %4354 = vmatpush.bf16.msrb.mxu3 %v7103_v31  ;;  %4314 = vmatpush.bf16.msrb.mxu0 %v6939_v34  ;;  %v6911_v31 = vor.u32 %v7928_v20, %v6908_v5  ;;  %v8038_v20 = vld [vmem:[#allocation11 + $0x374] sm:$0xf0] }
 0xa13   :  { %4343 = vmatpush.bf16.msrb.mxu2 %v6927_v52  ;;  %v7178_v52 = vld [vmem:[#allocation11 + $0x230] sm:$0xf] }
 0xa14   :  { %4355 = vmatpush.bf16.msrb.mxu3 %v7087_v1  ;;  %4315 = vmatpush.bf16.msrb.mxu0 %v6923_v56  ;;  %v8000_v56 = vld [vmem:[#allocation11 + $0x244] sm:$0xf0] }
 0xa17   :  { %4344 = vmatpush.bf16.msrb.mxu2 %v6911_v31 }
 0xa18   :  { %4356 = vmatpush.bf16.msrb.mxu3 %v7071_v38  ;;  %4316 = vmatpush.bf16.msrb.mxu0 %v6907_v16  ;;  %v8002_v38 = vld [vmem:[#allocation11 + $0x254] sm:$0xf0]  ;;  %v7996_v16 = vld [vmem:[#allocation11 + $0x224] sm:$0xf0] }
 0xa1c   :  { %4357 = vmatpush.bf16.msrb.mxu3 %v7055_v29 }
 0xa20   :  { %4358 = vmatpush.bf16.msrb.mxu3 %v7039_v7  ;;  %v7242_v7 = vld [vmem:[#allocation11 + $0x2b0] sm:$0xf] }
 0xa5e   :  { %v3818_v42 = vpop.xlane.xlu2 %3817 }
 0xa5f   :  { %v3822_v54 = vmul.f32 %v3818_v42, %v8488_v60  ;;  %v7051_v42 = vor.u32 %v7966_v51, %v7050_v50  ;;  %v7275_v50 = vor.u32 %v8022_v47, %v7274_v45  ;;  %v7194_v51 = vld [vmem:[#allocation11 + $0x250] sm:$0xf]  ;;  %v8010_v47 = vld [vmem:[#allocation11 + $0x294] sm:$0xf0] }
 0xa60   :  { %v7195_v39 = vor.u32 %v8002_v38, %v7194_v51  ;;  %v7226_v45 = vld [vmem:[#allocation11 + $0x290] sm:$0xf]  ;;  %v8050_v38 = vld [vmem:[#allocation11 + $0x3d4] sm:$0xf0] }
 0xa61   :  { %v8781_v48 = vadd.f32 1e-12, %v3822_v54  ;;  %v7034_v54 = vld [vmem:[#allocation10 + $0x308] sm:$0xf]  ;;  %4329 = vmatpush.bf16.msrb.mxu1 %v7051_v42  ;;  %v7187_v42 = vor.u32 %v8000_v56, %v7186_v41  ;;  %v7386_v51 = vld [vmem:[#allocation11 + $0x3d0] sm:$0xf] }
 0xa62   :  { %v7035_v32 = vor.u32 %v7962_v55, %v7034_v54  ;;  %v7998_v54 = vld [vmem:[#allocation11 + $0x234] sm:$0xf0]  ;;  %v7338_v55 = vld [vmem:[#allocation11 + $0x370] sm:$0xf]  ;;  %v8003_v41 = vld [vmem:[#allocation11 + $0x264] sm:$0xf] }
 0xa63   :  { %8157 = vrsqrt.f32 %v8781_v48  ;;  %vm3832_vm0 = vweird.f32 %v8781_v48  ;;  %v7179_v29 = vor.u32 %v7998_v54, %v7178_v52  ;;  %v7339_v5 = vor.u32 %v8038_v20, %v7338_v55  ;;  %v7204_v56 = vld [vmem:[#allocation11 + $0x268] sm:$0xf0]  ;;  %v8048_v54 = vld [vmem:[#allocation11 + $0x3c4] sm:$0xf0]  ;;  %v8021_v55 = vld [vmem:[#allocation11 + $0x2f4] sm:$0xf] }
 0xa65   :  { %4330 = vmatpush.bf16.msrb.mxu1 %v7035_v32  ;;  %v7330_v32 = vld [vmem:[#allocation11 + $0x360] sm:$0xf] }
 0xa66   :  { %v3821_v30 = vpop.xlane.xlu0 %3820 }
 0xa67   :  { %v3823_v23 = vmul.f32 %v3821_v30, %v8488_v60 }
 0xa69   :  { %v8158_v57 = vpop.eup %8157  ;;  %v8785_v43 = vadd.f32 1e-12, %v3823_v23 }
 0xa6a   :  { %v3827_v37 = vmul.f32 %v8158_v57, %v8781_v48  ;;  %vm3833_vm15 = vweird.f32 %v8158_v57  ;;  %v8800_v48 = vld [vmem:[%s9141_s6 + $0x38] sm:$0xff] }
 0xa6b   :  { %8159 = vrsqrt.f32 %v8785_v43  ;;  %vm3834_vm1 = vmor %vm3832_vm0, %vm3833_vm15  ;;  %v3851_v30 = vperm.slane %v8800_v48, 4  ;;  %vm3842_vm3 = vweird.f32 %v8785_v43  ;;  %v3857_v59 = vperm.slane %v8800_v48, 5 }
 0xa6c   :  { %v3828_v40 = vmul.f32 %v8158_v57, %v3827_v37 }
 0xa6e   :  { %v3829_v27 = vmul.f32 0.5, %v3828_v40  ;;  %v8020_v40 = vld [vmem:[#allocation11 + $0x2e4] sm:$0xf0] }
 0xa6f   :  { %v7267_v18 = vor.u32 %v8020_v40, %v7266_v2  ;;  %v7306_v2 = vld [vmem:[#allocation11 + $0x330] sm:$0xf]  ;;  %v8030_v40 = vld [vmem:[#allocation11 + $0x334] sm:$0xf0] }
 0xa70   :  { %v3830_v58 = vsub.f32 1.5, %v3829_v27  ;;  %v7259_v27 = vor.u32 %v8018_v19, %v7258_v44  ;;  %v7218_v44 = vld [vmem:[#allocation11 + $0x280] sm:$0xf]  ;;  %v8008_v19 = vld [vmem:[#allocation11 + $0x284] sm:$0xf0] }
 0xa71   :  { %v8160_v61 = vpop.eup %8159  ;;  %v7219_v52 = vor.u32 %v8008_v19, %v7218_v44 }
 0xa72   :  { %v3831_v3 = vmul.f32 %v8158_v57, %v3830_v58  ;;  %v3837_v10 = vmul.f32 %v8160_v61, %v8785_v43  ;;  %vm3843_vm2 = vweird.f32 %v8160_v61  ;;  %v7250_v58 = vld [vmem:[#allocation11 + $0x2c0] sm:$0xf] }
 0xa73   :  { %vm3844_vm4 = vmor %vm3842_vm3, %vm3843_vm2  ;;  %v7251_v62 = vor.u32 %v8016_v14, %v7250_v58  ;;  %v7298_v58 = vld [vmem:[#allocation11 + $0x320] sm:$0xf]  ;;  %v8028_v14 = vld [vmem:[#allocation11 + $0x324] sm:$0xf0] }
 0xa74   :  { %v3838_v8 = vmul.f32 %v8160_v61, %v3837_v10  ;;  %v3835_v11 = vsel %vm3834_vm1, %v8158_v57, %v3831_v3  ;;  %v8036_v10 = vld [vmem:[#allocation11 + $0x364] sm:$0xf0] }
 0xa75   :  { %v3846_v22 = vmul.f32 %v3835_v11, %v8763_v15  ;;  %v3847_v12 = vmul.f32 %v3835_v11, %v8765_v0  ;;  %v7210_v15 = vld [vmem:[#allocation11 + $0x270] sm:$0xf]  ;;  %v7331_v31 = vor.u32 %v8036_v10, %v7330_v32  ;;  %v7196_v32 = vld [vmem:[#allocation11 + $0x258] sm:$0xf0] }
 0xa76   :  { %v3839_v46 = vmul.f32 0.5, %v3838_v8  ;;  %v7211_v35 = vor.u32 %v8006_v53, %v7210_v15  ;;  %v8014_v8 = vld [vmem:[#allocation11 + $0x2b4] sm:$0xf0]  ;;  %v7402_v11 = vld [vmem:[#allocation11 + $0x3f0] sm:$0xf] }
 0xa77   :  { %v3852_v1 = vmul.f32 %v3850_v63, %v3846_v22  ;;  %v3853_v24 = vmul.f32 %v3851_v30, %v3847_v12  ;;  %v7994_v22 = vld [vmem:[#allocation11 + $0x214] sm:$0xf0]  ;;  %v7992_v15 = vld [vmem:[#allocation11 + $0x204] sm:$0xf0]  ;;  %v7314_v53 = vld [vmem:[#allocation11 + $0x340] sm:$0xf] }
 0xa78   :  { %v3840_v49 = vsub.f32 1.5, %v3839_v46  ;;  %v7243_v46 = vor.u32 %v8014_v8, %v7242_v7  ;;  %v7370_v10 = vld [vmem:[#allocation11 + $0x3b0] sm:$0xf]  ;;  %v8019_v8 = vld [vmem:[#allocation11 + $0x2e4] sm:$0xf] }
 0xa79   :  { %v8810_v0 = vadd.f32 %v3856_v6, %v3852_v1  ;;  %v8812_v57 = vadd.f32 %v3857_v59, %v3853_v24  ;;  %v8012_v1 = vld [vmem:[#allocation11 + $0x2a4] sm:$0xf0]  ;;  %v7394_v24 = vld [vmem:[#allocation11 + $0x3e0] sm:$0xf] }
 0xa7a   :  { %v3841_v4 = vmul.f32 %v8160_v61, %v3840_v49  ;;  %v8054_v49 = vld [vmem:[#allocation11 + $0x3f4] sm:$0xf0] }
 0xa7c   :  { %v3845_v23 = vsel %vm3844_vm4, %v8160_v61, %v3841_v4  ;;  %v7170_v61 = vld [vmem:[#allocation11 + $0x220] sm:$0xf]  ;;  %v7322_v4 = vld [vmem:[#allocation11 + $0x350] sm:$0xf] }
 0xa7d   :  { %v3848_v26 = vmul.f32 %v3845_v23, %v8772_v9  ;;  %v3849_v25 = vmul.f32 %v3845_v23, %v8774_v13  ;;  %v7202_v13 = vld [vmem:[#allocation11 + $0x260] sm:$0xf]  ;;  %v7171_v3 = vor.u32 %v7996_v16, %v7170_v61  ;;  %v7299_v61 = vor.u32 %v8028_v14, %v7298_v58  ;;  %v8001_v16 = vld [vmem:[#allocation11 + $0x254] sm:$0xf]  ;;  %v8035_v14 = vld [vmem:[#allocation11 + $0x364] sm:$0xf] }
 0xa7e   :  { %v7203_v37 = vor.u32 %v8004_v36, %v7202_v13  ;;  %v7234_v23 = vld [vmem:[#allocation11 + $0x2a0] sm:$0xf]  ;;  %v7212_v13 = vld [vmem:[#allocation11 + $0x278] sm:$0xf0] }
 0xa7f   :  { %v3854_v28 = vmul.f32 %v3850_v63, %v3848_v26  ;;  %v3855_v33 = vmul.f32 %v3851_v30, %v3849_v25  ;;  %v7403_v63 = vor.u32 %v8054_v49, %v7402_v11  ;;  %v7162_v30 = vld [vmem:[#allocation11 + $0x210] sm:$0xf]  ;;  %v7235_v26 = vor.u32 %v8012_v1, %v7234_v23  ;;  %v8052_v25 = vld [vmem:[#allocation11 + $0x3e4] sm:$0xf0]  ;;  %v7268_v11 = vld [vmem:[#allocation11 + $0x2e8] sm:$0xf0] }
 0xa80   :  { %v7163_v12 = vor.u32 %v7994_v22, %v7162_v30  ;;  %v7290_v30 = vld [vmem:[#allocation11 + $0x310] sm:$0xf]  ;;  %v8026_v22 = vld [vmem:[#allocation11 + $0x314] sm:$0xf0]  ;;  %v7362_v1 = vld [vmem:[#allocation11 + $0x3a0] sm:$0xf] }
 0xa81   :  { %v8814_v43 = vadd.f32 %v3856_v6, %v3854_v28  ;;  %v8816_v34 = vadd.f32 %v3857_v59, %v3855_v33  ;;  %v8034_v6 = vld [vmem:[#allocation11 + $0x354] sm:$0xf0]  ;;  %v7395_v28 = vor.u32 %v8052_v25, %v7394_v24  ;;  %v7154_v33 = vld [vmem:[#allocation11 + $0x200] sm:$0xf]  ;;  %v8044_v24 = vld [vmem:[#allocation11 + $0x3a4] sm:$0xf0] }
 0xa82   :  { %v7323_v59 = vor.u32 %v8034_v6, %v7322_v4  ;;  %v7291_v4 = vor.u32 %v8026_v22, %v7290_v30  ;;  %v7999_v6 = vld [vmem:[#allocation11 + $0x244] sm:$0xf]  ;;  %v7363_v25 = vor.u32 %v8044_v24, %v7362_v1  ;;  %v8053_v30 = vld [vmem:[#allocation11 + $0x3f4] sm:$0xf]  ;;  %v7404_v22 = vld [vmem:[#allocation11 + $0x3f8] sm:$0xf0] }
 0xa83   :  { %v3862_v17 = vpack.c.bf16 %v8814_v43, %v8810_v0  ;;  %v3863_v9 = vpack.c.bf16 %v8816_v34, %v8812_v57 }
 0xa85   :  { %4261 = vmatmul.bf16.vlgmr.msra.gmra.mxu0 %v3862_v17  ;;  %4275 = vmatmul.bf16.vlgmr.msra.gmra.mxu1 %v3863_v9 }
 0xa86   :  { %4289 = vmatmul.bf16.vlgmr.msra.gmra.mxu2 %v3862_v17  ;;  %4303 = vmatmul.bf16.vlgmr.msra.gmra.mxu3 %v3863_v9 }
 0xa87   :  { %4828 = vmatpush.bf16.msra.mxu0 %v7211_v35  ;;  %4842 = vmatpush.bf16.msra.mxu1 %v7275_v50  ;;  %v8005_v35 = vld [vmem:[#allocation11 + $0x274] sm:$0xf]  ;;  %v7227_v50 = vor.u32 %v8010_v47, %v7226_v45 }
 0xa88   :  { %4856 = vmatpush.bf16.msra.mxu2 %v7339_v5  ;;  %4870 = vmatpush.bf16.msra.mxu3 %v7403_v63  ;;  %v7271_v63 = vor.u32 %v8019_v8, %v7268_v11  ;;  %v8037_v45 = vld [vmem:[#allocation11 + $0x374] sm:$0xf]  ;;  %v7244_v8 = vld [vmem:[#allocation11 + $0x2b8] sm:$0xf0]  ;;  %v8845_v11 = vld [vmem:[%s9141_s6 + $0x40] sm:$0xff] }
 0xa8b   :  { %4829 = vmatpush.bf16.msra.mxu0 %v7203_v37  ;;  %4843 = vmatpush.bf16.msra.mxu1 %v7267_v18  ;;  %v7215_v37 = vor.u32 %v8005_v35, %v7212_v13  ;;  %v7307_v18 = vor.u32 %v8030_v40, %v7306_v2 }
 0xa8c   :  { %4857 = vmatpush.bf16.msra.mxu2 %v7331_v31  ;;  %4871 = vmatpush.bf16.msra.mxu3 %v7395_v28  ;;  %v8046_v31 = vld [vmem:[#allocation11 + $0x3b4] sm:$0xf0]  ;;  %v8017_v28 = vld [vmem:[#allocation11 + $0x2d4] sm:$0xf] }
 0xa8d   :  { %v7371_v7 = vor.u32 %v8046_v31, %v7370_v10  ;;  %v8040_v31 = vld [vmem:[#allocation11 + $0x384] sm:$0xf0] }
 0xa8f   :  { %4830 = vmatpush.bf16.msra.mxu0 %v7195_v39  ;;  %4844 = vmatpush.bf16.msra.mxu1 %v7259_v27  ;;  %v7387_v39 = vor.u32 %v8050_v38, %v7386_v51  ;;  %v7378_v27 = vld [vmem:[#allocation11 + $0x3c0] sm:$0xf]  ;;  %v7354_v51 = vld [vmem:[#allocation11 + $0x390] sm:$0xf]  ;;  %v8042_v38 = vld [vmem:[#allocation11 + $0x394] sm:$0xf0] }
 0xa90   :  { %4858 = vmatpush.bf16.msra.mxu2 %v7323_v59  ;;  %v7379_v20 = vor.u32 %v8048_v54, %v7378_v27  ;;  %v7188_v59 = vld [vmem:[#allocation11 + $0x248] sm:$0xf0] }
 0xa91   :  { %4872 = vmatpush.bf16.msra.mxu3 %v7387_v39  ;;  %v7191_v23 = vor.u32 %v7999_v6, %v7188_v59  ;;  %v7407_v6 = vor.u32 %v8053_v30, %v7404_v22  ;;  %v7993_v59 = vld [vmem:[#allocation11 + $0x214] sm:$0xf] }
 0xa93   :  { %4831 = vmatpush.bf16.msra.mxu0 %v7187_v42  ;;  %4845 = vmatpush.bf16.msra.mxu1 %v7251_v62  ;;  %v7207_v42 = vor.u32 %v8003_v41, %v7204_v56  ;;  %v3929_v62 = vperm.slane %v8794_v21, 1  ;;  %v7355_v41 = vor.u32 %v8042_v38, %v7354_v51  ;;  %v8015_v56 = vld [vmem:[#allocation11 + $0x2c4] sm:$0xf]  ;;  %v7396_v38 = vld [vmem:[#allocation11 + $0x3e8] sm:$0xf0] }
 0xa95   :  { %4317 = vmatmul.bf16.vlgmr.msrb.gmra.mxu0 %v3862_v17  ;;  %4331 = vmatmul.bf16.vlgmr.msrb.gmra.mxu1 %v3863_v9 }
 0xa96   :  { %4345 = vmatmul.bf16.vlgmr.msrb.gmra.mxu2 %v3862_v17  ;;  %4359 = vmatmul.bf16.vlgmr.msrb.gmra.mxu3 %v3863_v9  ;;  %v7155_v17 = vor.u32 %v7992_v15, %v7154_v33  ;;  %v8032_v9 = vld [vmem:[#allocation11 + $0x344] sm:$0xf0]  ;;  %v7260_v33 = vld [vmem:[#allocation11 + $0x2d8] sm:$0xf0]  ;;  %v3930_v15 = vperm.slane %v8800_v48, 1 }
 0xa97   :  { %4832 = vmatpush.bf16.msra.mxu0 %v7179_v29  ;;  %4846 = vmatpush.bf16.msra.mxu1 %v7243_v46  ;;  %v7315_v36 = vor.u32 %v8032_v9, %v7314_v53  ;;  %v7276_v29 = vld [vmem:[#allocation11 + $0x2f8] sm:$0xf0]  ;;  %v7263_v53 = vor.u32 %v8017_v28, %v7260_v33  ;;  %v8024_v9 = vld [vmem:[#allocation11 + $0x304] sm:$0xf0] }
 0xa98   :  { %v7279_v5 = vor.u32 %v8021_v55, %v7276_v29  ;;  %4873 = vmatpush.bf16.msra.mxu3 %v7379_v20  ;;  %v7995_v29 = vld [vmem:[#allocation11 + $0x224] sm:$0xf]  ;;  %v7172_v20 = vld [vmem:[#allocation11 + $0x228] sm:$0xf0]  ;;  %v7324_v28 = vld [vmem:[#allocation11 + $0x358] sm:$0xf0] }
 0xa99   :  { %4859 = vmatpush.bf16.msra.mxu2 %v7315_v36  ;;  %v7997_v36 = vld [vmem:[#allocation11 + $0x234] sm:$0xf]  ;;  %v7175_v58 = vor.u32 %v7995_v29, %v7172_v20  ;;  %v7228_v29 = vld [vmem:[#allocation11 + $0x298] sm:$0xf0] }
 0xa9a   :  { %v8049_v20 = vld [vmem:[#allocation11 + $0x3d4] sm:$0xf] }
 0xa9b   :  { %4833 = vmatpush.bf16.msra.mxu0 %v7171_v3  ;;  %4847 = vmatpush.bf16.msra.mxu1 %v7235_v26  ;;  %v7199_v3 = vor.u32 %v8001_v16, %v7196_v32  ;;  %v7346_v16 = vld [vmem:[#allocation11 + $0x380] sm:$0xf] }
 0xa9c   :  { %4874 = vmatpush.bf16.msra.mxu3 %v7371_v7  ;;  %v8013_v7 = vld [vmem:[#allocation11 + $0x2b4] sm:$0xf] }
 0xa9d   :  { %4860 = vmatpush.bf16.msra.mxu2 %v7307_v18 }
 0xa9f   :  { %4834 = vmatpush.bf16.msra.mxu0 %v7163_v12  ;;  %4848 = vmatpush.bf16.msra.mxu1 %v7227_v50  ;;  %v7340_v50 = vld [vmem:[#allocation11 + $0x378] sm:$0xf0] }
 0xaa0   :  { %4875 = vmatpush.bf16.msra.mxu3 %v7363_v25  ;;  %v7343_v18 = vor.u32 %v8037_v45, %v7340_v50  ;;  %v8033_v25 = vld [vmem:[#allocation11 + $0x354] sm:$0xf] }
 0xaa1   :  { %4861 = vmatpush.bf16.msra.mxu2 %v7299_v61  ;;  %v7332_v61 = vld [vmem:[#allocation11 + $0x368] sm:$0xf0] }
 0xaa2   :  { %v7335_v10 = vor.u32 %v8035_v14, %v7332_v61  ;;  %v8867_v61 = vld [vmem:[%s9141_s6 + $0x48] sm:$0xff] }
 0xaa3   :  { %4835 = vmatpush.bf16.msra.mxu0 %v7155_v17  ;;  %4849 = vmatpush.bf16.msra.mxu1 %v7219_v52  ;;  %v7282_v17 = vld [vmem:[#allocation11 + $0x300] sm:$0xf] }
 0xaa4   :  { %v7283_v13 = vor.u32 %v8024_v9, %v7282_v17  ;;  %4876 = vmatpush.bf16.msra.mxu3 %v7355_v41  ;;  %v7327_v9 = vor.u32 %v8033_v25, %v7324_v28  ;;  %v7156_v41 = vld [vmem:[#allocation11 + $0x208] sm:$0xf0] }
 0xaa5   :  { %4862 = vmatpush.bf16.msra.mxu2 %v7291_v4 }
 0xaa7   :  { %4884 = vmatpush.bf16.msrb.mxu0 %v7215_v37  ;;  %4898 = vmatpush.bf16.msrb.mxu1 %v7279_v5  ;;  %v7180_v37 = vld [vmem:[#allocation11 + $0x238] sm:$0xf0] }
 0xaa8   :  { %v7183_v47 = vor.u32 %v7997_v36, %v7180_v37  ;;  %v8051_v36 = vld [vmem:[#allocation11 + $0x3e4] sm:$0xf] }
 0xaa9   :  { %4863 = vmatpush.bf16.msra.mxu2 %v7283_v13  ;;  %v7236_v13 = vld [vmem:[#allocation11 + $0x2a8] sm:$0xf0] }
 0xaab   :  { %4885 = vmatpush.bf16.msrb.mxu0 %v7207_v42  ;;  %4899 = vmatpush.bf16.msrb.mxu1 %v7271_v63  ;;  %v7252_v42 = vld [vmem:[#allocation11 + $0x2c8] sm:$0xf0]  ;;  %v7247_v63 = vor.u32 %v8013_v7, %v7244_v8 }
 0xaac   :  { %v7255_v52 = vor.u32 %v8015_v56, %v7252_v42 }
 0xaad   :  { %4912 = vmatpush.bf16.msrb.mxu2 %v7343_v18  ;;  %v7991_v18 = vld [vmem:[#allocation11 + $0x204] sm:$0xf] }
 0xaaf   :  { %4886 = vmatpush.bf16.msrb.mxu0 %v7199_v3  ;;  %4900 = vmatpush.bf16.msrb.mxu1 %v7263_v53 }
 0xab1   :  { %4913 = vmatpush.bf16.msrb.mxu2 %v7335_v10  ;;  %v7388_v10 = vld [vmem:[#allocation11 + $0x3d8] sm:$0xf0] }
 0xab2   :  { %v7391_v8 = vor.u32 %v8049_v20, %v7388_v10  ;;  %v8043_v20 = vld [vmem:[#allocation11 + $0x3a4] sm:$0xf] }
 0xab3   :  { %4887 = vmatpush.bf16.msrb.mxu0 %v7191_v23  ;;  %4901 = vmatpush.bf16.msrb.mxu1 %v7255_v52  ;;  %v7164_v23 = vld [vmem:[#allocation11 + $0x218] sm:$0xf0] }
 0xab4   :  { %v7167_v24 = vor.u32 %v7993_v59, %v7164_v23  ;;  %v8007_v59 = vld [vmem:[#allocation11 + $0x284] sm:$0xf]  ;;  %v7220_v23 = vld [vmem:[#allocation11 + $0x288] sm:$0xf0] }
 0xab5   :  { %4914 = vmatpush.bf16.msrb.mxu2 %v7327_v9 }
 0xab7   :  { %4888 = vmatpush.bf16.msrb.mxu0 %v7183_v47  ;;  %4902 = vmatpush.bf16.msrb.mxu1 %v7247_v63 }
 0xabb   :  { %4889 = vmatpush.bf16.msrb.mxu0 %v7175_v58 }
 0xabf   :  { %4890 = vmatpush.bf16.msrb.mxu0 %v7167_v24 }
 0xb02   :  { %v4262_v46 = vpop.f32.mrf.mxu0  ;;  %v4276_v49 = vpop.f32.mrf.mxu1 }
 0xb03   :  { %v4263_v12 = vadd.f32 %v4262_v46, %v3929_v62  ;;  %v3931_v46 = vperm.slane %v8845_v11, 1  ;;  %v7372_v11 = vld [vmem:[#allocation11 + $0x3b8] sm:$0xf0] }
 0xb05   :  { %v8825_v26 = vadd.f32 %v4276_v49, %v4263_v12  ;;  %v7347_v49 = vor.u32 %v8040_v31, %v7346_v16  ;;  %v3932_v16 = vperm.slane %v8867_v61, 1 }
 0xb07   :  { %v4365_v35 = vmul.f32 %v8825_v26, %v8825_v26  ;;  %4877 = vmatpush.bf16.msra.mxu3 %v7347_v49  ;;  %v7308_v49 = vld [vmem:[#allocation11 + $0x338] sm:$0xf0] }
 0xb09   :  { %v4373_v39 = vmul.f32 %v4365_v35, %v8825_v26  ;;  %v4290_v2 = vpop.f32.mrf.mxu2  ;;  %v4304_v40 = vpop.f32.mrf.mxu3  ;;  %v8011_v35 = vld [vmem:[#allocation11 + $0x2a4] sm:$0xf] }
 0xb0a   :  { %v4291_v44 = vadd.f32 %v4290_v2, %v3930_v15  ;;  %v4264_v19 = vpop.f32.mrf.mxu0  ;;  %v4278_v27 = vpop.f32.mrf.mxu1  ;;  %v7239_v51 = vor.u32 %v8011_v35, %v7236_v13  ;;  %v8027_v13 = vld [vmem:[#allocation11 + $0x324] sm:$0xf] }
 0xb0b   :  { %v4381_v54 = vmul.f32 0.044715, %v4373_v39  ;;  %v4265_v55 = vadd.f32 %v4264_v19, %v3929_v62  ;;  %4926 = vmatpush.bf16.msrb.mxu3 %v7407_v6  ;;  %v7316_v19 = vld [vmem:[#allocation11 + $0x348] sm:$0xf0] }
 0xb0c   :  { %v8835_v5 = vadd.f32 %v4304_v40, %v4291_v44  ;;  %v7399_v40 = vor.u32 %v8051_v36, %v7396_v38  ;;  %4903 = vmatpush.bf16.msrb.mxu1 %v7239_v51  ;;  %v8031_v44 = vld [vmem:[#allocation11 + $0x344] sm:$0xf]  ;;  %v7300_v36 = vld [vmem:[#allocation11 + $0x328] sm:$0xf0] }
 0xb0d   :  { %v4389_v32 = vadd.f32 %v4381_v54, %v8825_v26  ;;  %v8838_v3 = vadd.f32 %v4278_v27, %v4265_v55  ;;  %v7319_v54 = vor.u32 %v8031_v44, %v7316_v19  ;;  %v8009_v55 = vld [vmem:[#allocation11 + $0x294] sm:$0xf]  ;;  %v7303_v51 = vor.u32 %v8027_v13, %v7300_v36 }
 0xb0e   :  { %v4366_v62 = vmul.f32 %v8835_v5, %v8835_v5  ;;  %v8025_v19 = vld [vmem:[#allocation11 + $0x314] sm:$0xf] }
 0xb0f   :  { %v4397_v12 = vmul.f32 0.7978846, %v4389_v32  ;;  %v4369_v4 = vmul.f32 %v8838_v3, %v8838_v3  ;;  %4927 = vmatpush.bf16.msrb.mxu3 %v7399_v40  ;;  %v7231_v32 = vor.u32 %v8009_v55, %v7228_v29  ;;  %4915 = vmatpush.bf16.msrb.mxu2 %v7319_v54  ;;  %v7292_v29 = vld [vmem:[#allocation11 + $0x318] sm:$0xf0] }
 0xb10   :  { %v4374_v1 = vmul.f32 %v4366_v62, %v8835_v5  ;;  %v8029_v62 = vld [vmem:[#allocation11 + $0x334] sm:$0xf]  ;;  %v7295_v10 = vor.u32 %v8025_v19, %v7292_v29 }
 0xb11   :  { %v4377_v33 = vmul.f32 %v4369_v4, %v8838_v3  ;;  %v4292_v53 = vpop.f32.mrf.mxu2  ;;  %v4306_v17 = vpop.f32.mrf.mxu3  ;;  %8161 = vtanh.f32 %v4397_v12  ;;  %4904 = vmatpush.bf16.msrb.mxu1 %v7231_v32  ;;  %v7311_v30 = vor.u32 %v8029_v62, %v7308_v49 }
 0xb12   :  { %v4382_v37 = vmul.f32 0.044715, %v4374_v1  ;;  %v4293_v45 = vadd.f32 %v4292_v53, %v3930_v15  ;;  %v4318_v47 = vpop.f32.mrf.mxu0  ;;  %v4332_v50 = vpop.f32.mrf.mxu1  ;;  %v7159_v15 = vor.u32 %v7991_v18, %v7156_v41  ;;  %v8047_v1 = vld [vmem:[#allocation11 + $0x3c4] sm:$0xf]  ;;  %v7380_v53 = vld [vmem:[#allocation11 + $0x3c8] sm:$0xf0] }
 0xb13   :  { %v4385_v39 = vmul.f32 0.044715, %v4377_v33  ;;  %v4319_v2 = vadd.f32 %v4318_v47, %v3931_v46  ;;  %4928 = vmatpush.bf16.msrb.mxu3 %v7391_v8  ;;  %v7223_v33 = vor.u32 %v8007_v59, %v7220_v23  ;;  %4916 = vmatpush.bf16.msrb.mxu2 %v7311_v30  ;;  %v7383_v35 = vor.u32 %v8047_v1, %v7380_v53  ;;  %v7284_v30 = vld [vmem:[#allocation11 + $0x308] sm:$0xf0]  ;;  %v7356_v59 = vld [vmem:[#allocation11 + $0x398] sm:$0xf0] }
 0xb14   :  { %v4390_v56 = vadd.f32 %v4382_v37, %v8835_v5  ;;  %v8857_v42 = vadd.f32 %v4306_v17, %v4293_v45  ;;  %4891 = vmatpush.bf16.msrb.mxu0 %v7159_v15 }
 0xb15   :  { %v4393_v27 = vadd.f32 %v4385_v39, %v8838_v3  ;;  %v8860_v52 = vadd.f32 %v4332_v50, %v4319_v2  ;;  %4905 = vmatpush.bf16.msrb.mxu1 %v7223_v33  ;;  %v8045_v2 = vld [vmem:[#allocation11 + $0x3b4] sm:$0xf] }
 0xb16   :  { %v4398_v58 = vmul.f32 0.7978846, %v4390_v56  ;;  %v4370_v14 = vmul.f32 %v8857_v42, %v8857_v42  ;;  %v7375_v41 = vor.u32 %v8045_v2, %v7372_v11 }
 0xb17   :  { %v4401_v31 = vmul.f32 0.7978846, %v4393_v27  ;;  %v4367_v7 = vmul.f32 %v8860_v52, %v8860_v52  ;;  %v8162_v22 = vpop.eup %8161  ;;  %4929 = vmatpush.bf16.msrb.mxu3 %v7383_v35  ;;  %4917 = vmatpush.bf16.msrb.mxu2 %v7303_v51 }
 0xb18   :  { %8163 = vtanh.f32 %v4398_v58  ;;  %v4378_v63 = vmul.f32 %v4370_v14, %v8857_v42  ;;  %v4413_v37 = vadd.f32 1.0, %v8162_v22 }
 0xb19   :  { %8165 = vtanh.f32 %v4401_v31  ;;  %v4375_v12 = vmul.f32 %v4367_v7, %v8860_v52  ;;  %v4346_v4 = vpop.f32.mrf.mxu2  ;;  %v4360_v6 = vpop.f32.mrf.mxu3  ;;  %v7364_v31 = vld [vmem:[#allocation11 + $0x3a8] sm:$0xf0]  ;;  %v8023_v7 = vld [vmem:[#allocation11 + $0x304] sm:$0xf] }
 0xb1a   :  { %v4386_v24 = vmul.f32 0.044715, %v4378_v63  ;;  %v4347_v25 = vadd.f32 %v4346_v4, %v3932_v16  ;;  %v4320_v28 = vpop.f32.mrf.mxu0  ;;  %v4334_v50 = vpop.f32.mrf.mxu1  ;;  %v4421_v27 = vmul.f32 0.5, %v4413_v37  ;;  %v7367_v63 = vor.u32 %v8043_v20, %v7364_v31  ;;  %v7348_v37 = vld [vmem:[#allocation11 + $0x388] sm:$0xf0] }
 0xb1b   :  { %v4383_v17 = vmul.f32 0.044715, %v4375_v12  ;;  %v4321_v9 = vadd.f32 %v4320_v28, %v3931_v46  ;;  %4930 = vmatpush.bf16.msrb.mxu3 %v7375_v41  ;;  %4918 = vmatpush.bf16.msrb.mxu2 %v7295_v10  ;;  %v7287_v4 = vor.u32 %v8023_v7, %v7284_v30 }
 0xb1c   :  { %v4394_v45 = vadd.f32 %v4386_v24, %v8857_v42  ;;  %v8879_v47 = vadd.f32 %v4360_v6, %v4347_v25  ;;  %v8041_v6 = vld [vmem:[#allocation11 + $0x394] sm:$0xf]  ;;  %v4429_v23 = vmul.f32 %v4421_v27, %v8825_v26  ;;  %v8039_v26 = vld [vmem:[#allocation11 + $0x384] sm:$0xf] }
 0xb1d   :  { %v4391_v38 = vadd.f32 %v4383_v17, %v8860_v52  ;;  %v8882_v39 = vadd.f32 %v4334_v50, %v4321_v9  ;;  %v7359_v61 = vor.u32 %v8041_v6, %v7356_v59  ;;  %v7351_v50 = vor.u32 %v8039_v26, %v7348_v37 }
 0xb1e   :  { %v8164_v46 = vpop.eup %8163  ;;  %v4402_v40 = vmul.f32 0.7978846, %v4394_v45  ;;  %v4368_v18 = vmul.f32 %v8879_v47, %v8879_v47 }
 0xb1f   :  { %v8166_v56 = vpop.eup %8165  ;;  %v4399_v15 = vmul.f32 0.7978846, %v4391_v38  ;;  %v4371_v44 = vmul.f32 %v8882_v39, %v8882_v39  ;;  %v4414_v58 = vadd.f32 1.0, %v8164_v46  ;;  %4931 = vmatpush.bf16.msrb.mxu3 %v7367_v63  ;;  %4919 = vmatpush.bf16.msrb.mxu2 %v7287_v4  ;;  %v4506_v63 = vperm.slane %v8794_v21, 3 }
 0xb20   :  { %v4417_v54 = vadd.f32 1.0, %v8166_v56  ;;  %8167 = vtanh.f32 %v4402_v40  ;;  %v4376_v55 = vmul.f32 %v4368_v18, %v8879_v47 }
 0xb21   :  { %v4379_v14 = vmul.f32 %v4371_v44, %v8882_v39  ;;  %v4348_v32 = vpop.f32.mrf.mxu2  ;;  %8169 = vtanh.f32 %v4399_v15  ;;  %v4362_v12 = vpop.f32.mrf.mxu3  ;;  %v4422_v9 = vmul.f32 0.5, %v4414_v58 }
 0xb22   :  { %v4425_v8 = vmul.f32 0.5, %v4417_v54  ;;  %v4384_v62 = vmul.f32 0.044715, %v4376_v55  ;;  %v4349_v49 = vadd.f32 %v4348_v32, %v3932_v16 }
 0xb23   :  { %v4387_v22 = vmul.f32 0.044715, %v4379_v14  ;;  %4932 = vmatpush.bf16.msrb.mxu3 %v7359_v61  ;;  %v4430_v38 = vmul.f32 %v4422_v9, %v8835_v5 }
 0xb24   :  { %v4433_v1 = vmul.f32 %v4425_v8, %v8838_v3  ;;  %v4392_v24 = vadd.f32 %v4384_v62, %v8879_v47  ;;  %v4363_v25 = vadd.f32 %v4362_v12, %v4349_v49 }
 0xb25   :  { %v4395_v28 = vadd.f32 %v4387_v22, %v8882_v39  ;;  %v4507_v22 = vperm.slane %v8800_v48, 3 }
 0xb26   :  { %v8168_v16 = vpop.eup %8167  ;;  %v4437_v33 = vpack.c.bf16 %v4433_v1, %v4429_v23  ;;  %v4400_v53 = vmul.f32 0.7978846, %v4392_v24  ;;  %v4372_v17 = vmul.f32 %v4363_v25, %v4363_v25 }
 0xb27   :  { %v4418_v35 = vadd.f32 1.0, %v8168_v16  ;;  %v4403_v13 = vmul.f32 0.7978846, %v4395_v28  ;;  %v8170_v3 = vpop.eup %8169  ;;  %4933 = vmatpush.bf16.msrb.mxu3 %v7351_v50 }
 0xb28   :  { %v4380_v36 = vmul.f32 %v4372_v17, %v4363_v25  ;;  %4836 = vmatmul.bf16.vlgmr.msra.gmra.mxu0 %v4437_v33  ;;  %v4415_v11 = vadd.f32 1.0, %v8170_v3 }
 0xb29   :  { %v4426_v45 = vmul.f32 0.5, %v4418_v35  ;;  %8171 = vtanh.f32 %v4403_v13 }
 0xb2a   :  { %8173 = vtanh.f32 %v4400_v53  ;;  %v4388_v51 = vmul.f32 0.044715, %v4380_v36  ;;  %v4423_v15 = vmul.f32 0.5, %v4415_v11 }
 0xb2b   :  { %v4434_v2 = vmul.f32 %v4426_v45, %v8857_v42 }
 0xb2c   :  { %v4396_v46 = vadd.f32 %v4388_v51, %v4363_v25  ;;  %v4431_v54 = vmul.f32 %v4423_v15, %v8860_v52 }
 0xb2d   :  { %v4438_v40 = vpack.c.bf16 %v4434_v2, %v4430_v38 }
 0xb2e   :  { %v4404_v18 = vmul.f32 0.7978846, %v4396_v46 }
 0xb2f   :  { %v8172_v41 = vpop.eup %8171  ;;  %4850 = vmatmul.bf16.vlgmr.msra.gmra.mxu1 %v4438_v40 }
 0xb30   :  { %v8174_v56 = vpop.eup %8173  ;;  %v4419_v44 = vadd.f32 1.0, %v8172_v41  ;;  %8175 = vtanh.f32 %v4404_v18 }
 0xb31   :  { %v4416_v27 = vadd.f32 1.0, %v8174_v56 }
 0xb32   :  { %v4427_v19 = vmul.f32 0.5, %v4419_v44 }
 0xb33   :  { %v4424_v42 = vmul.f32 0.5, %v4416_v27 }
 0xb34   :  { %v4435_v55 = vmul.f32 %v4427_v19, %v8882_v39 }
 0xb35   :  { %v4432_v14 = vmul.f32 %v4424_v42, %v8879_v47 }
 0xb36   :  { %v8176_v5 = vpop.eup %8175  ;;  %v4439_v29 = vpack.c.bf16 %v4435_v55, %v4431_v54  ;;  %v7466_v55 = vld [vmem:[%s9142_s7 + $0x70] sm:$0xf] }
 0xb37   :  { %v4420_v20 = vadd.f32 1.0, %v8176_v5  ;;  %v8070_v5 = vld [vmem:[%s9142_s7 + $0x74] sm:$0xf0] }
 0xb38   :  { %4864 = vmatmul.bf16.vlgmr.msra.gmra.mxu2 %v4439_v29  ;;  %4892 = vmatmul.bf16.vlgmr.msrb.gmra.mxu0 %v4437_v33  ;;  %v7467_v42 = vor.u32 %v8070_v5, %v7466_v55 }
 0xb39   :  { %v4428_v58 = vmul.f32 0.5, %v4420_v20  ;;  %v8086_v20 = vld [vmem:[%s9142_s7 + $0xf4] sm:$0xf0] }
 0xb3a   :  { %5232 = vmatpush.bf16.msra.mxu0 %v7467_v42  ;;  %v8060_v42 = vld [vmem:[%s9142_s7 + $0x24] sm:$0xf0] }
 0xb3b   :  { %v4436_v32 = vmul.f32 %v4428_v58, %v4363_v25  ;;  %v8069_v58 = vld [vmem:[%s9142_s7 + $0x74] sm:$0xf] }
 0xb3d   :  { %v4440_v10 = vpack.c.bf16 %v4436_v32, %v4432_v14  ;;  %v7468_v14 = vld [vmem:[%s9142_s7 + $0x78] sm:$0xf0] }
 0xb3f   :  { %4878 = vmatmul.bf16.vlgmr.msra.gmra.mxu3 %v4440_v10  ;;  %4906 = vmatmul.bf16.vlgmr.msrb.gmra.mxu1 %v4438_v40 }
 0xb48   :  { %4920 = vmatmul.bf16.vlgmr.msrb.gmra.mxu2 %v4439_v29  ;;  %v7530_v29 = vld [vmem:[%s9142_s7 + $0xf0] sm:$0xf] }
 0xb49   :  { %v7531_v32 = vor.u32 %v8086_v20, %v7530_v29  ;;  %v7426_v29 = vld [vmem:[%s9142_s7 + $0x20] sm:$0xf] }
 0xb4a   :  { %v7490_v20 = vld [vmem:[%s9142_s7 + $0xa0] sm:$0xf] }
 0xb4b   :  { %5245 = vmatpush.bf16.msra.mxu1 %v7531_v32  ;;  %v8076_v32 = vld [vmem:[%s9142_s7 + $0xa4] sm:$0xf0] }
 0xb4f   :  { %4934 = vmatmul.bf16.vlgmr.msrb.gmra.mxu3 %v4440_v10  ;;  %v7471_v10 = vor.u32 %v8069_v58, %v7468_v14  ;;  %v7427_v14 = vor.u32 %v8060_v42, %v7426_v29 }
 0xb51   :  { %5258 = vmatpush.bf16.msra.mxu2 %v7471_v10  ;;  %v8059_v10 = vld [vmem:[%s9142_s7 + $0x24] sm:$0xf] }
 0xba5   :  { %v4837_v31 = vpop.f32.mrf.mxu0 }
 0xba6   :  { %v4838_v4 = vadd.f32 %v4837_v31, %v4506_v63  ;;  %v8085_v31 = vld [vmem:[%s9142_s7 + $0xf4] sm:$0xf] }
 0xbac   :  { %v4851_v7 = vpop.f32.mrf.mxu1 }
 0xbad   :  { %v4839_v8 = vpop.f32.mrf.mxu0  ;;  %v4852_v59 = vadd.f32 %v4851_v7, %v4838_v4  ;;  %v7532_v7 = vld [vmem:[%s9142_s7 + $0xf8] sm:$0xf0]  ;;  %v8083_v4 = vld [vmem:[%s9142_s7 + $0xe4] sm:$0xf] }
 0xbae   :  { %v4840_v33 = vadd.f32 %v4839_v8, %v4506_v63  ;;  %v7458_v8 = vld [vmem:[%s9142_s7 + $0x60] sm:$0xf]  ;;  %v8084_v63 = vld [vmem:[%s9142_s7 + $0xe4] sm:$0xf0] }
 0xbb4   :  { %v4853_v39 = vpop.f32.mrf.mxu1 }
 0xbb5   :  { %v4893_v30 = vpop.f32.mrf.mxu0  ;;  %v4854_v9 = vadd.f32 %v4853_v39, %v4840_v33  ;;  %v8068_v39 = vld [vmem:[%s9142_s7 + $0x64] sm:$0xf0] }
 0xbb6   :  { %v4894_v23 = vadd.f32 %v4893_v30, %v4507_v22  ;;  %v8067_v30 = vld [vmem:[%s9142_s7 + $0x64] sm:$0xf] }
 0xbbb   :  { %v4865_v52 = vpop.f32.mrf.mxu2 }
 0xbbc   :  { %v4907_v12 = vpop.f32.mrf.mxu1  ;;  %v4866_v1 = vadd.f32 %v4865_v52, %v4852_v59  ;;  %v7535_v52 = vor.u32 %v8085_v31, %v7532_v7  ;;  %v7428_v31 = vld [vmem:[%s9142_s7 + $0x28] sm:$0xf0]  ;;  %v7491_v7 = vor.u32 %v8076_v32, %v7490_v20 }
 0xbbd   :  { %v4908_v24 = vadd.f32 %v4907_v12, %v4894_v23  ;;  %v4895_v61 = vpop.f32.mrf.mxu0  ;;  %v7450_v23 = vld [vmem:[%s9142_s7 + $0x50] sm:$0xf] }
 0xbbe   :  { %v4896_v21 = vadd.f32 %v4895_v61, %v4507_v22  ;;  %5271 = vmatpush.bf16.msra.mxu3 %v7535_v52  ;;  %v7460_v22 = vld [vmem:[%s9142_s7 + $0x68] sm:$0xf0]  ;;  %v8065_v61 = vld [vmem:[%s9142_s7 + $0x54] sm:$0xf]  ;;  %v7431_v52 = vor.u32 %v8059_v10, %v7428_v31 }
 0xbc2   :  { %v4879_v62 = vpop.f32.mrf.mxu3 }
 0xbc3   :  { %v4867_v49 = vpop.f32.mrf.mxu2  ;;  %v4880_v25 = vadd.f32 %v4879_v62, %v4866_v1  ;;  %v7522_v62 = vld [vmem:[%s9142_s7 + $0xe0] sm:$0xf]  ;;  %v8066_v1 = vld [vmem:[%s9142_s7 + $0x54] sm:$0xf0] }
 0xbc4   :  { %v4909_v17 = vpop.f32.mrf.mxu1  ;;  %v4868_v36 = vadd.f32 %v4867_v49, %v4854_v9  ;;  %v7459_v49 = vor.u32 %v8068_v39, %v7458_v8  ;;  %v7523_v12 = vor.u32 %v8084_v63, %v7522_v62  ;;  %v7516_v9 = vld [vmem:[%s9142_s7 + $0xd8] sm:$0xf0]  ;;  %v8075_v8 = vld [vmem:[%s9142_s7 + $0xa4] sm:$0xf]  ;;  %v7492_v39 = vld [vmem:[%s9142_s7 + $0xa8] sm:$0xf0] }
 0xbc5   :  { %v4940_v35 = vadd.f32 %v4880_v25, %v8810_v0  ;;  %v4910_v26 = vadd.f32 %v4909_v17, %v4896_v21  ;;  %v7451_v25 = vor.u32 %v8066_v1, %v7450_v23  ;;  %v8081_v17 = vld [vmem:[%s9142_s7 + $0xd4] sm:$0xf]  ;;  %v7418_v63 = vld [vmem:[%s9142_s7 + $0x10] sm:$0xf] }
 0xbc6   :  { %5233 = vmatpush.bf16.msra.mxu0 %v7459_v49  ;;  %5246 = vmatpush.bf16.msra.mxu1 %v7523_v12  ;;  %v7519_v21 = vor.u32 %v8081_v17, %v7516_v9  ;;  %v7495_v49 = vor.u32 %v8075_v8, %v7492_v39  ;;  %v8073_v1 = vld [vmem:[%s9142_s7 + $0x94] sm:$0xf]  ;;  %v8072_v17 = vld [vmem:[%s9142_s7 + $0x84] sm:$0xf0]  ;;  %v8055_v9 = vld [vmem:[%s9142_s7 + $0x4] sm:$0xf] }
 0xbca   :  { %v4881_v47 = vpop.f32.mrf.mxu3  ;;  %5234 = vmatpush.bf16.msra.mxu0 %v7451_v25 }
 0xbcb   :  { %v4921_v6 = vpop.f32.mrf.mxu2  ;;  %v4882_v3 = vadd.f32 %v4881_v47, %v4868_v36  ;;  %v7463_v47 = vor.u32 %v8067_v30, %v7460_v22  ;;  %v8058_v30 = vld [vmem:[%s9142_s7 + $0x14] sm:$0xf0]  ;;  %v7482_v22 = vld [vmem:[%s9142_s7 + $0x90] sm:$0xf] }
 0xbcc   :  { %v4922_v28 = vadd.f32 %v4921_v6, %v4908_v24  ;;  %v7524_v6 = vld [vmem:[%s9142_s7 + $0xe8] sm:$0xf0]  ;;  %v7514_v24 = vld [vmem:[%s9142_s7 + $0xd0] sm:$0xf]  ;;  %v7419_v12 = vor.u32 %v8058_v30, %v7418_v63 }
 0xbcd   :  { %v4942_v38 = vadd.f32 %v4882_v3, %v8814_v43  ;;  %v7527_v59 = vor.u32 %v8083_v4, %v7524_v6  ;;  %5259 = vmatpush.bf16.msra.mxu2 %v7463_v47  ;;  %v7444_v3 = vld [vmem:[%s9142_s7 + $0x48] sm:$0xf0]  ;;  %v8074_v47 = vld [vmem:[%s9142_s7 + $0x94] sm:$0xf0]  ;;  %v8057_v4 = vld [vmem:[%s9142_s7 + $0x14] sm:$0xf] }
 0xbce   :  { %v7420_v6 = vld [vmem:[%s9142_s7 + $0x18] sm:$0xf0] }
 0xbcf   :  { %5272 = vmatpush.bf16.msra.mxu3 %v7527_v59  ;;  %v7483_v59 = vor.u32 %v8074_v47, %v7482_v22  ;;  %v7423_v23 = vor.u32 %v8057_v4, %v7420_v6 }
 0xbd2   :  { %v4935_v16 = vpop.f32.mrf.mxu3 }
 0xbd3   :  { %v4936_v53 = vadd.f32 %v4935_v16, %v4922_v28  ;;  %v4923_v13 = vpop.f32.mrf.mxu2  ;;  %v8082_v28 = vld [vmem:[%s9142_s7 + $0xd4] sm:$0xf0]  ;;  %v7452_v16 = vld [vmem:[%s9142_s7 + $0x58] sm:$0xf0]  ;;  %5273 = vmatpush.bf16.msra.mxu3 %v7519_v21  ;;  %v7412_v21 = vld [vmem:[%s9142_s7 + $0x8] sm:$0xf0] }
 0xbd4   :  { %v4924_v45 = vadd.f32 %v4923_v13, %v4910_v26  ;;  %v7515_v33 = vor.u32 %v8082_v28, %v7514_v24  ;;  %v7506_v13 = vld [vmem:[%s9142_s7 + $0xc0] sm:$0xf]  ;;  %v8080_v26 = vld [vmem:[%s9142_s7 + $0xc4] sm:$0xf0]  ;;  %v7484_v24 = vld [vmem:[%s9142_s7 + $0x98] sm:$0xf0] }
 0xbd5   :  { %v4941_v48 = vadd.f32 %v4936_v53, %v8812_v57  ;;  %v7455_v53 = vor.u32 %v8065_v61, %v7452_v16  ;;  %v7487_v25 = vor.u32 %v8073_v1, %v7484_v24  ;;  %v7410_v28 = vld [vmem:[%s9142_s7] sm:$0xf]  ;;  %v8056_v61 = vld [vmem:[%s9142_s7 + $0x4] sm:$0xf0] }
 0xbd6   :  { %5247 = vmatpush.bf16.msra.mxu1 %v7515_v33  ;;  %v7474_v16 = vld [vmem:[%s9142_s7 + $0x80] sm:$0xf] }
 0xbd7   :  { %v4944_v37 = vadd.f32 %v4941_v48, %v4940_v35  ;;  %5260 = vmatpush.bf16.msra.mxu2 %v7455_v53  ;;  %v7411_v53 = vor.u32 %v8056_v61, %v7410_v28 }
 0xbd9   :  { %4945 = vadd.xlane.f32.xlu2 %v4944_v37  ;;  %v8063_v37 = vld [vmem:[%s9142_s7 + $0x44] sm:$0xf] }
 0xbda   :  { %v4937_v50 = vpop.f32.mrf.mxu3 }
 0xbdb   :  { %v4938_v51 = vadd.f32 %v4937_v50, %v4924_v45  ;;  %v7507_v45 = vor.u32 %v8080_v26, %v7506_v13  ;;  %v7447_v50 = vor.u32 %v8063_v37, %v7444_v3  ;;  %v7415_v13 = vor.u32 %v8055_v9, %v7412_v21  ;;  %v7476_v26 = vld [vmem:[%s9142_s7 + $0x88] sm:$0xf0] }
 0xbdd   :  { %v4943_v2 = vadd.f32 %v4938_v51, %v8816_v34  ;;  %v8079_v51 = vld [vmem:[%s9142_s7 + $0xc4] sm:$0xf]  ;;  %5248 = vmatpush.bf16.msra.mxu1 %v7507_v45  ;;  %5261 = vmatpush.bf16.msra.mxu2 %v7447_v50 }
 0xbdf   :  { %v4947_v11 = vadd.f32 %v4943_v2, %v4942_v38 }
 0xbe1   :  { %4948 = vadd.xlane.f32.xlu1 %v4947_v11  ;;  %v7434_v11 = vld [vmem:[%s9142_s7 + $0x30] sm:$0xf] }
 0xc4c   :  { %v4946_v46 = vpop.xlane.xlu2 %4945 }
 0xc4d   :  { %v4950_v0 = vmul.f32 %v4946_v46, %v8488_v60  ;;  %v8062_v46 = vld [vmem:[%s9142_s7 + $0x34] sm:$0xf0] }
 0xc4f   :  { %v8908_v40 = vsub.f32 %v4940_v35, %v4950_v0  ;;  %v8910_v57 = vsub.f32 %v4941_v48, %v4950_v0  ;;  %v7442_v35 = vld [vmem:[%s9142_s7 + $0x40] sm:$0xf]  ;;  %v8064_v48 = vld [vmem:[%s9142_s7 + $0x44] sm:$0xf0]  ;;  %v7498_v0 = vld [vmem:[%s9142_s7 + $0xb0] sm:$0xf] }
 0xc50   :  { %v7443_v36 = vor.u32 %v8064_v48, %v7442_v35  ;;  %v7475_v48 = vor.u32 %v8072_v17, %v7474_v16 }
 0xc51   :  { %v4956_v18 = vmul.f32 %v8908_v40, %v8908_v40  ;;  %v4957_v41 = vmul.f32 %v8910_v57, %v8910_v57 }
 0xc52   :  { %5235 = vmatpush.bf16.msra.mxu0 %v7443_v36  ;;  %v8071_v36 = vld [vmem:[%s9142_s7 + $0x84] sm:$0xf] }
 0xc53   :  { %v4960_v56 = vadd.f32 %v4957_v41, %v4956_v18  ;;  %v7435_v18 = vor.u32 %v8062_v46, %v7434_v11  ;;  %v8078_v41 = vld [vmem:[%s9142_s7 + $0xb4] sm:$0xf0]  ;;  %v7479_v37 = vor.u32 %v8071_v36, %v7476_v26 }
 0xc54   :  { %v4949_v15 = vpop.xlane.xlu1 %4948 }
 0xc55   :  { %v4951_v43 = vmul.f32 %v4949_v15, %v8488_v60  ;;  %4961 = vadd.xlane.f32.xlu1 %v4960_v56  ;;  %v8061_v56 = vld [vmem:[%s9142_s7 + $0x34] sm:$0xf]  ;;  %v7436_v15 = vld [vmem:[%s9142_s7 + $0x38] sm:$0xf0] }
 0xc56   :  { %5236 = vmatpush.bf16.msra.mxu0 %v7435_v18 }
 0xc57   :  { %v8917_v34 = vsub.f32 %v4942_v38, %v4951_v43  ;;  %v8919_v44 = vsub.f32 %v4943_v2, %v4951_v43  ;;  %v7508_v38 = vld [vmem:[%s9142_s7 + $0xc8] sm:$0xf0]  ;;  %v7499_v43 = vor.u32 %v8078_v41, %v7498_v0  ;;  %v8195_v0 = vld [vmem:[%s9141_s6 + $0x30] sm:$0xff]  ;;  %v8196_v41 = vld [vmem:[%s9141_s6 + $0x38] sm:$0xff] }
 0xc58   :  { %v7511_v2 = vor.u32 %v8079_v51, %v7508_v38  ;;  %v4994_v18 = vperm.slane %v8195_v0, 6 }
 0xc59   :  { %v4958_v19 = vmul.f32 %v8917_v34, %v8917_v34  ;;  %v4959_v27 = vmul.f32 %v8919_v44, %v8919_v44  ;;  %5249 = vmatpush.bf16.msra.mxu1 %v7499_v43 }
 0xc5a   :  { %5274 = vmatpush.bf16.msra.mxu3 %v7511_v2  ;;  %5237 = vmatpush.bf16.msra.mxu0 %v7427_v14 }
 0xc5b   :  { %v4963_v54 = vadd.f32 %v4959_v27, %v4958_v19  ;;  %v7439_v19 = vor.u32 %v8061_v56, %v7436_v15  ;;  %v8077_v27 = vld [vmem:[%s9142_s7 + $0xb4] sm:$0xf]  ;;  %v4995_v56 = vperm.slane %v8196_v41, 6 }
 0xc5d   :  { %4964 = vadd.xlane.f32.xlu0 %v4963_v54  ;;  %v7500_v54 = vld [vmem:[%s9142_s7 + $0xb8] sm:$0xf0]  ;;  %5262 = vmatpush.bf16.msra.mxu2 %v7439_v19  ;;  %v5000_v19 = vperm.slane %v8195_v0, 7 }
 0xc5e   :  { %v7503_v55 = vor.u32 %v8077_v27, %v7500_v54  ;;  %5250 = vmatpush.bf16.msra.mxu1 %v7491_v7  ;;  %5238 = vmatpush.bf16.msra.mxu0 %v7419_v12  ;;  %v5001_v27 = vperm.slane %v8196_v41, 7 }
 0xc60   :  { %5275 = vmatpush.bf16.msra.mxu3 %v7503_v55 }
 0xc61   :  { %5263 = vmatpush.bf16.msra.mxu2 %v7431_v52 }
 0xc62   :  { %5251 = vmatpush.bf16.msra.mxu1 %v7483_v59  ;;  %5239 = vmatpush.bf16.msra.mxu0 %v7411_v53 }
 0xc64   :  { %5276 = vmatpush.bf16.msra.mxu3 %v7495_v49 }
 0xc65   :  { %5264 = vmatpush.bf16.msra.mxu2 %v7423_v23 }
 0xc66   :  { %5252 = vmatpush.bf16.msra.mxu1 %v7475_v48 }
 0xc68   :  { %5277 = vmatpush.bf16.msra.mxu3 %v7487_v25  ;;  %v5049_v25 = vld [vmem:[%s9143_s8] sm:$0x3] }
 0xc69   :  { %5265 = vmatpush.bf16.msra.mxu2 %v7415_v13  ;;  %v5051_v16 = vperm.slane %v5049_v25, 0 }
 0xc6c   :  { %5278 = vmatpush.bf16.msra.mxu3 %v7479_v37 }
 0xcc8   :  { %v4962_v5 = vpop.xlane.xlu1 %4961 }
 0xcc9   :  { %v4966_v58 = vmul.f32 %v4962_v5, %v8488_v60 }
 0xccb   :  { %v4968_v62 = vadd.f32 1e-12, %v4966_v58 }
 0xccd   :  { %8177 = vrsqrt.f32 %v4968_v62  ;;  %vm4976_vm6 = vweird.f32 %v4968_v62 }
 0xcd0   :  { %v4965_v33 = vpop.xlane.xlu0 %4964 }
 0xcd1   :  { %v4967_v35 = vmul.f32 %v4965_v33, %v8488_v60  ;;  %v5052_v33 = vperm.slane %v5049_v25, 1 }
 0xcd3   :  { %v8178_v3 = vpop.eup %8177  ;;  %v4969_v45 = vadd.f32 1e-12, %v4967_v35 }
 0xcd4   :  { %v4971_v50 = vmul.f32 %v8178_v3, %v4968_v62  ;;  %vm4977_vm5 = vweird.f32 %v8178_v3 }
 0xcd5   :  { %8179 = vrsqrt.f32 %v4969_v45  ;;  %vm4978_vm7 = vmor %vm4976_vm6, %vm4977_vm5  ;;  %vm4986_vm9 = vweird.f32 %v4969_v45 }
 0xcd6   :  { %v4972_v60 = vmul.f32 %v8178_v3, %v4971_v50 }
 0xcd8   :  { %v4973_v51 = vmul.f32 0.5, %v4972_v60 }
 0xcda   :  { %v4974_v38 = vsub.f32 1.5, %v4973_v51 }
 0xcdb   :  { %v8180_v2 = vpop.eup %8179 }
 0xcdc   :  { %v4975_v11 = vmul.f32 %v8178_v3, %v4974_v38  ;;  %v4981_v46 = vmul.f32 %v8180_v2, %v4969_v45  ;;  %vm4987_vm8 = vweird.f32 %v8180_v2 }
 0xcdd   :  { %vm4988_vm10 = vmor %vm4986_vm9, %vm4987_vm8 }
 0xcde   :  { %v4979_v15 = vsel %vm4978_vm7, %v8178_v3, %v4975_v11  ;;  %v4982_v43 = vmul.f32 %v8180_v2, %v4981_v46 }
 0xcdf   :  { %v4990_v54 = vmul.f32 %v4979_v15, %v8908_v40  ;;  %v4991_v55 = vmul.f32 %v4979_v15, %v8910_v57 }
 0xce0   :  { %v4983_v5 = vmul.f32 0.5, %v4982_v43 }
 0xce1   :  { %v4996_v29 = vmul.f32 %v4994_v18, %v4990_v54  ;;  %v4997_v42 = vmul.f32 %v4995_v56, %v4991_v55 }
 0xce2   :  { %v4984_v20 = vsub.f32 1.5, %v4983_v5 }
 0xce3   :  { %v5002_v58 = vadd.f32 %v5000_v19, %v4996_v29  ;;  %v5003_v14 = vadd.f32 %v5001_v27, %v4997_v42 }
 0xce4   :  { %v4985_v32 = vmul.f32 %v8180_v2, %v4984_v20 }
 0xce5   :  { %v5006_v10 = vpack.c.bf16 %v5003_v14, %v5002_v58  ;;  %v5013_v62 = vpack.c.bf16 %v5002_v58, %v5002_v58  ;;  %v5014_v49 = vpack.c.bf16 %v5003_v14, %v5003_v14 }
 0xce6   :  { %v4989_v31 = vsel %vm4988_vm10, %v8180_v2, %v4985_v32 }
 0xce7   :  { %5008 = vst [vmem:[#allocation2] sm:$0xff] %v5006_v10  ;;  %v4992_v7 = vmul.f32 %v4989_v31, %v8917_v34  ;;  %v4993_v52 = vmul.f32 %v4989_v31, %v8919_v44  ;;  %v5059_v4 = vunpack.c.l.b16 %v5013_v62  ;;  %v5060_v6 = vunpack.c.l.b16 %v5014_v49 }
 0xce9   :  { %v4998_v40 = vmul.f32 %v4994_v18, %v4992_v7  ;;  %v4999_v8 = vmul.f32 %v4995_v56, %v4993_v52 }
 0xceb   :  { %v5004_v57 = vadd.f32 %v5000_v19, %v4998_v40  ;;  %v5005_v39 = vadd.f32 %v5001_v27, %v4999_v8 }
 0xced   :  { %v5007_v63 = vpack.c.bf16 %v5005_v39, %v5004_v57  ;;  %v5015_v30 = vpack.c.bf16 %v5004_v57, %v5004_v57  ;;  %v5016_v22 = vpack.c.bf16 %v5005_v39, %v5005_v39 }
 0xcef   :  { %5009 = vst [vmem:[#allocation2 + $0x8] sm:$0xff] %v5007_v63  ;;  %v5061_v12 = vunpack.c.l.b16 %v5015_v30  ;;  %v5062_v47 = vunpack.c.l.b16 %v5016_v22 }
 0xcf1   :  { %v5063_v59 = vrot.slane %v5061_v12, 7  ;;  %v5066_v23 = vrot.slane %v5062_v47, 7 }
 0xcf3   :  { %v5065_v34 = vsel %vm5064_vm11, %v5063_v59, %v5059_v4  ;;  %v5067_v1 = vsel %vm5064_vm11, %v5066_v23, %v5060_v6 }
 0xcf4   :  { %v5068_v44 = vpack.c.b16 %v5065_v34, %v5065_v34  ;;  %v5069_v24 = vpack.c.b16 %v5067_v1, %v5067_v1 }
 0xcf6   :  { %5240 = vmatmul.bf16.vlgmr.msra.gmra.mxu0 %v5068_v44  ;;  %5253 = vmatmul.bf16.vlgmr.msra.gmra.mxu1 %v5069_v24 }
 0xcf7   :  { %5266 = vmatmul.bf16.vlgmr.msra.gmra.mxu2 %v5068_v44  ;;  %5279 = vmatmul.bf16.vlgmr.msra.gmra.mxu3 %v5069_v24 }
 0xd73   :  { %v5241_v28 = vpop.f32.mrf.mxu0  ;;  %v5254_v61 = vpop.f32.mrf.mxu1 }
 0xd74   :  { %v5242_v53 = vadd.f32 %v5241_v28, %v5051_v16 }
 0xd76   :  { %v5255_v13 = vadd.f32 %v5254_v61, %v5242_v53 }
 0xd7a   :  { %v5267_v17 = vpop.f32.mrf.mxu2  ;;  %v5280_v9 = vpop.f32.mrf.mxu3 }
 0xd7b   :  { %v5268_v21 = vadd.f32 %v5267_v17, %v5052_v33  ;;  %v5243_v35 = vpop.f32.mrf.mxu0  ;;  %v5256_v48 = vpop.f32.mrf.mxu1 }
 0xd7d   :  { %v5281_v36 = vadd.f32 %v5280_v9, %v5268_v21 }
 0xd7f   :  { %8181 = vtanh.f32 %v5281_v36 }
 0xd80   :  { %8183 = vtanh.f32 %v5255_v13 }
 0xd82   :  { %v5269_v26 = vpop.f32.mrf.mxu2  ;;  %v5282_v37 = vpop.f32.mrf.mxu3 }
 0xd85   :  { %v8182_v3 = vpop.eup %8181 }
 0xd86   :  { %v5288_v45 = vrot.slane %v8182_v3, 6  ;;  %v8184_v50 = vpop.eup %8183 }
 0xd88   :  { %v5290_v60 = vsel %vm5289_vm12, %v8184_v50, %v5288_v45 }
 0xd89   :  { %5292 = vst [vmem:[#allocation13] sm:$0xf] %v5290_v60 }
 0xd8a   :  { %5303 = dma.vmem_to_hbm [thread:$0]  %s5299_s2, 64, %s5301_s29, [#allocation7]  }
 0xd8b   :  { %8325 = dma.done.wait [#allocation7], 64  }
 0xd8c   :  { %8326 = vsyncadd [#allocation7], 4294967232 }
 0xd8d   :  { %5308 = vsyncpa [#allocation6], 1 }
 0xd8e   :  { %5309 = vsyncpa [#allocation9], 1 }
 0xd8f   :  { %5310 = vsyncpa [#allocation12], 1 }
 0xd90   :  { %5311 = vsyncpa [#allocation7], 1 }
 0xd91   :  { %5312 = vsyncmov [#allocation4] }
 0xd94   :  { %s5313_s30 = vpop.sfrf %5312 }
 0xd95   :  { %p7536_p0 = scmp.ne.s32.totalorder %s5313_s30, 0 }
 0xd97   :  { %5317 = shalt.err (%p7536_p0)  }

</bundles_post_ra>
